<compile_context>
chip_gen: v7x
topology: tpu7x:2x2x1
jax: 0.10.0
libtpu: 0.0.40
codegen_flags: <defaults>
</compile_context>

<pallas_src>
import math

import numpy as np
import jax
import jax.numpy as jnp
from jax.experimental import pallas as pl
from jax.experimental.pallas import tpu as pltpu

NEG_SLOPE = 0.01  # PyTorch nn.LeakyReLU default negative_slope


# ----------------------------------------------------------------------------
# Positional encodings (the reference imports these from elsewhere).
# TODO(synk): positionencoding1D/2D sources were not provided; a standard
# sin/cos encoding with the shapes implied by SSFFcn/ConvFcn is used.
# ----------------------------------------------------------------------------
def positionencoding1D(length, L):
    # (length, 2L+1): normalized band index + L sin/cos frequency pairs.
    pos = np.arange(length, dtype=np.float32) / float(length)
    feats = [pos]
    for i in range(L):
        feats.append(np.sin((2.0 ** i) * np.pi * pos))
        feats.append(np.cos((2.0 ** i) * np.pi * pos))
    return np.stack(feats, axis=1).astype(np.float32)


def positionencoding2D(h, w, d, petype):
    # (h, w, 4d+2): raw (y, x) coords + d sin/cos pairs per coordinate.
    ys, xs = np.meshgrid(
        np.arange(h, dtype=np.float32) / float(h),
        np.arange(w, dtype=np.float32) / float(w),
        indexing="ij",
    )
    feats = [ys, xs]
    for i in range(d):
        f = (2.0 ** i) * np.pi
        feats += [np.sin(f * ys), np.cos(f * ys), np.sin(f * xs), np.cos(f * xs)]
    return np.stack(feats, axis=2).astype(np.float32)


# ----------------------------------------------------------------------------
# Tiny parameter-generating nets (plain JAX; negligible FLOPs).
# ----------------------------------------------------------------------------
def _leaky(x):
    return jnp.where(x >= 0, x, NEG_SLOPE * x)


def _mlp5(x, ws, bs):
    """5 Linear layers with LeakyReLU between them (none after the last)."""
    h = x
    for i in range(4):
        h = _leaky(jnp.dot(h, ws[i]) + bs[i])
    return jnp.dot(h, ws[4]) + bs[4]


# ----------------------------------------------------------------------------
# Pallas kernel 1: spectral downsample (1x1 conv over bands), NCHW-direct.
# ----------------------------------------------------------------------------
def spectral_kernel(srf_ref, inv_ref, y_ref, o_ref):
    """o[m] = clip((1/sum_c srf[m,c]) * sum_c srf[m,c] * y[c], 0, 1).

    srf / inv live in SMEM as flat f32 scalar tables; the band contraction is
    a per-band scalar * (TH, TW)-tile VPU MAC (the stage is HBM-bandwidth
    bound; an MXU matmul at K = hs_bands would not move wall time).
    """
    hs = y_ref.shape[1]
    ms = o_ref.shape[1]
    accs = [None] * ms
    for c in range(hs):                       # static unroll; each band read once
        yc = y_ref[0, c]                      # (TH, TW) f32
        for m in range(ms):
            term = srf_ref[m * hs + c] * yc
            accs[m] = term if c == 0 else accs[m] + term
    for m in range(ms):
        o_ref[0, m] = jnp.clip(accs[m] * inv_ref[m], 0.0, 1.0)


def _pick_tiles(h, w):
    """(8,128)-aligned (or full-dim) row/col tiles: big enough for decent DMA
    granularity, small enough to keep the ms accumulators in vregs."""
    if w % 128 == 0:
        tw = 128
        while tw * 2 <= min(w, 512) and w % (tw * 2) == 0:
            tw *= 2
    else:
        tw = w                 # block == full array dim is always legal
    if h % 8 == 0:
        th = 8
        while th * 2 <= h and h % (th * 2) == 0 and (th * 2) * tw <= 4096:
            th *= 2
    else:
        th = h
    return th, tw


def spectral_downsample(y, srf_flat, inv):
    """Ylow = clip(conv2d(Y, srf.view(ms,hs,1,1)) * (1/sum srf), 0, 1)."""
    n, hs, h, w = y.shape
    ms = inv.shape[0]
    th, tw = _pick_tiles(h, w)
    grid = (n, h // th, w // tw)
    return pl.pallas_call(
        spectral_kernel,
        grid=grid,
        in_specs=[
            pl.BlockSpec(memory_space=pltpu.MemorySpace.SMEM),   # srf (ms*hs,)
            pl.BlockSpec(memory_space=pltpu.MemorySpace.SMEM),   # 1/sum(srf) (ms,)
            pl.BlockSpec((1, hs, th, tw), lambda i, j, k: (i, 0, j, k)),
        ],
        out_specs=pl.BlockSpec((1, ms, th, tw), lambda i, j, k: (i, 0, j, k)),
        out_shape=jax.ShapeDtypeStruct((n, ms, h, w), jnp.float32),
        compiler_params=pltpu.CompilerParams(
            dimension_semantics=("parallel", "parallel", "parallel"),
            vmem_limit_bytes=32 * 1024 * 1024),
    )(srf_flat, inv, y)


# ----------------------------------------------------------------------------
# Pallas kernel 2: fused depthwise blur + stride-`ratio` subsample.
# ----------------------------------------------------------------------------
def blur_kernel(s_ref, b_ref, z_ref, o_ref):
    """One (image, band): Zlow = clip(sum_p S_p @ Z @ B_p, 0, 1).

    S_p (Hout, H) selects input rows ratio*i + p - pad (all-zero rows encode
    the conv zero padding); B_p (W, Wout) carries the PSF taps psf[p, q] at
    rows ratio*j + q - pad.  Only the surviving 1/ratio**2 output pixels are
    computed, both spatial reductions run on the (otherwise idle) MXU, and no
    padded copy of Z is ever materialized.
    """
    ker = s_ref.shape[0]
    z = z_ref[0, 0]                                               # (H, W) f32
    acc = jnp.zeros((s_ref.shape[1], b_ref.shape[2]), jnp.float32)
    for p in range(ker):                                          # static tap-row loop
        rows = jnp.dot(s_ref[p], z, preferred_element_type=jnp.float32)       # (Hout, W)
        acc = acc + jnp.dot(rows, b_ref[p], preferred_element_type=jnp.float32)
    o_ref[0, 0] = jnp.clip(acc, 0.0, 1.0)


def blur_downsample(z, s_sel, b_taps):
    n, c, hm, wm = z.shape
    ker, hl, _ = s_sel.shape
    wl = b_taps.shape[2]
    # TODO(synk): for very large MSI images (H*W*4 or ker*W*Wout*4 approaching
    # the 32 MiB scoped VMEM, relevant on v7x) this should additionally
    # strip-tile the H axis; at typical BlindNet sizes one band fits easily.
    return pl.pallas_call(
        blur_kernel,
        grid=(n, c),
        in_specs=[
            pl.BlockSpec((ker, hl, hm), lambda i, j: (0, 0, 0)),   # S (constant)
            pl.BlockSpec((ker, wm, wl), lambda i, j: (0, 0, 0)),   # B (constant)
            pl.BlockSpec((1, 1, hm, wm), lambda i, j: (i, j, 0, 0)),
        ],
        out_specs=pl.BlockSpec((1, 1, hl, wl), lambda i, j: (i, j, 0, 0)),
        out_shape=jax.ShapeDtypeStruct((n, c, hl, wl), jnp.float32),
        compiler_params=pltpu.CompilerParams(
            dimension_semantics=("parallel", "parallel"),
            vmem_limit_bytes=32 * 1024 * 1024),
    )(s_sel, b_taps, z)


# ----------------------------------------------------------------------------
# BlindNet wrapper
# ----------------------------------------------------------------------------
def _init_linear(key, d_in, d_out):
    kw, kb = jax.random.split(key)
    bound = 1.0 / math.sqrt(d_in)
    w = jax.random.uniform(kw, (d_in, d_out), jnp.float32, -bound, bound)
    b = jax.random.uniform(kb, (1, d_out), jnp.float32, -bound, bound)
    return w, b


class BlindNetPallas:
    def __init__(self, hs_bands, ms_bands, ker_size, ratio, key):
        # SSFFcn out_dim is hard-coded to 5 in the reference, and
        # Phi.view(ms_bands, hs_bands) requires ms_bands == 5.
        assert ms_bands == 5, "reference semantics require ms_bands == 5"
        self.hs_bands = hs_bands
        self.ms_bands = ms_bands
        self.ker_size = ker_size
        self.ratio = ratio
        self.pad_num = int((ker_size - 1) / 2)

        # SSFFcn(L=ms_bands, out_dim=5): 2L+1 -> 2L -> 2L -> 2L -> 2L -> 5
        L = ms_bands
        ssf_dims = [2 * L + 1, 2 * L, 2 * L, 2 * L, 2 * L, 5]
        # ConvFcn(L=1, out_dim=1): 6 -> 4 -> 2 -> 1 -> 2 -> 1 (1x1 convs)
        conv_dims = [6, 4, 2, 1, 2, 1]

        keys = jax.random.split(key, 10)
        self.ssf_ws, self.ssf_bs = [], []
        for i in range(5):
            w, b = _init_linear(keys[i], ssf_dims[i], ssf_dims[i + 1])
            self.ssf_ws.append(w)
            self.ssf_bs.append(b)
        self.conv_ws, self.conv_bs = [], []
        for i in range(5):
            w, b = _init_linear(keys[5 + i], conv_dims[i], conv_dims[i + 1])
            self.conv_ws.append(w)
            self.conv_bs.append(b)

        # input_1D: (hs_bands, 2*ms_bands + 1)
        self.input_1D = jnp.asarray(positionencoding1D(hs_bands, ms_bands))
        # input_2D (torch): (1, 6, ker, ker); flattened to (ker*ker, 6) rows,
        # row index == h*ker + w, matching torch's .reshape(ker**2) ordering.
        pe2d = positionencoding2D(ker_size, ker_size, 1, "sin_cos")
        self.input_2D_flat = jnp.asarray(pe2d.reshape(ker_size * ker_size, 6))
        self._sel_cache = {}

    def spectral_spatial_params(self):
        """(srf2d, 1/sum(srf), psf) from the two tiny parameter nets."""
        phi = _mlp5(self.input_1D, self.ssf_ws, self.ssf_bs) ** 2            # (hs, 5)
        srf2d = phi.reshape(self.ms_bands, self.hs_bands)                    # torch .view
        inv = 1.0 / jnp.sum(srf2d, axis=1)                                   # srf_div, (ms,)
        conv = _mlp5(self.input_2D_flat, self.conv_ws, self.conv_bs) ** 2    # (k*k, 1)
        psf = jax.nn.softmax(conv.reshape(-1)).reshape(self.ker_size, self.ker_size)
        return srf2d, inv, psf

    def _selection_consts(self, hm, wm):
        """Constant banded selection matrices for the fused blur+downsample."""
        cached = self._sel_cache.get((hm, wm))
        if cached is None:
            ker, r, pad = self.ker_size, self.ratio, self.pad_num
            hl, wl = -(-hm // r), -(-wm // r)
            s = np.zeros((ker, hl, hm), np.float32)
            for p in range(ker):
                for i in range(hl):
                    hh = r * i + p - pad
                    if 0 <= hh < hm:
                        s[p, i, hh] = 1.0
            q1h = np.zeros((ker, wm, wl), np.float32)
            for q in range(ker):
                for j in range(wl):
                    ww = r * j + q - pad
                    if 0 <= ww < wm:
                        q1h[q, ww, j] = 1.0
            cached = (jnp.asarray(s), jnp.asarray(q1h))
            self._sel_cache[(hm, wm)] = cached
        return cached

    def __call__(self, Y, Z):
        srf2d, inv, psf = self.spectral_spatial_params()

        # Ylow = clamp(conv2d(Y, srf) * srf_div, 0, 1), NCHW in / NCHW out.
        ylow = spectral_downsample(Y.astype(jnp.float32), srf2d.reshape(-1), inv)

        # Zlow = clamp(BlurDown(Z, psf, pad, ms_bands, ratio), 0, 1) with the
        # stride folded into the kernel (PSF taps embedded in B = Q . psf).
        n, c, hm, wm = Z.shape
        s_sel, q1h = self._selection_consts(hm, wm)
        b_taps = jnp.einsum("qwj,pq->pwj", q1h, psf)
        zlow = blur_downsample(Z.astype(jnp.float32), s_sel, b_taps)
        return ylow, zlow


# ----------------------------------------------------------------------------
# Demo
# ----------------------------------------------------------------------------
if __name__ == "__main__":
    hs_bands, ms_bands = 16, 5
    ker_size, ratio = 5, 4
    n = 2
    h, w = 32, 128                       # HSI spatial size (lane-dense width)
    H, W = h * ratio, w * ratio          # MSI spatial size (128 x 512)

    key = jax.random.PRNGKey(0)
    k_y, k_z, k_params = jax.random.split(key, 3)
    Y = jax.random.uniform(k_y, (n, hs_bands, h, w), jnp.float32)   # HSI, NCHW
    Z = jax.random.uniform(k_z, (n, ms_bands, H, W), jnp.float32)   # MSI, NCHW

    net = BlindNetPallas(hs_bands, ms_bands, ker_size, ratio, k_params)
    fwd = jax.jit(net.__call__)
    ylow, zlow = fwd(Y, Z)
    jax.block_until_ready((ylow, zlow))

    assert ylow.shape == (n, ms_bands, h, w)
    assert zlow.shape == (n, ms_bands, H // ratio, W // ratio)
    assert bool(jnp.all((ylow >= 0.0) & (ylow <= 1.0)))
    assert bool(jnp.all((zlow >= 0.0) & (zlow <= 1.0)))

    # Numerical sanity check against a plain NumPy reference of the PyTorch
    # forward (1x1 band conv * srf_div; pad + depthwise blur + [::ratio]).
    srf_n, inv_n, psf_n = (np.asarray(a) for a in net.spectral_spatial_params())
    Yn = np.asarray(Y, np.float32)
    Zn = np.asarray(Z, np.float32)
    ylow_ref = np.einsum("mc,nchw->nmhw", srf_n, Yn) * inv_n[None, :, None, None]
    ylow_ref = np.clip(ylow_ref, 0.0, 1.0)
    pad = net.pad_num
    Zp = np.pad(Zn, ((0, 0), (0, 0), (pad, pad), (pad, pad)))
    acc = np.zeros_like(Zn)
    for p in range(ker_size):
        for q in range(ker_size):
            acc += psf_n[p, q] * Zp[:, :, p:p + H, q:q + W]
    zlow_ref = np.clip(acc, 0.0, 1.0)[:, :, ::ratio, ::ratio]
    assert float(np.max(np.abs(np.asarray(ylow) - ylow_ref))) < 5e-3
    assert float(np.max(np.abs(np.asarray(zlow) - zlow_ref))) < 2e-2

    print("KERNEL_OK")
</pallas_src>

<mosaic_0001>
module attributes {stable_mosaic.version = 11 : i64} {
  func.func @blur_kernel(%arg0: i32, %arg1: i32, %arg2: memref<5x32x128xf32, #tpu.memory_space<vmem>>, %arg3: memref<5x512x128xf32, #tpu.memory_space<vmem>>, %arg4: memref<1x1x128x512xf32, #tpu.memory_space<vmem>>, %arg5: memref<1x1x32x128xf32, #tpu.memory_space<vmem>>) attributes {dimension_semantics = [#tpu.dimension_semantics<parallel>, #tpu.dimension_semantics<parallel>], iteration_bounds = array<i64: 2, 5>, scalar_prefetch = 0 : i64, scratch_operands = 0 : i64, tpu.core_type = #tpu.core_type<tc>, window_params = [{pipeline_mode = #tpu.pipeline_mode<synchronous>, transform_indices = @transform_0, window_bounds = array<i64: 5, 32, 128>}, {pipeline_mode = #tpu.pipeline_mode<synchronous>, transform_indices = @transform_1, window_bounds = array<i64: 5, 512, 128>}, {transform_indices = @transform_2, window_bounds = array<i64: 1, 1, 128, 512>}, {transform_indices = @transform_3, window_bounds = array<i64: 1, 1, 32, 128>}]} {
    %c0 = arith.constant 0 : index
    %c0_0 = arith.constant 0 : index
    %c0_1 = arith.constant 0 : index
    %c0_2 = arith.constant 0 : index
    %0 = vector.load %arg4[%c0, %c0_0, %c0_1, %c0_2] : memref<1x1x128x512xf32, #tpu.memory_space<vmem>>, vector<1x1x128x512xf32>
    %1 = vector.shape_cast %0 : vector<1x1x128x512xf32> to vector<128x512xf32>
    %cst = arith.constant 0.000000e+00 : f32
    %2 = vector.broadcast %cst : f32 to vector<32x128xf32>
    %c0_3 = arith.constant 0 : index
    %c0_4 = arith.constant 0 : index
    %c0_5 = arith.constant 0 : index
    %3 = vector.load %arg2[%c0_3, %c0_4, %c0_5] : memref<5x32x128xf32, #tpu.memory_space<vmem>>, vector<1x32x128xf32>
    %4 = vector.shape_cast %3 : vector<1x32x128xf32> to vector<32x128xf32>
    %cst_6 = arith.constant dense<0.000000e+00> : vector<32x512xf32>
    %5 = tpu.matmul %4, %1, %cst_6 {dimension_numbers = #tpu.dot_dimension_numbers<[1], [0], [0], [1], [0, 0, 1, 1], [], []>} : vector<32x128xf32>, vector<128x512xf32>, vector<32x512xf32> -> vector<32x512xf32>
    %c0_7 = arith.constant 0 : index
    %c0_8 = arith.constant 0 : index
    %c0_9 = arith.constant 0 : index
    %6 = vector.load %arg3[%c0_7, %c0_8, %c0_9] : memref<5x512x128xf32, #tpu.memory_space<vmem>>, vector<1x512x128xf32>
    %7 = vector.shape_cast %6 : vector<1x512x128xf32> to vector<512x128xf32>
    %cst_10 = arith.constant dense<0.000000e+00> : vector<32x128xf32>
    %8 = tpu.matmul %5, %7, %cst_10 {dimension_numbers = #tpu.dot_dimension_numbers<[1], [0], [0], [1], [0, 0, 1, 1], [], []>} : vector<32x512xf32>, vector<512x128xf32>, vector<32x128xf32> -> vector<32x128xf32>
    %9 = arith.addf %2, %8 : vector<32x128xf32>
    %c1 = arith.constant 1 : index
    %c0_11 = arith.constant 0 : index
    %c0_12 = arith.constant 0 : index
    %10 = vector.load %arg2[%c1, %c0_11, %c0_12] : memref<5x32x128xf32, #tpu.memory_space<vmem>>, vector<1x32x128xf32>
    %11 = vector.shape_cast %10 : vector<1x32x128xf32> to vector<32x128xf32>
    %cst_13 = arith.constant dense<0.000000e+00> : vector<32x512xf32>
    %12 = tpu.matmul %11, %1, %cst_13 {dimension_numbers = #tpu.dot_dimension_numbers<[1], [0], [0], [1], [0, 0, 1, 1], [], []>} : vector<32x128xf32>, vector<128x512xf32>, vector<32x512xf32> -> vector<32x512xf32>
    %c1_14 = arith.constant 1 : index
    %c0_15 = arith.constant 0 : index
    %c0_16 = arith.constant 0 : index
    %13 = vector.load %arg3[%c1_14, %c0_15, %c0_16] : memref<5x512x128xf32, #tpu.memory_space<vmem>>, vector<1x512x128xf32>
    %14 = vector.shape_cast %13 : vector<1x512x128xf32> to vector<512x128xf32>
    %cst_17 = arith.constant dense<0.000000e+00> : vector<32x128xf32>
    %15 = tpu.matmul %12, %14, %cst_17 {dimension_numbers = #tpu.dot_dimension_numbers<[1], [0], [0], [1], [0, 0, 1, 1], [], []>} : vector<32x512xf32>, vector<512x128xf32>, vector<32x128xf32> -> vector<32x128xf32>
    %16 = arith.addf %9, %15 : vector<32x128xf32>
    %c2 = arith.constant 2 : index
    %c0_18 = arith.constant 0 : index
    %c0_19 = arith.constant 0 : index
    %17 = vector.load %arg2[%c2, %c0_18, %c0_19] : memref<5x32x128xf32, #tpu.memory_space<vmem>>, vector<1x32x128xf32>
    %18 = vector.shape_cast %17 : vector<1x32x128xf32> to vector<32x128xf32>
    %cst_20 = arith.constant dense<0.000000e+00> : vector<32x512xf32>
    %19 = tpu.matmul %18, %1, %cst_20 {dimension_numbers = #tpu.dot_dimension_numbers<[1], [0], [0], [1], [0, 0, 1, 1], [], []>} : vector<32x128xf32>, vector<128x512xf32>, vector<32x512xf32> -> vector<32x512xf32>
    %c2_21 = arith.constant 2 : index
    %c0_22 = arith.constant 0 : index
    %c0_23 = arith.constant 0 : index
    %20 = vector.load %arg3[%c2_21, %c0_22, %c0_23] : memref<5x512x128xf32, #tpu.memory_space<vmem>>, vector<1x512x128xf32>
    %21 = vector.shape_cast %20 : vector<1x512x128xf32> to vector<512x128xf32>
    %cst_24 = arith.constant dense<0.000000e+00> : vector<32x128xf32>
    %22 = tpu.matmul %19, %21, %cst_24 {dimension_numbers = #tpu.dot_dimension_numbers<[1], [0], [0], [1], [0, 0, 1, 1], [], []>} : vector<32x512xf32>, vector<512x128xf32>, vector<32x128xf32> -> vector<32x128xf32>
    %23 = arith.addf %16, %22 : vector<32x128xf32>
    %c3 = arith.constant 3 : index
    %c0_25 = arith.constant 0 : index
    %c0_26 = arith.constant 0 : index
    %24 = vector.load %arg2[%c3, %c0_25, %c0_26] : memref<5x32x128xf32, #tpu.memory_space<vmem>>, vector<1x32x128xf32>
    %25 = vector.shape_cast %24 : vector<1x32x128xf32> to vector<32x128xf32>
    %cst_27 = arith.constant dense<0.000000e+00> : vector<32x512xf32>
    %26 = tpu.matmul %25, %1, %cst_27 {dimension_numbers = #tpu.dot_dimension_numbers<[1], [0], [0], [1], [0, 0, 1, 1], [], []>} : vector<32x128xf32>, vector<128x512xf32>, vector<32x512xf32> -> vector<32x512xf32>
    %c3_28 = arith.constant 3 : index
    %c0_29 = arith.constant 0 : index
    %c0_30 = arith.constant 0 : index
    %27 = vector.load %arg3[%c3_28, %c0_29, %c0_30] : memref<5x512x128xf32, #tpu.memory_space<vmem>>, vector<1x512x128xf32>
    %28 = vector.shape_cast %27 : vector<1x512x128xf32> to vector<512x128xf32>
    %cst_31 = arith.constant dense<0.000000e+00> : vector<32x128xf32>
    %29 = tpu.matmul %26, %28, %cst_31 {dimension_numbers = #tpu.dot_dimension_numbers<[1], [0], [0], [1], [0, 0, 1, 1], [], []>} : vector<32x512xf32>, vector<512x128xf32>, vector<32x128xf32> -> vector<32x128xf32>
    %30 = arith.addf %23, %29 : vector<32x128xf32>
    %c4 = arith.constant 4 : index
    %c0_32 = arith.constant 0 : index
    %c0_33 = arith.constant 0 : index
    %31 = vector.load %arg2[%c4, %c0_32, %c0_33] : memref<5x32x128xf32, #tpu.memory_space<vmem>>, vector<1x32x128xf32>
    %32 = vector.shape_cast %31 : vector<1x32x128xf32> to vector<32x128xf32>
    %cst_34 = arith.constant dense<0.000000e+00> : vector<32x512xf32>
    %33 = tpu.matmul %32, %1, %cst_34 {dimension_numbers = #tpu.dot_dimension_numbers<[1], [0], [0], [1], [0, 0, 1, 1], [], []>} : vector<32x128xf32>, vector<128x512xf32>, vector<32x512xf32> -> vector<32x512xf32>
    %c4_35 = arith.constant 4 : index
    %c0_36 = arith.constant 0 : index
    %c0_37 = arith.constant 0 : index
    %34 = vector.load %arg3[%c4_35, %c0_36, %c0_37] : memref<5x512x128xf32, #tpu.memory_space<vmem>>, vector<1x512x128xf32>
    %35 = vector.shape_cast %34 : vector<1x512x128xf32> to vector<512x128xf32>
    %cst_38 = arith.constant dense<0.000000e+00> : vector<32x128xf32>
    %36 = tpu.matmul %33, %35, %cst_38 {dimension_numbers = #tpu.dot_dimension_numbers<[1], [0], [0], [1], [0, 0, 1, 1], [], []>} : vector<32x512xf32>, vector<512x128xf32>, vector<32x128xf32> -> vector<32x128xf32>
    %37 = arith.addf %30, %36 : vector<32x128xf32>
    %cst_39 = arith.constant 0.000000e+00 : f32
    %cst_40 = arith.constant 1.000000e+00 : f32
    %38 = vector.broadcast %cst_39 : f32 to vector<32x128xf32>
    %39 = arith.maximumf %38, %37 : vector<32x128xf32>
    %40 = vector.broadcast %cst_40 : f32 to vector<32x128xf32>
    %41 = arith.minimumf %40, %39 : vector<32x128xf32>
    %c0_41 = arith.constant 0 : index
    %c0_42 = arith.constant 0 : index
    %c0_43 = arith.constant 0 : index
    %c0_44 = arith.constant 0 : index
    %42 = vector.load %arg5[%c0_41, %c0_42, %c0_43, %c0_44] : memref<1x1x32x128xf32, #tpu.memory_space<vmem>>, vector<1x1x32x128xf32>
    %43 = vector.shape_cast %42 : vector<1x1x32x128xf32> to vector<32x128xf32>
    %44 = vector.shape_cast %41 : vector<32x128xf32> to vector<1x1x32x128xf32>
    tpu.vector_store %arg5[%c0_41, %c0_42, %c0_43, %c0_44], %44 {strides = array<i32>} : memref<1x1x32x128xf32, #tpu.memory_space<vmem>>, vector<1x1x32x128xf32>,
    return
  }
  func.func @transform_0(%arg0: i32, %arg1: i32) -> (i32, i32, i32) {
    %c0_i32 = arith.constant 0 : i32
    %c0_i32_0 = arith.constant 0 : i32
    %c0_i32_1 = arith.constant 0 : i32
    %c0_i32_2 = arith.constant 0 : i32
    return %c0_i32, %c0_i32_0, %c0_i32_1 : i32, i32, i32
  }
  func.func @transform_1(%arg0: i32, %arg1: i32) -> (i32, i32, i32) {
    %c0_i32 = arith.constant 0 : i32
    %c0_i32_0 = arith.constant 0 : i32
    %c0_i32_1 = arith.constant 0 : i32
    %c0_i32_2 = arith.constant 0 : i32
    return %c0_i32, %c0_i32_0, %c0_i32_1 : i32, i32, i32
  }
  func.func @transform_2(%arg0: i32, %arg1: i32) -> (i32, i32, i32, i32) {
    %c0_i32 = arith.constant 0 : i32
    %c0_i32_0 = arith.constant 0 : i32
    %c0_i32_1 = arith.constant 0 : i32
    return %arg0, %arg1, %c0_i32, %c0_i32_0 : i32, i32, i32, i32
  }
  func.func @transform_3(%arg0: i32, %arg1: i32) -> (i32, i32, i32, i32) {
    %c0_i32 = arith.constant 0 : i32
    %c0_i32_0 = arith.constant 0 : i32
    %c0_i32_1 = arith.constant 0 : i32
    return %arg0, %arg1, %c0_i32, %c0_i32_0 : i32, i32, i32, i32
  }
}

module attributes {stable_mosaic.version = 11 : i64} {
  func.func @spectral_kernel(%arg0: i32, %arg1: i32, %arg2: i32, %arg3: memref<80xf32, #tpu.memory_space<smem>>, %arg4: memref<5xf32, #tpu.memory_space<smem>>, %arg5: memref<1x16x32x128xf32, #tpu.memory_space<vmem>>, %arg6: memref<1x5x32x128xf32, #tpu.memory_space<vmem>>) attributes {dimension_semantics = [#tpu.dimension_semantics<parallel>, #tpu.dimension_semantics<parallel>, #tpu.dimension_semantics<parallel>], iteration_bounds = array<i64: 2, 1, 1>, scalar_prefetch = 0 : i64, scratch_operands = 0 : i64, tpu.core_type = #tpu.core_type<tc>, window_params = [{transform_indices = @transform_0, window_bounds = array<i64: 80>}, {transform_indices = @transform_1, window_bounds = array<i64: 5>}, {transform_indices = @transform_2, window_bounds = array<i64: 1, 16, 32, 128>}, {transform_indices = @transform_3, window_bounds = array<i64: 1, 5, 32, 128>}]} {
    %c0 = arith.constant 0 : index
    %c0_0 = arith.constant 0 : index
    %c0_1 = arith.constant 0 : index
    %c0_2 = arith.constant 0 : index
    %0 = vector.load %arg5[%c0, %c0_0, %c0_1, %c0_2] : memref<1x16x32x128xf32, #tpu.memory_space<vmem>>, vector<1x1x32x128xf32>
    %1 = vector.shape_cast %0 : vector<1x1x32x128xf32> to vector<32x128xf32>
    %c0_3 = arith.constant 0 : index
    %2 = memref.load %arg3[%c0_3] : memref<80xf32, #tpu.memory_space<smem>>
    %3 = vector.broadcast %2 : f32 to vector<32x128xf32>
    %4 = arith.mulf %3, %1 : vector<32x128xf32>
    %c16 = arith.constant 16 : index
    %5 = memref.load %arg3[%c16] : memref<80xf32, #tpu.memory_space<smem>>
    %6 = vector.broadcast %5 : f32 to vector<32x128xf32>
    %7 = arith.mulf %6, %1 : vector<32x128xf32>
    %c32 = arith.constant 32 : index
    %8 = memref.load %arg3[%c32] : memref<80xf32, #tpu.memory_space<smem>>
    %9 = vector.broadcast %8 : f32 to vector<32x128xf32>
    %10 = arith.mulf %9, %1 : vector<32x128xf32>
    %c48 = arith.constant 48 : index
    %11 = memref.load %arg3[%c48] : memref<80xf32, #tpu.memory_space<smem>>
    %12 = vector.broadcast %11 : f32 to vector<32x128xf32>
    %13 = arith.mulf %12, %1 : vector<32x128xf32>
    %c64 = arith.constant 64 : index
    %14 = memref.load %arg3[%c64] : memref<80xf32, #tpu.memory_space<smem>>
    %15 = vector.broadcast %14 : f32 to vector<32x128xf32>
    %16 = arith.mulf %15, %1 : vector<32x128xf32>
    %c0_4 = arith.constant 0 : index
    %c1 = arith.constant 1 : index
    %c0_5 = arith.constant 0 : index
    %c0_6 = arith.constant 0 : index
    %17 = vector.load %arg5[%c0_4, %c1, %c0_5, %c0_6] : memref<1x16x32x128xf32, #tpu.memory_space<vmem>>, vector<1x1x32x128xf32>
    %18 = vector.shape_cast %17 : vector<1x1x32x128xf32> to vector<32x128xf32>
    %c1_7 = arith.constant 1 : index
    %19 = memref.load %arg3[%c1_7] : memref<80xf32, #tpu.memory_space<smem>>
    %20 = vector.broadcast %19 : f32 to vector<32x128xf32>
    %21 = arith.mulf %20, %18 : vector<32x128xf32>
    %22 = arith.addf %4, %21 : vector<32x128xf32>
    %c17 = arith.constant 17 : index
    %23 = memref.load %arg3[%c17] : memref<80xf32, #tpu.memory_space<smem>>
    %24 = vector.broadcast %23 : f32 to vector<32x128xf32>
    %25 = arith.mulf %24, %18 : vector<32x128xf32>
    %26 = arith.addf %7, %25 : vector<32x128xf32>
    %c33 = arith.constant 33 : index
    %27 = memref.load %arg3[%c33] : memref<80xf32, #tpu.memory_space<smem>>
    %28 = vector.broadcast %27 : f32 to vector<32x128xf32>
    %29 = arith.mulf %28, %18 : vector<32x128xf32>
    %30 = arith.addf %10, %29 : vector<32x128xf32>
    %c49 = arith.constant 49 : index
    %31 = memref.load %arg3[%c49] : memref<80xf32, #tpu.memory_space<smem>>
    %32 = vector.broadcast %31 : f32 to vector<32x128xf32>
    %33 = arith.mulf %32, %18 : vector<32x128xf32>
    %34 = arith.addf %13, %33 : vector<32x128xf32>
    %c65 = arith.constant 65 : index
    %35 = memref.load %arg3[%c65] : memref<80xf32, #tpu.memory_space<smem>>
    %36 = vector.broadcast %35 : f32 to vector<32x128xf32>
    %37 = arith.mulf %36, %18 : vector<32x128xf32>
    %38 = arith.addf %16, %37 : vector<32x128xf32>
    %c0_8 = arith.constant 0 : index
    %c2 = arith.constant 2 : index
    %c0_9 = arith.constant 0 : index
    %c0_10 = arith.constant 0 : index
    %39 = vector.load %arg5[%c0_8, %c2, %c0_9, %c0_10] : memref<1x16x32x128xf32, #tpu.memory_space<vmem>>, vector<1x1x32x128xf32>
    %40 = vector.shape_cast %39 : vector<1x1x32x128xf32> to vector<32x128xf32>
    %c2_11 = arith.constant 2 : index
    %41 = memref.load %arg3[%c2_11] : memref<80xf32, #tpu.memory_space<smem>>
    %42 = vector.broadcast %41 : f32 to vector<32x128xf32>
    %43 = arith.mulf %42, %40 : vector<32x128xf32>
    %44 = arith.addf %22, %43 : vector<32x128xf32>
    %c18 = arith.constant 18 : index
    %45 = memref.load %arg3[%c18] : memref<80xf32, #tpu.memory_space<smem>>
    %46 = vector.broadcast %45 : f32 to vector<32x128xf32>
    %47 = arith.mulf %46, %40 : vector<32x128xf32>
    %48 = arith.addf %26, %47 : vector<32x128xf32>
    %c34 = arith.constant 34 : index
    %49 = memref.load %arg3[%c34] : memref<80xf32, #tpu.memory_space<smem>>
    %50 = vector.broadcast %49 : f32 to vector<32x128xf32>
    %51 = arith.mulf %50, %40 : vector<32x128xf32>
    %52 = arith.addf %30, %51 : vector<32x128xf32>
    %c50 = arith.constant 50 : index
    %53 = memref.load %arg3[%c50] : memref<80xf32, #tpu.memory_space<smem>>
    %54 = vector.broadcast %53 : f32 to vector<32x128xf32>
    %55 = arith.mulf %54, %40 : vector<32x128xf32>
    %56 = arith.addf %34, %55 : vector<32x128xf32>
    %c66 = arith.constant 66 : index
    %57 = memref.load %arg3[%c66] : memref<80xf32, #tpu.memory_space<smem>>
    %58 = vector.broadcast %57 : f32 to vector<32x128xf32>
    %59 = arith.mulf %58, %40 : vector<32x128xf32>
    %60 = arith.addf %38, %59 : vector<32x128xf32>
    %c0_12 = arith.constant 0 : index
    %c3 = arith.constant 3 : index
    %c0_13 = arith.constant 0 : index
    %c0_14 = arith.constant 0 : index
    %61 = vector.load %arg5[%c0_12, %c3, %c0_13, %c0_14] : memref<1x16x32x128xf32, #tpu.memory_space<vmem>>, vector<1x1x32x128xf32>
    %62 = vector.shape_cast %61 : vector<1x1x32x128xf32> to vector<32x128xf32>
    %c3_15 = arith.constant 3 : index
    %63 = memref.load %arg3[%c3_15] : memref<80xf32, #tpu.memory_space<smem>>
    %64 = vector.broadcast %63 : f32 to vector<32x128xf32>
    %65 = arith.mulf %64, %62 : vector<32x128xf32>
    %66 = arith.addf %44, %65 : vector<32x128xf32>
    %c19 = arith.constant 19 : index
    %67 = memref.load %arg3[%c19] : memref<80xf32, #tpu.memory_space<smem>>
    %68 = vector.broadcast %67 : f32 to vector<32x128xf32>
    %69 = arith.mulf %68, %62 : vector<32x128xf32>
    %70 = arith.addf %48, %69 : vector<32x128xf32>
    %c35 = arith.constant 35 : index
    %71 = memref.load %arg3[%c35] : memref<80xf32, #tpu.memory_space<smem>>
    %72 = vector.broadcast %71 : f32 to vector<32x128xf32>
    %73 = arith.mulf %72, %62 : vector<32x128xf32>
    %74 = arith.addf %52, %73 : vector<32x128xf32>
    %c51 = arith.constant 51 : index
    %75 = memref.load %arg3[%c51] : memref<80xf32, #tpu.memory_space<smem>>
    %76 = vector.broadcast %75 : f32 to vector<32x128xf32>
    %77 = arith.mulf %76, %62 : vector<32x128xf32>
    %78 = arith.addf %56, %77 : vector<32x128xf32>
    %c67 = arith.constant 67 : index
    %79 = memref.load %arg3[%c67] : memref<80xf32, #tpu.memory_space<smem>>
    %80 = vector.broadcast %79 : f32 to vector<32x128xf32>
    %81 = arith.mulf %80, %62 : vector<32x128xf32>
    %82 = arith.addf %60, %81 : vector<32x128xf32>
    %c0_16 = arith.constant 0 : index
    %c4 = arith.constant 4 : index
    %c0_17 = arith.constant 0 : index
    %c0_18 = arith.constant 0 : index
    %83 = vector.load %arg5[%c0_16, %c4, %c0_17, %c0_18] : memref<1x16x32x128xf32, #tpu.memory_space<vmem>>, vector<1x1x32x128xf32>
    %84 = vector.shape_cast %83 : vector<1x1x32x128xf32> to vector<32x128xf32>
    %c4_19 = arith.constant 4 : index
    %85 = memref.load %arg3[%c4_19] : memref<80xf32, #tpu.memory_space<smem>>
    %86 = vector.broadcast %85 : f32 to vector<32x128xf32>
    %87 = arith.mulf %86, %84 : vector<32x128xf32>
    %88 = arith.addf %66, %87 : vector<32x128xf32>
    %c20 = arith.constant 20 : index
    %89 = memref.load %arg3[%c20] : memref<80xf32, #tpu.memory_space<smem>>
    %90 = vector.broadcast %89 : f32 to vector<32x128xf32>
    %91 = arith.mulf %90, %84 : vector<32x128xf32>
    %92 = arith.addf %70, %91 : vector<32x128xf32>
    %c36 = arith.constant 36 : index
    %93 = memref.load %arg3[%c36] : memref<80xf32, #tpu.memory_space<smem>>
    %94 = vector.broadcast %93 : f32 to vector<32x128xf32>
    %95 = arith.mulf %94, %84 : vector<32x128xf32>
    %96 = arith.addf %74, %95 : vector<32x128xf32>
    %c52 = arith.constant 52 : index
    %97 = memref.load %arg3[%c52] : memref<80xf32, #tpu.memory_space<smem>>
    %98 = vector.broadcast %97 : f32 to vector<32x128xf32>
    %99 = arith.mulf %98, %84 : vector<32x128xf32>
    %100 = arith.addf %78, %99 : vector<32x128xf32>
    %c68 = arith.constant 68 : index
    %101 = memref.load %arg3[%c68] : memref<80xf32, #tpu.memory_space<smem>>
    %102 = vector.broadcast %101 : f32 to vector<32x128xf32>
    %103 = arith.mulf %102, %84 : vector<32x128xf32>
    %104 = arith.addf %82, %103 : vector<32x128xf32>
    %c0_20 = arith.constant 0 : index
    %c5 = arith.constant 5 : index
    %c0_21 = arith.constant 0 : index
    %c0_22 = arith.constant 0 : index
    %105 = vector.load %arg5[%c0_20, %c5, %c0_21, %c0_22] : memref<1x16x32x128xf32, #tpu.memory_space<vmem>>, vector<1x1x32x128xf32>
    %106 = vector.shape_cast %105 : vector<1x1x32x128xf32> to vector<32x128xf32>
    %c5_23 = arith.constant 5 : index
    %107 = memref.load %arg3[%c5_23] : memref<80xf32, #tpu.memory_space<smem>>
    %108 = vector.broadcast %107 : f32 to vector<32x128xf32>
    %109 = arith.mulf %108, %106 : vector<32x128xf32>
    %110 = arith.addf %88, %109 : vector<32x128xf32>
    %c21 = arith.constant 21 : index
    %111 = memref.load %arg3[%c21] : memref<80xf32, #tpu.memory_space<smem>>
    %112 = vector.broadcast %111 : f32 to vector<32x128xf32>
    %113 = arith.mulf %112, %106 : vector<32x128xf32>
    %114 = arith.addf %92, %113 : vector<32x128xf32>
    %c37 = arith.constant 37 : index
    %115 = memref.load %arg3[%c37] : memref<80xf32, #tpu.memory_space<smem>>
    %116 = vector.broadcast %115 : f32 to vector<32x128xf32>
    %117 = arith.mulf %116, %106 : vector<32x128xf32>
    %118 = arith.addf %96, %117 : vector<32x128xf32>
    %c53 = arith.constant 53 : index
    %119 = memref.load %arg3[%c53] : memref<80xf32, #tpu.memory_space<smem>>
    %120 = vector.broadcast %119 : f32 to vector<32x128xf32>
    %121 = arith.mulf %120, %106 : vector<32x128xf32>
    %122 = arith.addf %100, %121 : vector<32x128xf32>
    %c69 = arith.constant 69 : index
    %123 = memref.load %arg3[%c69] : memref<80xf32, #tpu.memory_space<smem>>
    %124 = vector.broadcast %123 : f32 to vector<32x128xf32>
    %125 = arith.mulf %124, %106 : vector<32x128xf32>
    %126 = arith.addf %104, %125 : vector<32x128xf32>
    %c0_24 = arith.constant 0 : index
    %c6 = arith.constant 6 : index
    %c0_25 = arith.constant 0 : index
    %c0_26 = arith.constant 0 : index
    %127 = vector.load %arg5[%c0_24, %c6, %c0_25, %c0_26] : memref<1x16x32x128xf32, #tpu.memory_space<vmem>>, vector<1x1x32x128xf32>
    %128 = vector.shape_cast %127 : vector<1x1x32x128xf32> to vector<32x128xf32>
    %c6_27 = arith.constant 6 : index
    %129 = memref.load %arg3[%c6_27] : memref<80xf32, #tpu.memory_space<smem>>
    %130 = vector.broadcast %129 : f32 to vector<32x128xf32>
    %131 = arith.mulf %130, %128 : vector<32x128xf32>
    %132 = arith.addf %110, %131 : vector<32x128xf32>
    %c22 = arith.constant 22 : index
    %133 = memref.load %arg3[%c22] : memref<80xf32, #tpu.memory_space<smem>>
    %134 = vector.broadcast %133 : f32 to vector<32x128xf32>
    %135 = arith.mulf %134, %128 : vector<32x128xf32>
    %136 = arith.addf %114, %135 : vector<32x128xf32>
    %c38 = arith.constant 38 : index
    %137 = memref.load %arg3[%c38] : memref<80xf32, #tpu.memory_space<smem>>
    %138 = vector.broadcast %137 : f32 to vector<32x128xf32>
    %139 = arith.mulf %138, %128 : vector<32x128xf32>
    %140 = arith.addf %118, %139 : vector<32x128xf32>
    %c54 = arith.constant 54 : index
    %141 = memref.load %arg3[%c54] : memref<80xf32, #tpu.memory_space<smem>>
    %142 = vector.broadcast %141 : f32 to vector<32x128xf32>
    %143 = arith.mulf %142, %128 : vector<32x128xf32>
    %144 = arith.addf %122, %143 : vector<32x128xf32>
    %c70 = arith.constant 70 : index
    %145 = memref.load %arg3[%c70] : memref<80xf32, #tpu.memory_space<smem>>
    %146 = vector.broadcast %145 : f32 to vector<32x128xf32>
    %147 = arith.mulf %146, %128 : vector<32x128xf32>
    %148 = arith.addf %126, %147 : vector<32x128xf32>
    %c0_28 = arith.constant 0 : index
    %c7 = arith.constant 7 : index
    %c0_29 = arith.constant 0 : index
    %c0_30 = arith.constant 0 : index
    %149 = vector.load %arg5[%c0_28, %c7, %c0_29, %c0_30] : memref<1x16x32x128xf32, #tpu.memory_space<vmem>>, vector<1x1x32x128xf32>
    %150 = vector.shape_cast %149 : vector<1x1x32x128xf32> to vector<32x128xf32>
    %c7_31 = arith.constant 7 : index
    %151 = memref.load %arg3[%c7_31] : memref<80xf32, #tpu.memory_space<smem>>
    %152 = vector.broadcast %151 : f32 to vector<32x128xf32>
    %153 = arith.mulf %152, %150 : vector<32x128xf32>
    %154 = arith.addf %132, %153 : vector<32x128xf32>
    %c23 = arith.constant 23 : index
    %155 = memref.load %arg3[%c23] : memref<80xf32, #tpu.memory_space<smem>>
    %156 = vector.broadcast %155 : f32 to vector<32x128xf32>
    %157 = arith.mulf %156, %150 : vector<32x128xf32>
    %158 = arith.addf %136, %157 : vector<32x128xf32>
    %c39 = arith.constant 39 : index
    %159 = memref.load %arg3[%c39] : memref<80xf32, #tpu.memory_space<smem>>
    %160 = vector.broadcast %159 : f32 to vector<32x128xf32>
    %161 = arith.mulf %160, %150 : vector<32x128xf32>
    %162 = arith.addf %140, %161 : vector<32x128xf32>
    %c55 = arith.constant 55 : index
    %163 = memref.load %arg3[%c55] : memref<80xf32, #tpu.memory_space<smem>>
    %164 = vector.broadcast %163 : f32 to vector<32x128xf32>
    %165 = arith.mulf %164, %150 : vector<32x128xf32>
    %166 = arith.addf %144, %165 : vector<32x128xf32>
    %c71 = arith.constant 71 : index
    %167 = memref.load %arg3[%c71] : memref<80xf32, #tpu.memory_space<smem>>
    %168 = vector.broadcast %167 : f32 to vector<32x128xf32>
    %169 = arith.mulf %168, %150 : vector<32x128xf32>
    %170 = arith.addf %148, %169 : vector<32x128xf32>
    %c0_32 = arith.constant 0 : index
    %c8 = arith.constant 8 : index
    %c0_33 = arith.constant 0 : index
    %c0_34 = arith.constant 0 : index
    %171 = vector.load %arg5[%c0_32, %c8, %c0_33, %c0_34] : memref<1x16x32x128xf32, #tpu.memory_space<vmem>>, vector<1x1x32x128xf32>
    %172 = vector.shape_cast %171 : vector<1x1x32x128xf32> to vector<32x128xf32>
    %c8_35 = arith.constant 8 : index
    %173 = memref.load %arg3[%c8_35] : memref<80xf32, #tpu.memory_space<smem>>
    %174 = vector.broadcast %173 : f32 to vector<32x128xf32>
    %175 = arith.mulf %174, %172 : vector<32x128xf32>
    %176 = arith.addf %154, %175 : vector<32x128xf32>
    %c24 = arith.constant 24 : index
    %177 = memref.load %arg3[%c24] : memref<80xf32, #tpu.memory_space<smem>>
    %178 = vector.broadcast %177 : f32 to vector<32x128xf32>
    %179 = arith.mulf %178, %172 : vector<32x128xf32>
    %180 = arith.addf %158, %179 : vector<32x128xf32>
    %c40 = arith.constant 40 : index
    %181 = memref.load %arg3[%c40] : memref<80xf32, #tpu.memory_space<smem>>
    %182 = vector.broadcast %181 : f32 to vector<32x128xf32>
    %183 = arith.mulf %182, %172 : vector<32x128xf32>
    %184 = arith.addf %162, %183 : vector<32x128xf32>
    %c56 = arith.constant 56 : index
    %185 = memref.load %arg3[%c56] : memref<80xf32, #tpu.memory_space<smem>>
    %186 = vector.broadcast %185 : f32 to vector<32x128xf32>
    %187 = arith.mulf %186, %172 : vector<32x128xf32>
    %188 = arith.addf %166, %187 : vector<32x128xf32>
    %c72 = arith.constant 72 : index
    %189 = memref.load %arg3[%c72] : memref<80xf32, #tpu.memory_space<smem>>
    %190 = vector.broadcast %189 : f32 to vector<32x128xf32>
    %191 = arith.mulf %190, %172 : vector<32x128xf32>
    %192 = arith.addf %170, %191 : vector<32x128xf32>
    %c0_36 = arith.constant 0 : index
    %c9 = arith.constant 9 : index
    %c0_37 = arith.constant 0 : index
    %c0_38 = arith.constant 0 : index
    %193 = vector.load %arg5[%c0_36, %c9, %c0_37, %c0_38] : memref<1x16x32x128xf32, #tpu.memory_space<vmem>>, vector<1x1x32x128xf32>
    %194 = vector.shape_cast %193 : vector<1x1x32x128xf32> to vector<32x128xf32>
    %c9_39 = arith.constant 9 : index
    %195 = memref.load %arg3[%c9_39] : memref<80xf32, #tpu.memory_space<smem>>
    %196 = vector.broadcast %195 : f32 to vector<32x128xf32>
    %197 = arith.mulf %196, %194 : vector<32x128xf32>
    %198 = arith.addf %176, %197 : vector<32x128xf32>
    %c25 = arith.constant 25 : index
    %199 = memref.load %arg3[%c25] : memref<80xf32, #tpu.memory_space<smem>>
    %200 = vector.broadcast %199 : f32 to vector<32x128xf32>
    %201 = arith.mulf %200, %194 : vector<32x128xf32>
    %202 = arith.addf %180, %201 : vector<32x128xf32>
    %c41 = arith.constant 41 : index
    %203 = memref.load %arg3[%c41] : memref<80xf32, #tpu.memory_space<smem>>
    %204 = vector.broadcast %203 : f32 to vector<32x128xf32>
    %205 = arith.mulf %204, %194 : vector<32x128xf32>
    %206 = arith.addf %184, %205 : vector<32x128xf32>
    %c57 = arith.constant 57 : index
    %207 = memref.load %arg3[%c57] : memref<80xf32, #tpu.memory_space<smem>>
    %208 = vector.broadcast %207 : f32 to vector<32x128xf32>
    %209 = arith.mulf %208, %194 : vector<32x128xf32>
    %210 = arith.addf %188, %209 : vector<32x128xf32>
    %c73 = arith.constant 73 : index
    %211 = memref.load %arg3[%c73] : memref<80xf32, #tpu.memory_space<smem>>
    %212 = vector.broadcast %211 : f32 to vector<32x128xf32>
    %213 = arith.mulf %212, %194 : vector<32x128xf32>
    %214 = arith.addf %192, %213 : vector<32x128xf32>
    %c0_40 = arith.constant 0 : index
    %c10 = arith.constant 10 : index
    %c0_41 = arith.constant 0 : index
    %c0_42 = arith.constant 0 : index
    %215 = vector.load %arg5[%c0_40, %c10, %c0_41, %c0_42] : memref<1x16x32x128xf32, #tpu.memory_space<vmem>>, vector<1x1x32x128xf32>
    %216 = vector.shape_cast %215 : vector<1x1x32x128xf32> to vector<32x128xf32>
    %c10_43 = arith.constant 10 : index
    %217 = memref.load %arg3[%c10_43] : memref<80xf32, #tpu.memory_space<smem>>
    %218 = vector.broadcast %217 : f32 to vector<32x128xf32>
    %219 = arith.mulf %218, %216 : vector<32x128xf32>
    %220 = arith.addf %198, %219 : vector<32x128xf32>
    %c26 = arith.constant 26 : index
    %221 = memref.load %arg3[%c26] : memref<80xf32, #tpu.memory_space<smem>>
    %222 = vector.broadcast %221 : f32 to vector<32x128xf32>
    %223 = arith.mulf %222, %216 : vector<32x128xf32>
    %224 = arith.addf %202, %223 : vector<32x128xf32>
    %c42 = arith.constant 42 : index
    %225 = memref.load %arg3[%c42] : memref<80xf32, #tpu.memory_space<smem>>
    %226 = vector.broadcast %225 : f32 to vector<32x128xf32>
    %227 = arith.mulf %226, %216 : vector<32x128xf32>
    %228 = arith.addf %206, %227 : vector<32x128xf32>
    %c58 = arith.constant 58 : index
    %229 = memref.load %arg3[%c58] : memref<80xf32, #tpu.memory_space<smem>>
    %230 = vector.broadcast %229 : f32 to vector<32x128xf32>
    %231 = arith.mulf %230, %216 : vector<32x128xf32>
    %232 = arith.addf %210, %231 : vector<32x128xf32>
    %c74 = arith.constant 74 : index
    %233 = memref.load %arg3[%c74] : memref<80xf32, #tpu.memory_space<smem>>
    %234 = vector.broadcast %233 : f32 to vector<32x128xf32>
    %235 = arith.mulf %234, %216 : vector<32x128xf32>
    %236 = arith.addf %214, %235 : vector<32x128xf32>
    %c0_44 = arith.constant 0 : index
    %c11 = arith.constant 11 : index
    %c0_45 = arith.constant 0 : index
    %c0_46 = arith.constant 0 : index
    %237 = vector.load %arg5[%c0_44, %c11, %c0_45, %c0_46] : memref<1x16x32x128xf32, #tpu.memory_space<vmem>>, vector<1x1x32x128xf32>
    %238 = vector.shape_cast %237 : vector<1x1x32x128xf32> to vector<32x128xf32>
    %c11_47 = arith.constant 11 : index
    %239 = memref.load %arg3[%c11_47] : memref<80xf32, #tpu.memory_space<smem>>
    %240 = vector.broadcast %239 : f32 to vector<32x128xf32>
    %241 = arith.mulf %240, %238 : vector<32x128xf32>
    %242 = arith.addf %220, %241 : vector<32x128xf32>
    %c27 = arith.constant 27 : index
    %243 = memref.load %arg3[%c27] : memref<80xf32, #tpu.memory_space<smem>>
    %244 = vector.broadcast %243 : f32 to vector<32x128xf32>
    %245 = arith.mulf %244, %238 : vector<32x128xf32>
    %246 = arith.addf %224, %245 : vector<32x128xf32>
    %c43 = arith.constant 43 : index
    %247 = memref.load %arg3[%c43] : memref<80xf32, #tpu.memory_space<smem>>
    %248 = vector.broadcast %247 : f32 to vector<32x128xf32>
    %249 = arith.mulf %248, %238 : vector<32x128xf32>
    %250 = arith.addf %228, %249 : vector<32x128xf32>
    %c59 = arith.constant 59 : index
    %251 = memref.load %arg3[%c59] : memref<80xf32, #tpu.memory_space<smem>>
    %252 = vector.broadcast %251 : f32 to vector<32x128xf32>
    %253 = arith.mulf %252, %238 : vector<32x128xf32>
    %254 = arith.addf %232, %253 : vector<32x128xf32>
    %c75 = arith.constant 75 : index
    %255 = memref.load %arg3[%c75] : memref<80xf32, #tpu.memory_space<smem>>
    %256 = vector.broadcast %255 : f32 to vector<32x128xf32>
    %257 = arith.mulf %256, %238 : vector<32x128xf32>
    %258 = arith.addf %236, %257 : vector<32x128xf32>
    %c0_48 = arith.constant 0 : index
    %c12 = arith.constant 12 : index
    %c0_49 = arith.constant 0 : index
    %c0_50 = arith.constant 0 : index
    %259 = vector.load %arg5[%c0_48, %c12, %c0_49, %c0_50] : memref<1x16x32x128xf32, #tpu.memory_space<vmem>>, vector<1x1x32x128xf32>
    %260 = vector.shape_cast %259 : vector<1x1x32x128xf32> to vector<32x128xf32>
    %c12_51 = arith.constant 12 : index
    %261 = memref.load %arg3[%c12_51] : memref<80xf32, #tpu.memory_space<smem>>
    %262 = vector.broadcast %261 : f32 to vector<32x128xf32>
    %263 = arith.mulf %262, %260 : vector<32x128xf32>
    %264 = arith.addf %242, %263 : vector<32x128xf32>
    %c28 = arith.constant 28 : index
    %265 = memref.load %arg3[%c28] : memref<80xf32, #tpu.memory_space<smem>>
    %266 = vector.broadcast %265 : f32 to vector<32x128xf32>
    %267 = arith.mulf %266, %260 : vector<32x128xf32>
    %268 = arith.addf %246, %267 : vector<32x128xf32>
    %c44 = arith.constant 44 : index
    %269 = memref.load %arg3[%c44] : memref<80xf32, #tpu.memory_space<smem>>
    %270 = vector.broadcast %269 : f32 to vector<32x128xf32>
    %271 = arith.mulf %270, %260 : vector<32x128xf32>
    %272 = arith.addf %250, %271 : vector<32x128xf32>
    %c60 = arith.constant 60 : index
    %273 = memref.load %arg3[%c60] : memref<80xf32, #tpu.memory_space<smem>>
    %274 = vector.broadcast %273 : f32 to vector<32x128xf32>
    %275 = arith.mulf %274, %260 : vector<32x128xf32>
    %276 = arith.addf %254, %275 : vector<32x128xf32>
    %c76 = arith.constant 76 : index
    %277 = memref.load %arg3[%c76] : memref<80xf32, #tpu.memory_space<smem>>
    %278 = vector.broadcast %277 : f32 to vector<32x128xf32>
    %279 = arith.mulf %278, %260 : vector<32x128xf32>
    %280 = arith.addf %258, %279 : vector<32x128xf32>
    %c0_52 = arith.constant 0 : index
    %c13 = arith.constant 13 : index
    %c0_53 = arith.constant 0 : index
    %c0_54 = arith.constant 0 : index
    %281 = vector.load %arg5[%c0_52, %c13, %c0_53, %c0_54] : memref<1x16x32x128xf32, #tpu.memory_space<vmem>>, vector<1x1x32x128xf32>
    %282 = vector.shape_cast %281 : vector<1x1x32x128xf32> to vector<32x128xf32>
    %c13_55 = arith.constant 13 : index
    %283 = memref.load %arg3[%c13_55] : memref<80xf32, #tpu.memory_space<smem>>
    %284 = vector.broadcast %283 : f32 to vector<32x128xf32>
    %285 = arith.mulf %284, %282 : vector<32x128xf32>
    %286 = arith.addf %264, %285 : vector<32x128xf32>
    %c29 = arith.constant 29 : index
    %287 = memref.load %arg3[%c29] : memref<80xf32, #tpu.memory_space<smem>>
    %288 = vector.broadcast %287 : f32 to vector<32x128xf32>
    %289 = arith.mulf %288, %282 : vector<32x128xf32>
    %290 = arith.addf %268, %289 : vector<32x128xf32>
    %c45 = arith.constant 45 : index
    %291 = memref.load %arg3[%c45] : memref<80xf32, #tpu.memory_space<smem>>
    %292 = vector.broadcast %291 : f32 to vector<32x128xf32>
    %293 = arith.mulf %292, %282 : vector<32x128xf32>
    %294 = arith.addf %272, %293 : vector<32x128xf32>
    %c61 = arith.constant 61 : index
    %295 = memref.load %arg3[%c61] : memref<80xf32, #tpu.memory_space<smem>>
    %296 = vector.broadcast %295 : f32 to vector<32x128xf32>
    %297 = arith.mulf %296, %282 : vector<32x128xf32>
    %298 = arith.addf %276, %297 : vector<32x128xf32>
    %c77 = arith.constant 77 : index
    %299 = memref.load %arg3[%c77] : memref<80xf32, #tpu.memory_space<smem>>
    %300 = vector.broadcast %299 : f32 to vector<32x128xf32>
    %301 = arith.mulf %300, %282 : vector<32x128xf32>
    %302 = arith.addf %280, %301 : vector<32x128xf32>
    %c0_56 = arith.constant 0 : index
    %c14 = arith.constant 14 : index
    %c0_57 = arith.constant 0 : index
    %c0_58 = arith.constant 0 : index
    %303 = vector.load %arg5[%c0_56, %c14, %c0_57, %c0_58] : memref<1x16x32x128xf32, #tpu.memory_space<vmem>>, vector<1x1x32x128xf32>
    %304 = vector.shape_cast %303 : vector<1x1x32x128xf32> to vector<32x128xf32>
    %c14_59 = arith.constant 14 : index
    %305 = memref.load %arg3[%c14_59] : memref<80xf32, #tpu.memory_space<smem>>
    %306 = vector.broadcast %305 : f32 to vector<32x128xf32>
    %307 = arith.mulf %306, %304 : vector<32x128xf32>
    %308 = arith.addf %286, %307 : vector<32x128xf32>
    %c30 = arith.constant 30 : index
    %309 = memref.load %arg3[%c30] : memref<80xf32, #tpu.memory_space<smem>>
    %310 = vector.broadcast %309 : f32 to vector<32x128xf32>
    %311 = arith.mulf %310, %304 : vector<32x128xf32>
    %312 = arith.addf %290, %311 : vector<32x128xf32>
    %c46 = arith.constant 46 : index
    %313 = memref.load %arg3[%c46] : memref<80xf32, #tpu.memory_space<smem>>
    %314 = vector.broadcast %313 : f32 to vector<32x128xf32>
    %315 = arith.mulf %314, %304 : vector<32x128xf32>
    %316 = arith.addf %294, %315 : vector<32x128xf32>
    %c62 = arith.constant 62 : index
    %317 = memref.load %arg3[%c62] : memref<80xf32, #tpu.memory_space<smem>>
    %318 = vector.broadcast %317 : f32 to vector<32x128xf32>
    %319 = arith.mulf %318, %304 : vector<32x128xf32>
    %320 = arith.addf %298, %319 : vector<32x128xf32>
    %c78 = arith.constant 78 : index
    %321 = memref.load %arg3[%c78] : memref<80xf32, #tpu.memory_space<smem>>
    %322 = vector.broadcast %321 : f32 to vector<32x128xf32>
    %323 = arith.mulf %322, %304 : vector<32x128xf32>
    %324 = arith.addf %302, %323 : vector<32x128xf32>
    %c0_60 = arith.constant 0 : index
    %c15 = arith.constant 15 : index
    %c0_61 = arith.constant 0 : index
    %c0_62 = arith.constant 0 : index
    %325 = vector.load %arg5[%c0_60, %c15, %c0_61, %c0_62] : memref<1x16x32x128xf32, #tpu.memory_space<vmem>>, vector<1x1x32x128xf32>
    %326 = vector.shape_cast %325 : vector<1x1x32x128xf32> to vector<32x128xf32>
    %c15_63 = arith.constant 15 : index
    %327 = memref.load %arg3[%c15_63] : memref<80xf32, #tpu.memory_space<smem>>
    %328 = vector.broadcast %327 : f32 to vector<32x128xf32>
    %329 = arith.mulf %328, %326 : vector<32x128xf32>
    %330 = arith.addf %308, %329 : vector<32x128xf32>
    %c31 = arith.constant 31 : index
    %331 = memref.load %arg3[%c31] : memref<80xf32, #tpu.memory_space<smem>>
    %332 = vector.broadcast %331 : f32 to vector<32x128xf32>
    %333 = arith.mulf %332, %326 : vector<32x128xf32>
    %334 = arith.addf %312, %333 : vector<32x128xf32>
    %c47 = arith.constant 47 : index
    %335 = memref.load %arg3[%c47] : memref<80xf32, #tpu.memory_space<smem>>
    %336 = vector.broadcast %335 : f32 to vector<32x128xf32>
    %337 = arith.mulf %336, %326 : vector<32x128xf32>
    %338 = arith.addf %316, %337 : vector<32x128xf32>
    %c63 = arith.constant 63 : index
    %339 = memref.load %arg3[%c63] : memref<80xf32, #tpu.memory_space<smem>>
    %340 = vector.broadcast %339 : f32 to vector<32x128xf32>
    %341 = arith.mulf %340, %326 : vector<32x128xf32>
    %342 = arith.addf %320, %341 : vector<32x128xf32>
    %c79 = arith.constant 79 : index
    %343 = memref.load %arg3[%c79] : memref<80xf32, #tpu.memory_space<smem>>
    %344 = vector.broadcast %343 : f32 to vector<32x128xf32>
    %345 = arith.mulf %344, %326 : vector<32x128xf32>
    %346 = arith.addf %324, %345 : vector<32x128xf32>
    %c0_64 = arith.constant 0 : index
    %347 = memref.load %arg4[%c0_64] : memref<5xf32, #tpu.memory_space<smem>>
    %348 = vector.broadcast %347 : f32 to vector<32x128xf32>
    %349 = arith.mulf %330, %348 : vector<32x128xf32>
    %cst = arith.constant 0.000000e+00 : f32
    %cst_65 = arith.constant 1.000000e+00 : f32
    %350 = vector.broadcast %cst : f32 to vector<32x128xf32>
    %351 = arith.maximumf %350, %349 : vector<32x128xf32>
    %352 = vector.broadcast %cst_65 : f32 to vector<32x128xf32>
    %353 = arith.minimumf %352, %351 : vector<32x128xf32>
    %c0_66 = arith.constant 0 : index
    %c0_67 = arith.constant 0 : index
    %c0_68 = arith.constant 0 : index
    %c0_69 = arith.constant 0 : index
    %354 = vector.load %arg6[%c0_66, %c0_67, %c0_68, %c0_69] : memref<1x5x32x128xf32, #tpu.memory_space<vmem>>, vector<1x1x32x128xf32>
    %355 = vector.shape_cast %354 : vector<1x1x32x128xf32> to vector<32x128xf32>
    %356 = vector.shape_cast %353 : vector<32x128xf32> to vector<1x1x32x128xf32>
    tpu.vector_store %arg6[%c0_66, %c0_67, %c0_68, %c0_69], %356 {strides = array<i32>} : memref<1x5x32x128xf32, #tpu.memory_space<vmem>>, vector<1x1x32x128xf32>,
    %c1_70 = arith.constant 1 : index
    %357 = memref.load %arg4[%c1_70] : memref<5xf32, #tpu.memory_space<smem>>
    %358 = vector.broadcast %357 : f32 to vector<32x128xf32>
    %359 = arith.mulf %334, %358 : vector<32x128xf32>
    %cst_71 = arith.constant 0.000000e+00 : f32
    %cst_72 = arith.constant 1.000000e+00 : f32
    %360 = vector.broadcast %cst_71 : f32 to vector<32x128xf32>
    %361 = arith.maximumf %360, %359 : vector<32x128xf32>
    %362 = vector.broadcast %cst_72 : f32 to vector<32x128xf32>
    %363 = arith.minimumf %362, %361 : vector<32x128xf32>
    %c0_73 = arith.constant 0 : index
    %c1_74 = arith.constant 1 : index
    %c0_75 = arith.constant 0 : index
    %c0_76 = arith.constant 0 : index
    %364 = vector.load %arg6[%c0_73, %c1_74, %c0_75, %c0_76] : memref<1x5x32x128xf32, #tpu.memory_space<vmem>>, vector<1x1x32x128xf32>
    %365 = vector.shape_cast %364 : vector<1x1x32x128xf32> to vector<32x128xf32>
    %366 = vector.shape_cast %363 : vector<32x128xf32> to vector<1x1x32x128xf32>
    tpu.vector_store %arg6[%c0_73, %c1_74, %c0_75, %c0_76], %366 {strides = array<i32>} : memref<1x5x32x128xf32, #tpu.memory_space<vmem>>, vector<1x1x32x128xf32>,
    %c2_77 = arith.constant 2 : index
    %367 = memref.load %arg4[%c2_77] : memref<5xf32, #tpu.memory_space<smem>>
    %368 = vector.broadcast %367 : f32 to vector<32x128xf32>
    %369 = arith.mulf %338, %368 : vector<32x128xf32>
    %cst_78 = arith.constant 0.000000e+00 : f32
    %cst_79 = arith.constant 1.000000e+00 : f32
    %370 = vector.broadcast %cst_78 : f32 to vector<32x128xf32>
    %371 = arith.maximumf %370, %369 : vector<32x128xf32>
    %372 = vector.broadcast %cst_79 : f32 to vector<32x128xf32>
    %373 = arith.minimumf %372, %371 : vector<32x128xf32>
    %c0_80 = arith.constant 0 : index
    %c2_81 = arith.constant 2 : index
    %c0_82 = arith.constant 0 : index
    %c0_83 = arith.constant 0 : index
    %374 = vector.load %arg6[%c0_80, %c2_81, %c0_82, %c0_83] : memref<1x5x32x128xf32, #tpu.memory_space<vmem>>, vector<1x1x32x128xf32>
    %375 = vector.shape_cast %374 : vector<1x1x32x128xf32> to vector<32x128xf32>
    %376 = vector.shape_cast %373 : vector<32x128xf32> to vector<1x1x32x128xf32>
    tpu.vector_store %arg6[%c0_80, %c2_81, %c0_82, %c0_83], %376 {strides = array<i32>} : memref<1x5x32x128xf32, #tpu.memory_space<vmem>>, vector<1x1x32x128xf32>,
    %c3_84 = arith.constant 3 : index
    %377 = memref.load %arg4[%c3_84] : memref<5xf32, #tpu.memory_space<smem>>
    %378 = vector.broadcast %377 : f32 to vector<32x128xf32>
    %379 = arith.mulf %342, %378 : vector<32x128xf32>
    %cst_85 = arith.constant 0.000000e+00 : f32
    %cst_86 = arith.constant 1.000000e+00 : f32
    %380 = vector.broadcast %cst_85 : f32 to vector<32x128xf32>
    %381 = arith.maximumf %380, %379 : vector<32x128xf32>
    %382 = vector.broadcast %cst_86 : f32 to vector<32x128xf32>
    %383 = arith.minimumf %382, %381 : vector<32x128xf32>
    %c0_87 = arith.constant 0 : index
    %c3_88 = arith.constant 3 : index
    %c0_89 = arith.constant 0 : index
    %c0_90 = arith.constant 0 : index
    %384 = vector.load %arg6[%c0_87, %c3_88, %c0_89, %c0_90] : memref<1x5x32x128xf32, #tpu.memory_space<vmem>>, vector<1x1x32x128xf32>
    %385 = vector.shape_cast %384 : vector<1x1x32x128xf32> to vector<32x128xf32>
    %386 = vector.shape_cast %383 : vector<32x128xf32> to vector<1x1x32x128xf32>
    tpu.vector_store %arg6[%c0_87, %c3_88, %c0_89, %c0_90], %386 {strides = array<i32>} : memref<1x5x32x128xf32, #tpu.memory_space<vmem>>, vector<1x1x32x128xf32>,
    %c4_91 = arith.constant 4 : index
    %387 = memref.load %arg4[%c4_91] : memref<5xf32, #tpu.memory_space<smem>>
    %388 = vector.broadcast %387 : f32 to vector<32x128xf32>
    %389 = arith.mulf %346, %388 : vector<32x128xf32>
    %cst_92 = arith.constant 0.000000e+00 : f32
    %cst_93 = arith.constant 1.000000e+00 : f32
    %390 = vector.broadcast %cst_92 : f32 to vector<32x128xf32>
    %391 = arith.maximumf %390, %389 : vector<32x128xf32>
    %392 = vector.broadcast %cst_93 : f32 to vector<32x128xf32>
    %393 = arith.minimumf %392, %391 : vector<32x128xf32>
    %c0_94 = arith.constant 0 : index
    %c4_95 = arith.constant 4 : index
    %c0_96 = arith.constant 0 : index
    %c0_97 = arith.constant 0 : index
    %394 = vector.load %arg6[%c0_94, %c4_95, %c0_96, %c0_97] : memref<1x5x32x128xf32, #tpu.memory_space<vmem>>, vector<1x1x32x128xf32>
    %395 = vector.shape_cast %394 : vector<1x1x32x128xf32> to vector<32x128xf32>
    %396 = vector.shape_cast %393 : vector<32x128xf32> to vector<1x1x32x128xf32>
    tpu.vector_store %arg6[%c0_94, %c4_95, %c0_96, %c0_97], %396 {strides = array<i32>} : memref<1x5x32x128xf32, #tpu.memory_space<vmem>>, vector<1x1x32x128xf32>,
    return
  }
  func.func @transform_0(%arg0: i32, %arg1: i32, %arg2: i32) -> i32 {
    %c0_i32 = arith.constant 0 : i32
    %c0_i32_0 = arith.constant 0 : i32
    return %c0_i32 : i32
  }
  func.func @transform_1(%arg0: i32, %arg1: i32, %arg2: i32) -> i32 {
    %c0_i32 = arith.constant 0 : i32
    %c0_i32_0 = arith.constant 0 : i32
    return %c0_i32 : i32
  }
  func.func @transform_2(%arg0: i32, %arg1: i32, %arg2: i32) -> (i32, i32, i32, i32) {
    %c0_i32 = arith.constant 0 : i32
    %c0_i32_0 = arith.constant 0 : i32
    return %arg0, %c0_i32, %arg1, %arg2 : i32, i32, i32, i32
  }
  func.func @transform_3(%arg0: i32, %arg1: i32, %arg2: i32) -> (i32, i32, i32, i32) {
    %c0_i32 = arith.constant 0 : i32
    %c0_i32_0 = arith.constant 0 : i32
    return %arg0, %c0_i32, %arg1, %arg2 : i32, i32, i32, i32
  }
}

</mosaic_0001>

<bundles_post_ra>
// kernel: a_call__.2
= control target key start
LH: loop header
LB: loop body
LE: loop exit
PB: predicated region body
PF: predicated region fallthrough
CT: control target
= control target key end

     0   :  { %8 = vsyncpa [#allocation5], 0  ;;  %s3636_s0 = inlined_call_operand.hbm [shape: f32[80], index: 0, kind: input, shape index: {}]   ;;  %s3637_s1 = inlined_call_operand.hbm [shape: f32[5], index: 1, kind: input, shape index: {}]   ;;  %s3638_s2 = inlined_call_operand.hbm [shape: f32[2,16,32,128], index: 2, kind: input, shape index: {}]   ;;  %s3639_s3 = inlined_call_operand.hbm [shape: f32[2,5,32,128], index: 3, kind: output, shape index: {}]  }
   0x1   :  { %9 = vsyncpa [#allocation7], 0 }
   0x2   :  { %10 = vsyncpa [#allocation3], 0 }
   0x3   :  { %12 = vsyncpa [#allocation3 + $0x1], 0 }
   0x4   :  { %13 = vsyncpa [#allocation4], 0 }
   0x5   :  { %15 = vsyncpa [#allocation4 + $0x1], 0  ;;  %s1833_s12 = smov 0   ;;  %s1835_s13 = smov 0  }
   0x6   :  { %s1837_s14 = smov 0   ;;  %s1839_s15 = smov 0  }
   0x7   :  { %s1841_s16 = smov 0   ;;  %s1843_s17 = smov 0  }
   0x8 LB: > { %s1328_s18 = sadd.s32 4294967295, %s1803_s17   ;;  %s1329_s19 = sadd.s32 4294967294, %s1803_s17   ;;  %s1803_s17 = sphi %s1843_s17, %s21_s17   ;;  %s1799_s16 = sphi %s1841_s16, %s3958_s16   ;;  %s1795_s15 = sphi %s1839_s15, %s3957_s15   ;;  %s1791_s14 = sphi %s1837_s14, %s3956_s14   ;;  %s1787_s13 = sphi %s1835_s13, %s3955_s13   ;;  %s1783_s12 = sphi %s1833_s12, %s3954_s12  }
   0x9   : > { %p100_p0 = scmp.ne.s32.totalorder %s1791_s14, %s1787_s13  ;;  %p101_p1 = scmp.eq.s32.totalorder %s1803_s17, 0 }
   0xa   : > { %p106_p2 = scmp.ne.s32.totalorder %s1787_s13, %s1783_s12  ;;  %p1871_p3 = scmp.eq.s32.totalorder %s1328_s18, 0 }
   0xb   : > { %p134_p4 = scmp.eq.s32.totalorder %s1328_s18, 1  ;;  %p102_p5 = por %p101_p1, %p100_p0 }
   0xc   : > { %s3758_s21 = scalar_select %p1871_p3, 1, 0 }
   0xd   : > { %p140_p6 = scmp.eq.s32.totalorder %s1329_s19, 1  ;;  %p1877_p7 = por %p1871_p3, %p106_p2 }
   0xe   : > { %p1881_p8 = por %p134_p4, %p100_p0  ;;  %p1330_p10 = scmp.ge.s32.totalorder %s1803_s17, 1 }
   0xf   : > { %s3759_s22 = scalar_select %p1877_p7, 1, 0 }
  0x10   : > { %s3760_s23 = scalar_select %p1881_p8, 1, 0 }
  0x11   : > { %p1885_p9 = por %p140_p6, %p106_p2  ;;  %p147_p11 = scmp.lt.s32.totalorder %s1803_s17, 3 }
  0x12   : > { %p1535_p1 = scmp.lt.s32.totalorder %s1803_s17, 2  ;;  %s178_s27 = sand.u32 1, %s1791_s14  }
  0x13   : > { %s3761_s24 = scalar_select %p1885_p9, 1, 0 }
  0x14   : > { %p1892_p13 = pnand %p1330_p10, %p147_p11  ;;  %p1899_p7 = pnand %p1535_p1, %p102_p5 }
  0x15   : > { %p3764_p0 = scmp.ne.s32.totalorder %s3758_s21, 0  ;;  %s40_s29 = sadd.s32 1, %s1799_s16 }
  0x16   : > { %p1518_p3 = pneg %p1892_p13  ;;  %p1911_p4 = scmp.ge.s32.totalorder %s40_s29, 2 }
  0x17   : > { %s1657_s6 = scalar_lea.hbm %s3636_s0, 16 }
  0x18   : > { %p1906_p2 = pnand %p1518_p3, %p3764_p0  ;;  %p1658_p5 = scmp.ne.s32.totalorder %s3636_s0, %s1657_s6 }
  0x19   : > { %p1664_p11 = scmp.lt.u32.totalorder %s1657_s6, %s3636_s0 }
  0x1a   : > { %p1659_p6 = pneg %p1906_p2 }
  0x1c   : > { %p1660_p3 = pnand %p1659_p6, %p1658_p5 }
  0x1e   : > { %p1661_p10 = pneg %p1660_p3 }
  0x20   : > { %p1666_p1 = pnand %p1664_p11, %p1661_p10 }
  0x22   : > { %1669 = shalt.err (!%p1666_p1)
}
  0x23   : > { %s1805_s11 = smov [#allocation2]   ;;  %s1670_s7 = scalar_lea.hbm %s3637_s1, 16 }
  0x24   : > { %1521 = dma.hbm_to_smem (!%p1906_p2), %s3636_s0, 16, %s1805_s11, [#allocation5]  }
  0x25   : > { %p1671_p0 = scmp.ne.s32.totalorder %s3637_s1, %s1670_s7  ;;  %p1677_p10 = scmp.lt.u32.totalorder %s1670_s7, %s3637_s1 }
  0x27   : > { %p1673_p5 = pnand %p1671_p0, %p1659_p6 }
  0x29   : > { %p1674_p3 = pneg %p1673_p5 }
  0x2b   : > { %p1679_p11 = pnand %p1677_p10, %p1674_p3 }
  0x2d   : > { %1682 = shalt.err (!%p1679_p11)
}
  0x2e   : > { %s1806_s10 = smov [#allocation6]   ;;  %s3960_s29 = smov (%p1911_p4, %s40_s29), 0 }
  0x2f   : > { %1524 = dma.hbm_to_smem (!%p1906_p2), %s3637_s1, 16, %s1806_s10, [#allocation7]  }
  0x30   : > { %s1334_s20 = sshll.u32 %s178_s27, 9  ;;  %s1503_s28 = sshll.u32 %s1799_s16, 13 }
  0x31   : > { %s86_s19 = ssub.s32 %s1799_s16, %s3960_s29  ;;  %s1957_s7 = scalar_lea.hbm %s3638_s2, %s1503_s28 }
  0x32   : > { %p91_p6 = scmp.eq.s32.totalorder %s86_s19, 0  ;;  %s182_s8 = scalar_lea.vmem [#allocation8], %s1334_s20 }
  0x33   : > { %s192_s6 = sshll.u32 %s182_s8, 4  ;;  %s3767_s30 = sadd.s32 1, %s1791_s14  ;;  %s1964_s6 = int_to_ptr.vmem [resolvable:$true] %s192_s6 }
  0x34   : > { %s1962_s9 = scalar_select %p91_p6, %s1791_s14, %s3767_s30  }
  0x35   : > { %s1968_s10 = scalar_lea.sflag [#allocation3], %s178_s27  ;;  %s1683_s11 = scalar_lea.hbm %s1957_s7, 8192 }
  0x36   : > { %p1684_p2 = scmp.ne.s32.totalorder %s1957_s7, %s1683_s11  ;;  %p1685_p4 = pneg %p1899_p7 }
  0x37   : > { %s1688_s20 = scalar_lea.hbm %s3638_s2, 16384  ;;  %p1689_p5 = scmp.lt.u32.totalorder %s1957_s7, %s3638_s2 }
  0x38   : > { %p1686_p1 = pnand %p1685_p4, %p1684_p2  ;;  %p1690_p3 = scmp.lt.u32.totalorder %s1688_s20, %s1683_s11 }
  0x39   : > { %p1692_p11 = scmp.lt.u32.totalorder %s1683_s11, %s1957_s7 }
  0x3a   : > { %p1687_p0 = pneg %p1686_p1  ;;  %p1691_p10 = por %p1690_p3, %p1689_p5 }
  0x3c   : > { %p1693_p6 = por %p1692_p11, %p1691_p10 }
  0x3e   : > { %p1694_p12 = pnand %p1693_p6, %p1687_p0 }
  0x40   : > { %1697 = shalt.err (!%p1694_p12)
}
  0x41   : > { %s1698_s27 = scalar_lea.vmem %s1964_s6, 8192  ;;  %s1807_s5 = smov [#allocation8]  }
  0x42   : > { %p1699_p2 = scmp.ne.s32.totalorder %s1964_s6, %s1698_s27  ;;  %s1703_s8 = sshll.u32 %s1807_s5, 4  ;;  %s1704_s8 = int_to_ptr.vmem [resolvable:$false] %s1703_s8 }
  0x43   : > { %s1705_s30 = scalar_lea.vmem %s1704_s8, 16384  ;;  %p1706_p8 = scmp.lt.s32.totalorder %s1964_s6, %s1704_s8 }
  0x44   : > { %p1701_p1 = pnand %p1699_p2, %p1685_p4  ;;  %p1707_p5 = scmp.lt.s32.totalorder %s1705_s30, %s1698_s27 }
  0x46   : > { %p1702_p9 = pneg %p1701_p1  ;;  %p1708_p3 = por %p1707_p5, %p1706_p8 }
  0x48   : > { %p1709_p10 = pnand %p1708_p3, %p1702_p9 }
  0x4a   : > { %1712 = shalt.err (!%p1709_p10)
}
  0x4b   : > { %s1808_s11 = smov 128   ;;  %s1809_s18 = smov 8  }
  0x4c   : > { %1528 = dma.hbm_to_vmem [thread:$0]  (!%p1899_p7), %s1957_s7, 8192, %s1964_s6, %s1968_s10, %s1808_s11, %s1808_s11, %s1809_s18  }
  0x4d   : > { %204 = sbr.rel (%p1892_p13) target bundleno = 329 (0x149), region = 32 }
  0x54   : > { %p3768_p12 = scmp.ne.s32.totalorder %s3758_s21, 0 }
  0x56   : > { %1766 = dma.done.wait (%p3768_p12), [#allocation5], 16  }
  0x57   : > { %1768 = vsyncadd (%p3768_p12), [#allocation5], 4294967280 }
  0x58   : > { %1770 = dma.done.wait (%p3768_p12), [#allocation7], 16  }
  0x59   : > { %1772 = vsyncadd (%p3768_p12), [#allocation7], 4294967280  ;;  %s2007_s28 = sand.u32 1, %s1787_s13   ;;  %p3769_p7 = scmp.ne.s32.totalorder %s3759_s22, 0 }
  0x5a   : > { %s1340_s25 = sshll.u32 %s2007_s28, 9  ;;  %s215_s26 = scalar_lea.sflag [#allocation3], %s2007_s28 }
  0x5b   : > { %s2011_s7 = scalar_lea.vmem [#allocation8], %s1340_s25 }
  0x5c   : > { %1774 = dma.done.wait (%p3769_p7), %s215_s26, 8192  }
  0x5d   : > { %1776 = vsyncadd (%p3769_p7), %s215_s26, 4294959104 }
  0x5e   : > { %223 = sfence }
  0x5f   : > { %s248_s6 = sld [smem:[#allocation2]]  ;;  %s1349_s21 = sld [smem:[#allocation2 + $0x1]]  ;;  %v2018_v0 = vld [vmem:[%s2011_s7] sm:$0xff]  ;;  %v2060_v11 = vld [vmem:[%s2011_s7 + $0x8] sm:$0xff] }
  0x60   : > { %s1358_s10 = sld [smem:[#allocation2 + $0x2]]  ;;  %s1367_s20 = sld [smem:[#allocation2 + $0x3]]  ;;  %v2023_v1 = vld [vmem:[%s2011_s7 + $0x20] sm:$0xff]  ;;  %3770 = vst [vmem:[#allocation14_spill] sm:$0xff] %v2060_v11  ;;  %v2070_v14 = vld [vmem:[%s2011_s7 + $0x28] sm:$0xff] }
  0x61   : > { %s1376_s19 = sld [smem:[#allocation2 + $0x4]]  ;;  %s1385_s4 = sld [smem:[#allocation2 + $0x5]]  ;;  %v2026_v2 = vld [vmem:[%s2011_s7 + $0x40] sm:$0xff]  ;;  %3771 = vst [vmem:[#allocation15_spill] sm:$0xff] %v2070_v14  ;;  %v2129_v39 = vld [vmem:[%s2011_s7 + $0x48] sm:$0xff] }
  0x62   : > { %s1394_s27 = sld [smem:[#allocation2 + $0x6]]  ;;  %s2020_s5 = sld [smem:[#allocation2 + $0x7]]  ;;  %v2045_v7 = vld [vmem:[%s2011_s7 + $0x60] sm:$0xff]  ;;  %3779 = vst [vmem:[#allocation23_spill] sm:$0xff] %v2129_v39  ;;  %v2132_v40 = vld [vmem:[%s2011_s7 + $0x68] sm:$0xff] }
  0x63   : > { %s2028_s22 = sld [smem:[#allocation2 + $0x8]]  ;;  %s2030_s8 = sld [smem:[#allocation2 + $0x9]]  ;;  %v2063_v12 = vld [vmem:[%s2011_s7 + $0x80] sm:$0xff]  ;;  %3780 = vst [vmem:[#allocation24_spill] sm:$0xff] %v2132_v40  ;;  %v2159_v51 = vld [vmem:[%s2011_s7 + $0x88] sm:$0xff] }
  0x64   : > { %s2034_s30 = sld [smem:[#allocation2 + $0xa]]  ;;  %s2036_s11 = sld [smem:[#allocation2 + $0xb]]  ;;  %v2075_v17 = vld [vmem:[%s2011_s7 + $0xa0] sm:$0xff]  ;;  %3783 = vst [vmem:[#allocation27_spill] sm:$0xff] %v2159_v51  ;;  %v2176_v57 = vld [vmem:[%s2011_s7 + $0xa8] sm:$0xff] }
  0x65   : > { %v2032_v3 = vstv %s248_s6  ;;  %v2040_v5 = vstv %s1349_s21  ;;  %s2047_s18 = sld [smem:[#allocation2 + $0xc]]  ;;  %s2049_s25 = sld [smem:[#allocation2 + $0xd]]  ;;  %v2080_v19 = vld [vmem:[%s2011_s7 + $0xc0] sm:$0xff]  ;;  %3785 = vst [vmem:[#allocation29_spill] sm:$0xff] %v2176_v57  ;;  %v2179_v58 = vld [vmem:[%s2011_s7 + $0xc8] sm:$0xff] }
  0x66   : > { %v250_v4 = vmul.f32 %v2032_v3, %v2018_v0  ;;  %v2042_v6 = vstv %s1358_s10  ;;  %v285_v8 = vmul.f32 %v2023_v1, %v2040_v5  ;;  %v2055_v10 = vstv %s1367_s20  ;;  %s2057_s26 = sld [smem:[#allocation2 + $0xe]]  ;;  %s2067_s6 = sld [smem:[#allocation2 + $0xf]]  ;;  %3772 = vst [vmem:[#allocation16_spill] sm:$0xff] %v2080_v19  ;;  %v2085_v21 = vld [vmem:[%s2011_s7 + $0xe0] sm:$0xff]  ;;  %3786 = vst [vmem:[#allocation30_spill] sm:$0xff] %v2179_v58  ;;  %v2194_v63 = vld [vmem:[%s2011_s7 + $0xe8] sm:$0xff] }
  0x67   : > { %v340_v9 = vmul.f32 %v2026_v2, %v2042_v6  ;;  %v2065_v13 = vstv %s1376_s19  ;;  %v395_v16 = vmul.f32 %v2045_v7, %v2055_v10  ;;  %v2077_v18 = vstv %s1385_s4  ;;  %3773 = vst [vmem:[#allocation17_spill] sm:$0xff] %v2085_v21  ;;  %s2090_s21 = sld [smem:[#allocation6]]  ;;  %v2097_v26 = vld [vmem:[%s2011_s7 + $0x100] sm:$0xff]  ;;  %3787 = vst [vmem:[#allocation31_spill] sm:$0xff] %v2194_v63  ;;  %s2338_s20 = sld [smem:[#allocation2 + $0x11]] }
  0x68   : > { %v289_v15 = vadd.f32 %v285_v8, %v250_v4  ;;  %v2082_v20 = vstv %s1394_s27  ;;  %v2088_v22 = vstv %s2020_s5  ;;  %v251_v23 = vmul.f32 %v2032_v3, %v2060_v11  ;;  %3774 = vst [vmem:[#allocation18_spill] sm:$0xff] %v2097_v26  ;;  %v2107_v30 = vld [vmem:[%s2011_s7 + $0x120] sm:$0xff]  ;;  %v2197_v4 = vld [vmem:[%s2011_s7 + $0x10] sm:$0xff]  ;;  %s2336_s10 = sld [smem:[#allocation2 + $0x10]]  ;;  %s2363_s19 = sld [smem:[#allocation2 + $0x12]] }
  0x69   : > { %v450_v25 = vmul.f32 %v2063_v12, %v2065_v13  ;;  %v2100_v27 = vstv %s2028_s22  ;;  %v286_v28 = vmul.f32 %v2070_v14, %v2040_v5  ;;  %v505_v29 = vmul.f32 %v2075_v17, %v2077_v18  ;;  %3775 = vst [vmem:[#allocation19_spill] sm:$0xff] %v2107_v30  ;;  %v2113_v32 = vld [vmem:[%s2011_s7 + $0x140] sm:$0xff]  ;;  %3788 = vst [vmem:[#allocation32_spill] sm:$0xff] %v2197_v4  ;;  %v2200_v8 = vld [vmem:[%s2011_s7 + $0x30] sm:$0xff]  ;;  %s2365_s4 = sld [smem:[#allocation2 + $0x13]]  ;;  %s2394_s27 = sld [smem:[#allocation2 + $0x14]] }
  0x6a   : > { %v344_v24 = vadd.f32 %v340_v9, %v289_v15  ;;  %v2110_v31 = vstv %s2030_s8  ;;  %3776 = vst [vmem:[#allocation20_spill] sm:$0xff] %v2113_v32  ;;  %v2116_v33 = vld [vmem:[%s2011_s7 + $0x160] sm:$0xff]  ;;  %v560_v35 = vmul.f32 %v2080_v19, %v2082_v20  ;;  %v615_v36 = vmul.f32 %v2085_v21, %v2088_v22  ;;  %3789 = vst [vmem:[#allocation33_spill] sm:$0xff] %v2200_v8  ;;  %v2276_v14 = vld [vmem:[%s2011_s7 + $0xd0] sm:$0xff]  ;;  %s2406_s5 = sld [smem:[#allocation2 + $0x15]]  ;;  %s2408_s22 = sld [smem:[#allocation2 + $0x16]] }
  0x6b   : > { %3777 = vst [vmem:[#allocation21_spill] sm:$0xff] %v2116_v33  ;;  %v2123_v37 = vstv %s2034_s30  ;;  %v2126_v38 = vld [vmem:[%s2011_s7 + $0x180] sm:$0xff]  ;;  %v670_v41 = vmul.f32 %v2097_v26, %v2100_v27  ;;  %v2137_v42 = vstv %s2036_s11  ;;  %v2140_v43 = vstv %s2047_s18  ;;  %3802 = vst [vmem:[#allocation46_spill] sm:$0xff] %v2276_v14  ;;  %s2422_s8 = sld [smem:[#allocation2 + $0x17]]  ;;  %s2436_s30 = sld [smem:[#allocation2 + $0x18]] }
  0x6c   : > { %v399_v34 = vadd.f32 %v395_v16, %v344_v24  ;;  %3778 = vst [vmem:[#allocation22_spill] sm:$0xff] %v2126_v38  ;;  %v2143_v44 = vld [vmem:[%s2011_s7 + $0x1a0] sm:$0xff]  ;;  %v2146_v45 = vstv %s2049_s25  ;;  %v2150_v47 = vmul.f32 %v2107_v30, %v2110_v31  ;;  %v2156_v49 = vstv %s2057_s26  ;;  %v2212_v24 = vld [vmem:[%s2011_s7 + $0x108] sm:$0xff]  ;;  %s1504_s11 = smul.u32 160, %s2007_s28  ;;  %s2448_s18 = sld [smem:[#allocation2 + $0x19]] }
  0x6d   : > { %3781 = vst [vmem:[#allocation25_spill] sm:$0xff] %v2143_v44  ;;  %v2153_v48 = vld [vmem:[%s2011_s7 + $0x1c0] sm:$0xff]  ;;  %v290_v50 = vadd.f32 %v286_v28, %v251_v23  ;;  %v2163_v52 = vmul.f32 %v2113_v32, %v2123_v37  ;;  %v2169_v54 = vstv %s2067_s6  ;;  %v341_v55 = vmul.f32 %v2129_v39, %v2042_v6  ;;  %3790 = vst [vmem:[#allocation34_spill] sm:$0xff] %v2212_v24  ;;  %v2218_v28 = vld [vmem:[%s2011_s7 + $0x50] sm:$0xff]  ;;  %s2463_s25 = sld [smem:[#allocation2 + $0x1a]]  ;;  %s2470_s26 = sld [smem:[#allocation2 + $0x1b]] }
  0x6e   : > { %v454_v46 = vadd.f32 %v450_v25, %v399_v34  ;;  %3782 = vst [vmem:[#allocation26_spill] sm:$0xff] %v2153_v48  ;;  %v2166_v53 = vld [vmem:[%s2011_s7 + $0x1e0] sm:$0xff]  ;;  %v396_v56 = vmul.f32 %v2132_v40, %v2055_v10  ;;  %v2183_v60 = vmul.f32 %v2116_v33, %v2137_v42  ;;  %v2187_v61 = vmul.f32 %v2126_v38, %v2140_v43  ;;  %v2215_v25 = vld [vmem:[%s2011_s7 + $0x128] sm:$0xff]  ;;  %v2261_v39 = vld [vmem:[%s2011_s7 + $0x90] sm:$0xff]  ;;  %s2487_s6 = sld [smem:[#allocation2 + $0x1c]]  ;;  %p3951_p9 = scmp.ne.s32.totalorder %s3760_s23, 0 }
  0x6f   : > { %3784 = vst [vmem:[#allocation28_spill] sm:$0xff] %v2166_v53  ;;  %v2191_v62 = vmul.f32 %v2143_v44, %v2146_v45  ;;  %v2204_v9 = vmul.f32 %v2153_v48, %v2156_v49  ;;  %v2207_v15 = vstv %s2090_s21  ;;  %v345_v16 = vadd.f32 %v341_v55, %v290_v50  ;;  %3791 = vst [vmem:[#allocation35_spill] sm:$0xff] %v2215_v25  ;;  %v2229_v55 = vld [vmem:[%s2011_s7 + $0x148] sm:$0xff]  ;;  %v2232_v48 = vld [vmem:[%s2011_s7 + $0x70] sm:$0xff]  ;;  %s2501_s21 = scalar_lea.vmem [#allocation9], %s1504_s11  ;;  %s2661_s11 = sld [smem:[#allocation2 + $0x25]] }
  0x70   : > { %v509_v59 = vadd.f32 %v505_v29, %v454_v46  ;;  %v451_v23 = vmul.f32 %v2159_v51, %v2065_v13  ;;  %3792 = vst [vmem:[#allocation36_spill] sm:$0xff] %v2218_v28  ;;  %v2222_v34 = vmul.f32 %v2166_v53, %v2169_v54  ;;  %v506_v46 = vmul.f32 %v2176_v57, %v2077_v18  ;;  %v2240_v53 = vld [vmem:[%s2011_s7 + $0x188] sm:$0xff]  ;;  %v2306_v11 = vld [vmem:[%s2011_s7 + $0x38] sm:$0xff] }
  0x71   : > { %v561_v50 = vmul.f32 %v2179_v58, %v2082_v20  ;;  %3793 = vst [vmem:[#allocation37_spill] sm:$0xff] %v2229_v55  ;;  %3794 = vst [vmem:[#allocation38_spill] sm:$0xff] %v2232_v48  ;;  %v400_v44 = vadd.f32 %v396_v56, %v345_v16  ;;  %v2243_v57 = vld [vmem:[%s2011_s7 + $0x1a8] sm:$0xff]  ;;  %v252_v58 = vmul.f32 %v2032_v3, %v2197_v4  ;;  %v2361_v30 = vld [vmem:[%s2011_s7 + $0xb8] sm:$0xff] }
  0x72   : > { %v564_v29 = vadd.f32 %v560_v35, %v509_v59  ;;  %v616_v35 = vmul.f32 %v2194_v63, %v2088_v22  ;;  %v2237_v59 = vld [vmem:[%s2011_s7 + $0x168] sm:$0xff]  ;;  %3796 = vst [vmem:[#allocation40_spill] sm:$0xff] %v2240_v53  ;;  %3797 = vst [vmem:[#allocation41_spill] sm:$0xff] %v2243_v57  ;;  %v287_v51 = vmul.f32 %v2200_v8, %v2040_v5  ;;  %v2273_v8 = vld [vmem:[%s2011_s7 + $0xb0] sm:$0xff] }
  0x73   : > { %3795 = vst [vmem:[#allocation39_spill] sm:$0xff] %v2237_v59  ;;  %v671_v56 = vmul.f32 %v2212_v24, %v2100_v27  ;;  %v2253_v16 = vmul.f32 %v2215_v25, %v2110_v31  ;;  %v2256_v63 = vld [vmem:[%s2011_s7 + $0x1c8] sm:$0xff]  ;;  %v342_v38 = vmul.f32 %v2218_v28, %v2042_v6  ;;  %3799 = vst [vmem:[#allocation43_spill] sm:$0xff] %v2261_v39 }
  0x74   : > { %v619_v40 = vadd.f32 %v615_v36, %v564_v29  ;;  %3798 = vst [vmem:[#allocation42_spill] sm:$0xff] %v2256_v63  ;;  %v455_v4 = vadd.f32 %v451_v23, %v400_v44  ;;  %v2265_v36 = vmul.f32 %v2229_v55, %v2123_v37  ;;  %v2268_v29 = vld [vmem:[%s2011_s7 + $0x1e8] sm:$0xff]  ;;  %v291_v24 = vadd.f32 %v287_v51, %v252_v58  ;;  %v2291_v58 = vld [vmem:[%s2011_s7 + $0xf0] sm:$0xff]  ;;  %v2294_v55 = vld [vmem:[%s2011_s7 + $0x18] sm:$0xff] }
  0x75   : > { %3800 = vst [vmem:[#allocation44_spill] sm:$0xff] %v2268_v29  ;;  %v397_v25 = vmul.f32 %v2232_v48, %v2055_v10  ;;  %3801 = vst [vmem:[#allocation45_spill] sm:$0xff] %v2273_v8  ;;  %v2280_v44 = vmul.f32 %v2237_v59, %v2137_v42  ;;  %v2284_v23 = vmul.f32 %v2240_v53, %v2140_v43  ;;  %v2303_v59 = vld [vmem:[%s2011_s7 + $0x110] sm:$0xff] }
  0x76   : > { %v674_v28 = vadd.f32 %v670_v41, %v619_v40  ;;  %v2288_v51 = vmul.f32 %v2243_v57, %v2146_v45  ;;  %3803 = vst [vmem:[#allocation47_spill] sm:$0xff] %v2291_v58  ;;  %3804 = vst [vmem:[#allocation48_spill] sm:$0xff] %v2294_v55  ;;  %v510_v48 = vadd.f32 %v506_v46, %v455_v4  ;;  %v2309_v57 = vld [vmem:[%s2011_s7 + $0x58] sm:$0xff]  ;;  %v2321_v46 = vld [vmem:[%s2011_s7 + $0x130] sm:$0xff] }
  0x77   : > { %v2298_v40 = vmul.f32 %v2256_v63, %v2156_v49  ;;  %v346_v41 = vadd.f32 %v342_v38, %v291_v24  ;;  %v452_v53 = vmul.f32 %v2261_v39, %v2065_v13  ;;  %3805 = vst [vmem:[#allocation49_spill] sm:$0xff] %v2303_v59  ;;  %3806 = vst [vmem:[#allocation50_spill] sm:$0xff] %v2309_v57  ;;  %v2324_v63 = vld [vmem:[%s2011_s7 + $0x150] sm:$0xff] }
  0x78   : > { %v729_v33 = vadd.f32 %v2150_v47, %v674_v28  ;;  %v2314_v4 = vmul.f32 %v2268_v29, %v2169_v54  ;;  %v507_v38 = vmul.f32 %v2273_v8, %v2077_v18  ;;  %v562_v24 = vmul.f32 %v2276_v14, %v2082_v20  ;;  %3807 = vst [vmem:[#allocation51_spill] sm:$0xff] %v2321_v46  ;;  %v2329_v28 = vld [vmem:[%s2011_s7 + $0x170] sm:$0xff]  ;;  %v2334_v8 = vld [vmem:[%s2011_s7 + $0x78] sm:$0xff] }
  0x79   : > { %3808 = vst [vmem:[#allocation52_spill] sm:$0xff] %v2324_v63  ;;  %v565_v39 = vadd.f32 %v561_v50, %v510_v48  ;;  %v401_v32 = vadd.f32 %v397_v25, %v346_v41  ;;  %v617_v47 = vmul.f32 %v2291_v58, %v2088_v22  ;;  %3809 = vst [vmem:[#allocation53_spill] sm:$0xff] %v2329_v28  ;;  %v2344_v25 = vld [vmem:[%s2011_s7 + $0x190] sm:$0xff] }
  0x7a   : > { %v253_v29 = vmul.f32 %v2032_v3, %v2294_v55  ;;  %v784_v14 = vadd.f32 %v2163_v52, %v729_v33  ;;  %v672_v48 = vmul.f32 %v2303_v59, %v2100_v27  ;;  %3810 = vst [vmem:[#allocation54_spill] sm:$0xff] %v2344_v25  ;;  %v2347_v50 = vld [vmem:[%s2011_s7 + $0x1b0] sm:$0xff]  ;;  %v288_v3 = vmul.f32 %v2306_v11, %v2040_v5  ;;  %v2358_v59 = vld [vmem:[%s2011_s7 + $0x98] sm:$0xff] }
  0x7b   : > { %3811 = vst [vmem:[#allocation55_spill] sm:$0xff] %v2347_v50  ;;  %v343_v41 = vmul.f32 %v2309_v57, %v2042_v6  ;;  %v620_v58 = vadd.f32 %v616_v35, %v565_v39  ;;  %v456_v55 = vadd.f32 %v452_v53, %v401_v32  ;;  %v727_v33 = vmul.f32 %v2321_v46, %v2110_v31  ;;  %v2375_v53 = vld [vmem:[%s2011_s7 + $0xd8] sm:$0xff] }
  0x7c   : > { %v782_v52 = vmul.f32 %v2324_v63, %v2123_v37  ;;  %v839_v5 = vadd.f32 %v2183_v60, %v784_v14  ;;  %v2370_v6 = vmul.f32 %v2329_v28, %v2137_v42  ;;  %v292_v32 = vadd.f32 %v288_v3, %v253_v29  ;;  %v2378_v35 = vld [vmem:[%s2011_s7 + $0xf8] sm:$0xff] }
  0x7d   : > { %v398_v39 = vmul.f32 %v2334_v8, %v2055_v10  ;;  %v675_v63 = vadd.f32 %v671_v56, %v620_v58  ;;  %v511_v46 = vadd.f32 %v507_v38, %v456_v55  ;;  %v2382_v57 = vmul.f32 %v2344_v25, %v2140_v43  ;;  %v2389_v60 = vld [vmem:[%s2011_s7 + $0x118] sm:$0xff] }
  0x7e   : > { %v2386_v14 = vmul.f32 %v2347_v50, %v2146_v45  ;;  %v2392_v29 = vld [vmem:[%s2011_s7 + $0x138] sm:$0xff]  ;;  %v894_v10 = vadd.f32 %v2187_v61, %v839_v5  ;;  %v347_v3 = vadd.f32 %v343_v41, %v292_v32  ;;  %v453_v55 = vmul.f32 %v2358_v59, %v2065_v13 }
  0x7f   : > { %v508_v56 = vmul.f32 %v2361_v30, %v2077_v18  ;;  %v730_v58 = vadd.f32 %v2253_v16, %v675_v63  ;;  %v566_v38 = vadd.f32 %v562_v24, %v511_v46  ;;  %v563_v50 = vmul.f32 %v2375_v53, %v2082_v20 }
  0x80   : > { %v618_v25 = vmul.f32 %v2378_v35, %v2088_v22  ;;  %v949_v61 = vadd.f32 %v2191_v62, %v894_v10  ;;  %v402_v13 = vadd.f32 %v398_v39, %v347_v3  ;;  %v673_v18 = vmul.f32 %v2389_v60, %v2100_v27 }
  0x81   : > { %v728_v63 = vmul.f32 %v2392_v29, %v2110_v31  ;;  %v785_v20 = vadd.f32 %v2265_v36, %v730_v58  ;;  %v621_v16 = vadd.f32 %v617_v47, %v566_v38  ;;  %v2417_v24 = vstv %s2336_s10  ;;  %v2452_v58 = vld [vmem:[%s2011_s7 + $0x158] sm:$0xff]  ;;  %s2511_s10 = sld [smem:[#allocation2 + $0x1d]] }
  0x82   : > { %v2420_v22 = vstv %s2338_s20  ;;  %v1004_v62 = vadd.f32 %v2204_v9, %v949_v61  ;;  %v457_v46 = vadd.f32 %v453_v55, %v402_v13  ;;  %v256_v27 = vmul.f32 %v2417_v24, %v2018_v0  ;;  %s2530_s20 = sld [smem:[#allocation2 + $0x1e]] }
  0x83   : > { %v295_v31 = vmul.f32 %v2023_v1, %v2420_v22  ;;  %v840_v36 = vadd.f32 %v2280_v44, %v785_v20  ;;  %v676_v47 = vadd.f32 %v672_v48, %v621_v16  ;;  %v2431_v41 = vstv %s2363_s19  ;;  %s2532_s19 = sld [smem:[#allocation2 + $0x1f]] }
  0x84   : > { %v2434_v5 = vstv %s2365_s4  ;;  %v1059_v9 = vadd.f32 %v2222_v34, %v1004_v62  ;;  %v512_v32 = vadd.f32 %v508_v56, %v457_v46  ;;  %v350_v10 = vmul.f32 %v2026_v2, %v2431_v41  ;;  %s2553_s4 = sld [smem:[#allocation6 + $0x1]] }
  0x85   : > { %v299_v39 = vadd.f32 %v295_v31, %v256_v27  ;;  %v895_v44 = vadd.f32 %v2284_v23, %v840_v36  ;;  %v731_v48 = vadd.f32 %v727_v33, %v676_v47  ;;  %v405_v3 = vmul.f32 %v2045_v7, %v2434_v5  ;;  %v2477_v36 = vld [vmem:[%s2011_s7 + $0x178] sm:$0xff] }
  0x86   : > { %v2446_v55 = vstv %s2394_s27  ;;  %v1105_v34 = vmul.f32 %v2207_v15, %v1059_v9  ;;  %v567_v56 = vadd.f32 %v563_v50, %v512_v32  ;;  %v2458_v13 = vstv %s2406_s5  ;;  %v2466_v50 = vld [vmem:[%s2011_s7 + $0x1d0] sm:$0xff]  ;;  %s2628_s27 = sld [smem:[#allocation2 + $0x20]]  ;;  %s2634_s5 = sld [smem:[#allocation2 + $0x21]] }
  0x87   : > { %v354_v38 = vadd.f32 %v350_v10, %v299_v39  ;;  %v460_v61 = vmul.f32 %v2063_v12, %v2446_v55  ;;  %v950_v23 = vadd.f32 %v2288_v51, %v895_v44  ;;  %v786_v33 = vadd.f32 %v782_v52, %v731_v48  ;;  %v2483_v9 = vld [vmem:[%s2011_s7 + $0x1f0] sm:$0xff]  ;;  %v2494_v44 = vld [vmem:[%s2011_s7 + $0x198] sm:$0xff] }
  0x88   : > { %v2461_v20 = vstv %s2408_s22  ;;  %v1109_v16 = vmax.f32 %v1105_v34, 0.0  ;;  %v622_v62 = vadd.f32 %v618_v25, %v567_v56  ;;  %v515_v27 = vmul.f32 %v2075_v17, %v2458_v13  ;;  %s2643_s22 = sld [smem:[#allocation2 + $0x22]] }
  0x89   : > { %v409_v46 = vadd.f32 %v405_v3, %v354_v38  ;;  %v1005_v51 = vadd.f32 %v2298_v40, %v950_v23  ;;  %v841_v52 = vadd.f32 %v2370_v6, %v786_v33  ;;  %v783_v31 = vmul.f32 %v2452_v58, %v2123_v37  ;;  %v2507_v3 = vld [vmem:[%s2011_s7 + $0x1b8] sm:$0xff] }
  0x8a   : > { %v2480_v47 = vstv %s2422_s8  ;;  %v1113_v25 = vmin.f32 %v1109_v16, 1.0  ;;  %v677_v32 = vadd.f32 %v673_v18, %v622_v62  ;;  %v570_v10 = vmul.f32 %v2080_v19, %v2461_v20  ;;  %3812 = vst [vmem:[#allocation56_spill] sm:$0xff] %v2507_v3  ;;  %v2523_v33 = vld [vmem:[%s2011_s7 + $0x1d8] sm:$0xff]  ;;  %v3838_v19 = vld [vmem:[#allocation40_spill] sm:$0xff]  ;;  %s2645_s8 = sld [smem:[#allocation2 + $0x23]] }
  0x8b   : > { %v464_v39 = vadd.f32 %v460_v61, %v409_v46  ;;  %v1060_v40 = vadd.f32 %v2314_v4, %v1005_v51  ;;  %v896_v37 = vadd.f32 %v2382_v57, %v841_v52  ;;  %v1002_v6 = vmul.f32 %v2466_v50, %v2156_v49  ;;  %3813 = vst [vmem:[#allocation57_spill] sm:$0xff] %v2523_v33  ;;  %v2526_v16 = vld [vmem:[%s2011_s7 + $0x1f8] sm:$0xff] }
  0x8c   : > { %v2497_v48 = vstv %s2436_s30  ;;  %1117 = vst [vmem:[%s2501_s21] sm:$0xff] %v1113_v25  ;;  %v732_v18 = vadd.f32 %v728_v63, %v677_v32  ;;  %v838_v4 = vmul.f32 %v2477_v36, %v2137_v42  ;;  %v625_v34 = vmul.f32 %v2085_v21, %v2480_v47  ;;  %3814 = vst [vmem:[#allocation58_spill] sm:$0xff] %v2526_v16  ;;  %v3815_v25 = vld [vmem:[#allocation19_spill] sm:$0xff]  ;;  %s2655_s30 = sld [smem:[#allocation2 + $0x24]] }
  0x8d   : > { %v519_v57 = vadd.f32 %v515_v27, %v464_v39  ;;  %v1106_v56 = vmul.f32 %v2207_v15, %v1060_v40  ;;  %v951_v38 = vadd.f32 %v2386_v14, %v896_v37  ;;  %v1057_v61 = vmul.f32 %v2483_v9, %v2169_v54 }
  0x8e   : > { %v2518_v63 = vstv %s2448_s18  ;;  %v787_v42 = vadd.f32 %v783_v31, %v732_v18  ;;  %v893_v23 = vmul.f32 %v2494_v44, %v2140_v43  ;;  %v680_v46 = vmul.f32 %v2097_v26, %v2497_v48  ;;  %s2675_s18 = sld [smem:[#allocation2 + $0x26]] }
  0x8f   : > { %v574_v62 = vadd.f32 %v570_v10, %v519_v57  ;;  %v1110_v14 = vmax.f32 %v1106_v56, 0.0  ;;  %v1006_v27 = vadd.f32 %v1002_v6, %v951_v38  ;;  %v948_v51 = vmul.f32 %v2507_v3, %v2146_v45  ;;  %v3816_v57 = vld [vmem:[#allocation20_spill] sm:$0xff]  ;;  %v3817_v38 = vld [vmem:[#allocation21_spill] sm:$0xff] }
  0x90   : > { %v2537_v43 = vstv %s2463_s25  ;;  %v842_v52 = vadd.f32 %v838_v4, %v787_v42  ;;  %v735_v32 = vmul.f32 %v3815_v25, %v2518_v63  ;;  %v2542_v39 = vstv %s2470_s26  ;;  %v3819_v42 = vld [vmem:[#allocation15_spill] sm:$0xff]  ;;  %s2690_s25 = sld [smem:[#allocation2 + $0x27]]  ;;  %s2704_s26 = sld [smem:[#allocation2 + $0x28]] }
  0x91   : > { %v629_v31 = vadd.f32 %v625_v34, %v574_v62  ;;  %v1114_v10 = vmin.f32 %v1110_v14, 1.0  ;;  %v1061_v40 = vadd.f32 %v1057_v61, %v1006_v27  ;;  %v1003_v37 = vmul.f32 %v2523_v33, %v2156_v49  ;;  %v3818_v61 = vld [vmem:[#allocation14_spill] sm:$0xff]  ;;  %v3820_v27 = vld [vmem:[#allocation23_spill] sm:$0xff] }
  0x92   : > { %v1058_v6 = vmul.f32 %v2526_v16, %v2169_v54  ;;  %v897_v18 = vadd.f32 %v893_v23, %v842_v52  ;;  %v790_v4 = vmul.f32 %v3816_v57, %v2537_v43  ;;  %v2551_v34 = vstv %s2487_s6  ;;  %v3835_v33 = vld [vmem:[#allocation38_spill] sm:$0xff]  ;;  %s2711_s6 = sld [smem:[#allocation2 + $0x29]] }
  0x93   : > { %v684_v45 = vadd.f32 %v680_v46, %v629_v31  ;;  %1118 = vst [vmem:[%s2501_s21 + $0x8] sm:$0xff] %v1114_v10  ;;  %v1107_v56 = vmul.f32 %v2207_v15, %v1061_v40  ;;  %v845_v49 = vmul.f32 %v3817_v38, %v2542_v39  ;;  %v257_v54 = vmul.f32 %v2417_v24, %v3818_v61  ;;  %v3821_v10 = vld [vmem:[#allocation22_spill] sm:$0xff]  ;;  %v3822_v38 = vld [vmem:[#allocation24_spill] sm:$0xff] }
  0x94   : > { %v296_v23 = vmul.f32 %v3819_v42, %v2420_v22  ;;  %v952_v62 = vadd.f32 %v948_v51, %v897_v18  ;;  %v2564_v14 = vstv %s2511_s10  ;;  %v351_v52 = vmul.f32 %v3820_v27, %v2431_v41  ;;  %s2718_s10 = sld [smem:[#allocation2 + $0x2a]] }
  0x95   : > { %v739_v46 = vadd.f32 %v735_v32, %v684_v45  ;;  %v1111_v31 = vmax.f32 %v1107_v56, 0.0  ;;  %v900_v40 = vmul.f32 %v3821_v10, %v2551_v34  ;;  %v406_v25 = vmul.f32 %v3822_v38, %v2434_v5  ;;  %v3823_v45 = vld [vmem:[#allocation27_spill] sm:$0xff]  ;;  %v3824_v10 = vld [vmem:[#allocation25_spill] sm:$0xff] }
  0x96   : > { %v300_v57 = vadd.f32 %v296_v23, %v257_v54  ;;  %v1007_v61 = vadd.f32 %v1003_v37, %v952_v62  ;;  %v2573_v42 = vstv %s2530_s20  ;;  %v2576_v51 = vstv %s2532_s19  ;;  %v3825_v23 = vld [vmem:[#allocation26_spill] sm:$0xff]  ;;  %v3827_v38 = vld [vmem:[#allocation29_spill] sm:$0xff]  ;;  %s2730_s20 = sld [smem:[#allocation2 + $0x2b]]  ;;  %s2742_s19 = sld [smem:[#allocation2 + $0x2c]] }
  0x97   : > { %v794_v26 = vadd.f32 %v790_v4, %v739_v46  ;;  %v1115_v32 = vmin.f32 %v1111_v31, 1.0  ;;  %v461_v27 = vmul.f32 %v3823_v45, %v2446_v55  ;;  %v955_v54 = vmul.f32 %v3824_v10, %v2564_v14  ;;  %v3826_v4 = vld [vmem:[#allocation28_spill] sm:$0xff] }
  0x98   : > { %v355_v18 = vadd.f32 %v351_v52, %v300_v57  ;;  %v1062_v56 = vadd.f32 %v1058_v6, %v1007_v61  ;;  %v1010_v37 = vmul.f32 %v3825_v23, %v2573_v42  ;;  %v1065_v62 = vmul.f32 %v3826_v4, %v2576_v51  ;;  %v3829_v61 = vld [vmem:[#allocation30_spill] sm:$0xff]  ;;  %v3830_v23 = vld [vmem:[#allocation33_spill] sm:$0xff] }
  0x99   : > { %v849_v16 = vadd.f32 %v845_v49, %v794_v26  ;;  %1119 = vst [vmem:[%s2501_s21 + $0x10] sm:$0xff] %v1115_v32  ;;  %v516_v31 = vmul.f32 %v3827_v38, %v2458_v13  ;;  %v2591_v45 = vstv %s2553_s4  ;;  %v3828_v26 = vld [vmem:[#allocation32_spill] sm:$0xff]  ;;  %v571_v32 = vmul.f32 %v3829_v61, %v2461_v20  ;;  %s2748_s4 = sld [smem:[#allocation2 + $0x2d]] }
  0x9a   : > { %v410_v46 = vadd.f32 %v406_v25, %v355_v18  ;;  %v1108_v57 = vmul.f32 %v2207_v15, %v1062_v56  ;;  %v258_v6 = vmul.f32 %v2417_v24, %v3828_v26  ;;  %v297_v10 = vmul.f32 %v3830_v23, %v2420_v22  ;;  %v3831_v25 = vld [vmem:[#allocation36_spill] sm:$0xff]  ;;  %v3832_v15 = vld [vmem:[#allocation31_spill] sm:$0xff] }
  0x9b   : > { %v904_v52 = vadd.f32 %v900_v40, %v849_v16  ;;  %v352_v18 = vmul.f32 %v3831_v25, %v2431_v41  ;;  %v626_v16 = vmul.f32 %v3832_v15, %v2480_v47  ;;  %v3833_v40 = vld [vmem:[#allocation34_spill] sm:$0xff]  ;;  %v407_v23 = vmul.f32 %v3835_v33, %v2434_v5 }
  0x9c   : > { %v465_v49 = vadd.f32 %v461_v27, %v410_v46  ;;  %v1112_v4 = vmax.f32 %v1108_v57, 0.0  ;;  %v681_v56 = vmul.f32 %v3833_v40, %v2497_v48  ;;  %v3834_v27 = vld [vmem:[#allocation35_spill] sm:$0xff]  ;;  %v301_v61 = vadd.f32 %v297_v10, %v258_v6  ;;  %v3836_v57 = vld [vmem:[#allocation37_spill] sm:$0xff] }
  0x9d   : > { %v959_v38 = vadd.f32 %v955_v54, %v904_v52  ;;  %v736_v46 = vmul.f32 %v3834_v27, %v2518_v63  ;;  %v791_v25 = vmul.f32 %v3836_v57, %v2537_v43  ;;  %v3837_v54 = vld [vmem:[#allocation39_spill] sm:$0xff]  ;;  %v901_v40 = vmul.f32 %v3838_v19, %v2551_v34  ;;  %v3840_v6 = vld [vmem:[#allocation41_spill] sm:$0xff]  ;;  %v3842_v57 = vld [vmem:[#allocation44_spill] sm:$0xff] }
  0x9e   : > { %v520_v26 = vadd.f32 %v516_v31, %v465_v49  ;;  %v1116_v21 = vmin.f32 %v1112_v4, 1.0  ;;  %v846_v52 = vmul.f32 %v3837_v54, %v2542_v39  ;;  %v356_v31 = vadd.f32 %v352_v18, %v301_v61  ;;  %v3839_v49 = vld [vmem:[#allocation43_spill] sm:$0xff]  ;;  %v3846_v19 = vld [vmem:[#allocation50_spill] sm:$0xff] }
  0x9f   : > { %v1014_v3 = vadd.f32 %v1010_v37, %v959_v38  ;;  %v462_v27 = vmul.f32 %v3839_v49, %v2446_v55  ;;  %v956_v4 = vmul.f32 %v3840_v6, %v2564_v14  ;;  %v3841_v38 = vld [vmem:[#allocation42_spill] sm:$0xff]  ;;  %v2626_v54 = vmul.f32 %v3842_v57, %v2576_v51 }
  0xa0   : > { %v575_v15 = vadd.f32 %v571_v32, %v520_v26  ;;  %1120 = vst [vmem:[%s2501_s21 + $0x18] sm:$0xff] %v1116_v21  ;;  %v2622_v37 = vmul.f32 %v3841_v38, %v2573_v42  ;;  %v411_v61 = vadd.f32 %v407_v23, %v356_v31  ;;  %v3843_v32 = vld [vmem:[#allocation45_spill] sm:$0xff]  ;;  %v3844_v21 = vld [vmem:[#allocation48_spill] sm:$0xff]  ;;  %v3845_v38 = vld [vmem:[#allocation46_spill] sm:$0xff]  ;;  %v298_v57 = vmul.f32 %v2306_v11, %v2420_v22 }
  0xa1   : > { %v1069_v10 = vadd.f32 %v1065_v62, %v1014_v3  ;;  %v517_v18 = vmul.f32 %v3843_v32, %v2458_v13  ;;  %v259_v3 = vmul.f32 %v2417_v24, %v3844_v21  ;;  %v572_v6 = vmul.f32 %v3845_v38, %v2461_v20  ;;  %v3847_v24 = vld [vmem:[#allocation47_spill] sm:$0xff] }
  0xa2   : > { %v630_v26 = vadd.f32 %v626_v16, %v575_v15  ;;  %v353_v15 = vmul.f32 %v3846_v19, %v2431_v41  ;;  %v466_v16 = vadd.f32 %v462_v27, %v411_v61  ;;  %v627_v31 = vmul.f32 %v3847_v24, %v2480_v47  ;;  %v3849_v38 = vld [vmem:[#allocation51_spill] sm:$0xff]  ;;  %v3850_v27 = vld [vmem:[#allocation52_spill] sm:$0xff] }
  0xa3   : > { %v1123_v62 = vmul.f32 %v2591_v45, %v1069_v10  ;;  %v3848_v10 = vld [vmem:[#allocation49_spill] sm:$0xff]  ;;  %v737_v49 = vmul.f32 %v3849_v38, %v2518_v63  ;;  %v302_v22 = vadd.f32 %v298_v57, %v259_v3  ;;  %v408_v41 = vmul.f32 %v2334_v8, %v2434_v5  ;;  %v3851_v57 = vld [vmem:[#allocation54_spill] sm:$0xff] }
  0xa4   : > { %v685_v23 = vadd.f32 %v681_v56, %v630_v26  ;;  %v682_v21 = vmul.f32 %v3848_v10, %v2497_v48  ;;  %v521_v56 = vadd.f32 %v517_v18, %v466_v16  ;;  %v792_v26 = vmul.f32 %v3850_v27, %v2537_v43 }
  0xa5   : > { %v1127_v32 = vmax.f32 %v1123_v62, 0.0  ;;  %v847_v61 = vmul.f32 %v2329_v28, %v2542_v39  ;;  %v902_v3 = vmul.f32 %v3851_v57, %v2551_v34  ;;  %v357_v5 = vadd.f32 %v353_v15, %v302_v22 }
  0xa6   : > { %v740_v19 = vadd.f32 %v736_v46, %v685_v23  ;;  %v463_v38 = vmul.f32 %v2358_v59, %v2446_v55  ;;  %v576_v18 = vadd.f32 %v572_v6, %v521_v56  ;;  %v3852_v23 = vld [vmem:[#allocation55_spill] sm:$0xff]  ;;  %v2673_v28 = vmul.f32 %v2466_v50, %v2573_v42 }
  0xa7   : > { %v1131_v62 = vmin.f32 %v1127_v32, 1.0  ;;  %v2669_v16 = vmul.f32 %v3852_v23, %v2564_v14  ;;  %v412_v32 = vadd.f32 %v408_v41, %v357_v5  ;;  %v518_v15 = vmul.f32 %v2361_v30, %v2458_v13 }
  0xa8   : > { %v795_v46 = vadd.f32 %v791_v25, %v740_v19  ;;  %v573_v19 = vmul.f32 %v2375_v53, %v2461_v20  ;;  %v2683_v55 = vstv %s2628_s27  ;;  %v631_v6 = vadd.f32 %v627_v31, %v576_v18  ;;  %s2750_s27 = sld [smem:[#allocation2 + $0x2e]] }
  0xa9   : > { %1481 = vst [vmem:[%s2501_s21 + $0x20] sm:$0xff] %v1131_v62  ;;  %v262_v22 = vmul.f32 %v2683_v55, %v2018_v0  ;;  %v2688_v56 = vstv %s2634_s5  ;;  %v467_v62 = vadd.f32 %v463_v38, %v412_v32  ;;  %v2695_v13 = vstv %s2643_s22  ;;  %s2758_s5 = sld [smem:[#allocation2 + $0x2f]]  ;;  %s2781_s22 = sld [smem:[#allocation6 + $0x2]] }
  0xaa   : > { %v850_v25 = vadd.f32 %v846_v52, %v795_v46  ;;  %v305_v41 = vmul.f32 %v2023_v1, %v2688_v56  ;;  %v2698_v20 = vstv %s2645_s8  ;;  %v686_v52 = vadd.f32 %v682_v21, %v631_v6  ;;  %s2864_s8 = sld [smem:[#allocation2 + $0x30]] }
  0xab   : > { %v628_v31 = vmul.f32 %v2378_v35, %v2480_v47  ;;  %v360_v0 = vmul.f32 %v2026_v2, %v2695_v13  ;;  %v522_v46 = vadd.f32 %v518_v15, %v467_v62  ;;  %v415_v1 = vmul.f32 %v2045_v7, %v2698_v20 }
  0xac   : > { %v905_v5 = vadd.f32 %v901_v40, %v850_v25  ;;  %v309_v38 = vadd.f32 %v305_v41, %v262_v22  ;;  %v2709_v18 = vstv %s2655_s30  ;;  %v741_v21 = vadd.f32 %v737_v49, %v686_v52  ;;  %s2866_s30 = sld [smem:[#allocation2 + $0x31]] }
  0xad   : > { %v1067_v47 = vmul.f32 %v2483_v9, %v2576_v51  ;;  %v2716_v32 = vstv %s2661_s11  ;;  %v577_v2 = vadd.f32 %v573_v19, %v522_v46  ;;  %v683_v15 = vmul.f32 %v2389_v60, %v2497_v48  ;;  %s2873_s11 = sld [smem:[#allocation2 + $0x32]] }
  0xae   : > { %v960_v40 = vadd.f32 %v956_v4, %v905_v5  ;;  %v364_v25 = vadd.f32 %v360_v0, %v309_v38  ;;  %v470_v7 = vmul.f32 %v2063_v12, %v2709_v18  ;;  %v796_v4 = vadd.f32 %v792_v26, %v741_v21 }
  0xaf   : > { %v738_v49 = vmul.f32 %v2392_v29, %v2518_v63  ;;  %v2728_v22 = vstv %s2675_s18  ;;  %v632_v62 = vadd.f32 %v628_v31, %v577_v2  ;;  %v793_v19 = vmul.f32 %v2452_v58, %v2537_v43  ;;  %v3853_v31 = vld [vmem:[#allocation16_spill] sm:$0xff]  ;;  %s2883_s18 = sld [smem:[#allocation2 + $0x33]] }
  0xb0   : > { %v1015_v6 = vadd.f32 %v2622_v37, %v960_v40  ;;  %v419_v41 = vadd.f32 %v415_v1, %v364_v25  ;;  %v525_v48 = vmul.f32 %v2075_v17, %v2716_v32  ;;  %v851_v37 = vadd.f32 %v847_v61, %v796_v4  ;;  %v3854_v61 = vld [vmem:[#allocation56_spill] sm:$0xff]  ;;  %v3855_v1 = vld [vmem:[#allocation17_spill] sm:$0xff] }
  0xb1   : > { %v848_v26 = vmul.f32 %v2477_v36, %v2542_v39  ;;  %v2740_v63 = vstv %s2690_s25  ;;  %v687_v5 = vadd.f32 %v683_v15, %v632_v62  ;;  %v903_v43 = vmul.f32 %v2494_v44, %v2551_v34  ;;  %v3858_v62 = vld [vmem:[#allocation18_spill] sm:$0xff]  ;;  %s2885_s25 = sld [smem:[#allocation2 + $0x34]] }
  0xb2   : > { %v1070_v12 = vadd.f32 %v2626_v54, %v1015_v6  ;;  %v474_v52 = vadd.f32 %v470_v7, %v419_v41  ;;  %v580_v17 = vmul.f32 %v3853_v31, %v2728_v22  ;;  %v906_v54 = vadd.f32 %v902_v3, %v851_v37  ;;  %v3856_v3 = vld [vmem:[#allocation57_spill] sm:$0xff]  ;;  %v3857_v6 = vld [vmem:[#allocation58_spill] sm:$0xff] }
  0xb3   : > { %v958_v0 = vmul.f32 %v3854_v61, %v2564_v14  ;;  %v2756_v46 = vstv %s2704_s26  ;;  %v742_v34 = vadd.f32 %v738_v49, %v687_v5  ;;  %v635_v40 = vmul.f32 %v3855_v1, %v2740_v63  ;;  %v3861_v31 = vld [vmem:[#allocation14_spill] sm:$0xff]  ;;  %s2896_s26 = sld [smem:[#allocation2 + $0x35]] }
  0xb4   : > { %v1124_v39 = vmul.f32 %v2591_v45, %v1070_v12  ;;  %v529_v38 = vadd.f32 %v525_v48, %v474_v52  ;;  %v2763_v21 = vstv %s2711_s6  ;;  %v961_v15 = vadd.f32 %v2669_v16, %v906_v54  ;;  %v3859_v16 = vld [vmem:[#allocation19_spill] sm:$0xff]  ;;  %s2908_s6 = sld [smem:[#allocation2 + $0x36]] }
  0xb5   : > { %v1013_v25 = vmul.f32 %v3856_v3, %v2573_v42  ;;  %v2769_v14 = vstv %s2718_s10  ;;  %v797_v7 = vadd.f32 %v793_v19, %v742_v34  ;;  %v1068_v4 = vmul.f32 %v3857_v6, %v2576_v51  ;;  %v3860_v51 = vld [vmem:[#allocation20_spill] sm:$0xff]  ;;  %v3862_v54 = vld [vmem:[#allocation15_spill] sm:$0xff]  ;;  %s2912_s10 = sld [smem:[#allocation2 + $0x37]] }
  0xb6   : > { %v1128_v2 = vmax.f32 %v1124_v39, 0.0  ;;  %v584_v49 = vadd.f32 %v580_v17, %v529_v38  ;;  %v690_v41 = vmul.f32 %v3858_v62, %v2756_v46  ;;  %v1016_v12 = vadd.f32 %v2673_v28, %v961_v15  ;;  %v3863_v38 = vld [vmem:[#allocation23_spill] sm:$0xff]  ;;  %v3864_v62 = vld [vmem:[#allocation24_spill] sm:$0xff] }
  0xb7   : > { %v745_v37 = vmul.f32 %v3859_v16, %v2763_v21  ;;  %v2779_v42 = vstv %s2730_s20  ;;  %v852_v19 = vadd.f32 %v848_v26, %v797_v7  ;;  %v800_v52 = vmul.f32 %v3860_v51, %v2769_v14  ;;  %v3865_v51 = vld [vmem:[#allocation21_spill] sm:$0xff]  ;;  %s2942_s20 = sld [smem:[#allocation2 + $0x38]] }
  0xb8   : > { %v1132_v48 = vmin.f32 %v1128_v2, 1.0  ;;  %v639_v5 = vadd.f32 %v635_v40, %v584_v49  ;;  %v263_v17 = vmul.f32 %v2683_v55, %v3861_v31  ;;  %v1071_v39 = vadd.f32 %v1067_v47, %v1016_v12 }
  0xb9   : > { %v2789_v28 = vstv %s2742_s19  ;;  %v306_v34 = vmul.f32 %v3862_v54, %v2688_v56  ;;  %v361_v1 = vmul.f32 %v3863_v38, %v2695_v13  ;;  %v907_v2 = vadd.f32 %v903_v43, %v852_v19  ;;  %v3866_v43 = vld [vmem:[#allocation22_spill] sm:$0xff]  ;;  %v3868_v38 = vld [vmem:[#allocation27_spill] sm:$0xff]  ;;  %s2949_s19 = sld [smem:[#allocation2 + $0x39]] }
  0xba   : > { %1482 = vst [vmem:[%s2501_s21 + $0x28] sm:$0xff] %v1132_v48  ;;  %v694_v15 = vadd.f32 %v690_v41, %v639_v5  ;;  %v2796_v26 = vstv %s2748_s4  ;;  %v2799_v40 = vstv %s2750_s27  ;;  %v1125_v7 = vmul.f32 %v2591_v45, %v1071_v39  ;;  %v3867_v5 = vld [vmem:[#allocation25_spill] sm:$0xff]  ;;  %s2978_s4 = sld [smem:[#allocation2 + $0x3a]]  ;;  %s2983_s27 = sld [smem:[#allocation2 + $0x3b]] }
  0xbb   : > { %v2803_v49 = vstv %s2758_s5  ;;  %v310_v47 = vadd.f32 %v306_v34, %v263_v17  ;;  %v416_v48 = vmul.f32 %v3864_v62, %v2698_v20  ;;  %v962_v12 = vadd.f32 %v958_v0, %v907_v2  ;;  %v3869_v0 = vld [vmem:[#allocation26_spill] sm:$0xff]  ;;  %v3870_v2 = vld [vmem:[#allocation28_spill] sm:$0xff]  ;;  %s2992_s5 = sld [smem:[#allocation2 + $0x3c]] }
  0xbc   : > { %v749_v16 = vadd.f32 %v745_v37, %v694_v15  ;;  %v855_v31 = vmul.f32 %v3865_v51, %v2779_v42  ;;  %v910_v41 = vmul.f32 %v3866_v43, %v2789_v28  ;;  %v1129_v19 = vmax.f32 %v1125_v7, 0.0  ;;  %v3871_v43 = vld [vmem:[#allocation29_spill] sm:$0xff] }
  0xbd   : > { %v965_v39 = vmul.f32 %v3867_v5, %v2796_v26  ;;  %v365_v54 = vadd.f32 %v361_v1, %v310_v47  ;;  %v471_v17 = vmul.f32 %v3868_v38, %v2709_v18  ;;  %v1017_v34 = vadd.f32 %v1013_v25, %v962_v12  ;;  %v3872_v47 = vld [vmem:[#allocation32_spill] sm:$0xff]  ;;  %v3873_v25 = vld [vmem:[#allocation33_spill] sm:$0xff] }
  0xbe   : > { %v804_v6 = vadd.f32 %v800_v52, %v749_v16  ;;  %v1020_v37 = vmul.f32 %v3869_v0, %v2799_v40  ;;  %v1075_v15 = vmul.f32 %v3870_v2, %v2803_v49  ;;  %v1133_v62 = vmin.f32 %v1129_v19, 1.0  ;;  %v3874_v16 = vld [vmem:[#allocation30_spill] sm:$0xff]  ;;  %v3875_v19 = vld [vmem:[#allocation31_spill] sm:$0xff] }
  0xbf   : > { %v2820_v51 = vstv %s2781_s22  ;;  %v420_v7 = vadd.f32 %v416_v48, %v365_v54  ;;  %v526_v3 = vmul.f32 %v3871_v43, %v2716_v32  ;;  %v1072_v5 = vadd.f32 %v1068_v4, %v1017_v34  ;;  %v3876_v48 = vld [vmem:[#allocation36_spill] sm:$0xff]  ;;  %s3010_s22 = sld [smem:[#allocation2 + $0x3d]] }
  0xc0   : > { %v859_v1 = vadd.f32 %v855_v31, %v804_v6  ;;  %v264_v38 = vmul.f32 %v2683_v55, %v3872_v47  ;;  %v307_v52 = vmul.f32 %v3873_v25, %v2688_v56  ;;  %1483 = vst [vmem:[%s2501_s21 + $0x30] sm:$0xff] %v1133_v62  ;;  %v581_v0 = vmul.f32 %v3874_v16, %v2728_v22  ;;  %v3877_v62 = vld [vmem:[#allocation34_spill] sm:$0xff]  ;;  %v3879_v25 = vld [vmem:[#allocation37_spill] sm:$0xff] }
  0xc1   : > { %v475_v12 = vadd.f32 %v471_v17, %v420_v7  ;;  %v636_v2 = vmul.f32 %v3875_v19, %v2740_v63  ;;  %v362_v54 = vmul.f32 %v3876_v48, %v2695_v13  ;;  %v1126_v4 = vmul.f32 %v2591_v45, %v1072_v5  ;;  %v3878_v7 = vld [vmem:[#allocation35_spill] sm:$0xff] }
  0xc2   : > { %v914_v6 = vadd.f32 %v910_v41, %v859_v1  ;;  %v311_v31 = vadd.f32 %v307_v52, %v264_v38  ;;  %v417_v34 = vmul.f32 %v3835_v33, %v2698_v20  ;;  %v691_v17 = vmul.f32 %v3877_v62, %v2756_v46  ;;  %v3880_v45 = vld [vmem:[#allocation43_spill] sm:$0xff]  ;;  %v3882_v1 = vld [vmem:[#allocation40_spill] sm:$0xff]  ;;  %v3883_v52 = vld [vmem:[#allocation41_spill] sm:$0xff] }
  0xc3   : > { %v530_v43 = vadd.f32 %v526_v3, %v475_v12  ;;  %v746_v47 = vmul.f32 %v3878_v7, %v2763_v21  ;;  %v801_v16 = vmul.f32 %v3879_v25, %v2769_v14  ;;  %v1130_v19 = vmax.f32 %v1126_v4, 0.0  ;;  %v3881_v33 = vld [vmem:[#allocation39_spill] sm:$0xff] }
  0xc4   : > { %v969_v61 = vadd.f32 %v965_v39, %v914_v6  ;;  %v366_v48 = vadd.f32 %v362_v54, %v311_v31  ;;  %v472_v41 = vmul.f32 %v3880_v45, %v2709_v18  ;;  %v856_v3 = vmul.f32 %v3881_v33, %v2779_v42  ;;  %v3884_v39 = vld [vmem:[#allocation45_spill] sm:$0xff]  ;;  %v3885_v31 = vld [vmem:[#allocation42_spill] sm:$0xff]  ;;  %v3887_v45 = vld [vmem:[#allocation48_spill] sm:$0xff] }
  0xc5   : > { %v585_v5 = vadd.f32 %v581_v0, %v530_v43  ;;  %v911_v38 = vmul.f32 %v3882_v1, %v2789_v28  ;;  %v2852_v12 = vmul.f32 %v3883_v52, %v2796_v26  ;;  %v1134_v62 = vmin.f32 %v1130_v19, 1.0  ;;  %v3886_v43 = vld [vmem:[#allocation46_spill] sm:$0xff]  ;;  %v3890_v52 = vld [vmem:[#allocation51_spill] sm:$0xff] }
  0xc6   : > { %v1024_v7 = vadd.f32 %v1020_v37, %v969_v61  ;;  %v421_v4 = vadd.f32 %v417_v34, %v366_v48  ;;  %v527_v54 = vmul.f32 %v3884_v39, %v2716_v32  ;;  %v2858_v0 = vmul.f32 %v3885_v31, %v2799_v40  ;;  %v3888_v34 = vld [vmem:[#allocation50_spill] sm:$0xff] }
  0xc7   : > { %v640_v6 = vadd.f32 %v636_v2, %v585_v5  ;;  %v582_v25 = vmul.f32 %v3886_v43, %v2728_v22  ;;  %v265_v33 = vmul.f32 %v2683_v55, %v3887_v45  ;;  %1484 = vst [vmem:[%s2501_s21 + $0x38] sm:$0xff] %v1134_v62  ;;  %v308_v2 = vmul.f32 %v2306_v11, %v2688_v56  ;;  %v3889_v5 = vld [vmem:[#allocation44_spill] sm:$0xff]  ;;  %v2924_v45 = vld [vmem:[%s2011_s7] sm:$0xff] }
  0xc8   : > { %v1079_v61 = vadd.f32 %v1075_v15, %v1024_v7  ;;  %v476_v37 = vadd.f32 %v472_v41, %v421_v4  ;;  %v363_v19 = vmul.f32 %v3888_v34, %v2695_v13  ;;  %v2877_v1 = vmul.f32 %v3889_v5, %v2803_v49 }
  0xc9   : > { %v695_v48 = vadd.f32 %v691_v17, %v640_v6  ;;  %v637_v55 = vmul.f32 %v3847_v24, %v2740_v63  ;;  %v692_v15 = vmul.f32 %v3848_v10, %v2756_v46  ;;  %v312_v13 = vadd.f32 %v308_v2, %v265_v33  ;;  %v3891_v10 = vld [vmem:[#allocation53_spill] sm:$0xff] }
  0xca   : > { %v1142_v11 = vmul.f32 %v2820_v51, %v1079_v61  ;;  %v531_v56 = vadd.f32 %v527_v54, %v476_v37  ;;  %v418_v17 = vmul.f32 %v2334_v8, %v2698_v20  ;;  %v747_v62 = vmul.f32 %v3890_v52, %v2763_v21 }
  0xcb   : > { %v750_v41 = vadd.f32 %v746_v47, %v695_v48  ;;  %v802_v24 = vmul.f32 %v3850_v27, %v2769_v14  ;;  %v857_v7 = vmul.f32 %v3891_v10, %v2779_v42  ;;  %v367_v54 = vadd.f32 %v363_v19, %v312_v13  ;;  %v2945_v19 = vld [vmem:[%s2011_s7 + $0x40] sm:$0xff] }
  0xcc   : > { %v1146_v4 = vmax.f32 %v1142_v11, 0.0  ;;  %v586_v39 = vadd.f32 %v582_v25, %v531_v56  ;;  %v473_v8 = vmul.f32 %v2358_v59, %v2709_v18  ;;  %v912_v47 = vmul.f32 %v3851_v57, %v2789_v28 }
  0xcd   : > { %v805_v20 = vadd.f32 %v801_v16, %v750_v41  ;;  %v2904_v27 = vmul.f32 %v3852_v23, %v2796_v26  ;;  %v528_v6 = vmul.f32 %v2361_v30, %v2716_v32  ;;  %v422_v25 = vadd.f32 %v418_v17, %v367_v54  ;;  %v2963_v41 = vld [vmem:[%s2011_s7 + $0x80] sm:$0xff] }
  0xce   : > { %v1150_v31 = vmin.f32 %v1146_v4, 1.0  ;;  %v641_v43 = vadd.f32 %v637_v55, %v586_v39  ;;  %v583_v59 = vmul.f32 %v2375_v53, %v2728_v22  ;;  %v638_v23 = vmul.f32 %v2378_v35, %v2740_v63  ;;  %v2929_v22 = vld [vmem:[%s2011_s7 + $0x20] sm:$0xff] }
  0xcf   : > { %v860_v57 = vadd.f32 %v856_v3, %v805_v20  ;;  %v2917_v18 = vstv %s2864_s8  ;;  %v2920_v30 = vstv %s2866_s30  ;;  %v477_v16 = vadd.f32 %v473_v8, %v422_v25  ;;  %v2955_v55 = vld [vmem:[%s2011_s7 + $0x60] sm:$0xff]  ;;  %s3020_s8 = sld [smem:[#allocation2 + $0x3e]]  ;;  %s3037_s30 = sld [smem:[#allocation2 + $0x3f]] }
  0xd0   : > { %1486 = vst [vmem:[%s2501_s21 + $0x40] sm:$0xff] %v1150_v31  ;;  %v696_v32 = vadd.f32 %v692_v15, %v641_v43  ;;  %v268_v53 = vmul.f32 %v2924_v45, %v2917_v18  ;;  %v315_v3 = vmul.f32 %v2929_v22, %v2920_v30  ;;  %v2934_v63 = vstv %s2873_s11  ;;  %v2995_v31 = vld [vmem:[%s2011_s7 + $0xc0] sm:$0xff]  ;;  %s3039_s11 = sld [smem:[#allocation6 + $0x3]] }
  0xd1   : > { %v915_v35 = vadd.f32 %v911_v38, %v860_v57  ;;  %v2937_v33 = vstv %s2883_s18  ;;  %v2940_v61 = vstv %s2885_s25  ;;  %v532_v2 = vadd.f32 %v528_v6, %v477_v16  ;;  %s3208_s18 = sld [smem:[#allocation2 + $0x40]]  ;;  %s3226_s25 = sld [smem:[#allocation2 + $0x41]] }
  0xd2   : > { %v751_v37 = vadd.f32 %v747_v62, %v696_v32  ;;  %v319_v34 = vadd.f32 %v315_v3, %v268_v53  ;;  %v370_v48 = vmul.f32 %v2945_v19, %v2934_v63  ;;  %v693_v5 = vmul.f32 %v2389_v60, %v2756_v46  ;;  %v2971_v46 = vld [vmem:[%s2011_s7 + $0xa0] sm:$0xff] }
  0xd3   : > { %v970_v38 = vadd.f32 %v2852_v12, %v915_v35  ;;  %v425_v15 = vmul.f32 %v2955_v55, %v2937_v33  ;;  %v2960_v11 = vstv %s2896_s26  ;;  %v587_v13 = vadd.f32 %v583_v59, %v532_v2  ;;  %v3023_v3 = vld [vmem:[%s2011_s7 + $0x100] sm:$0xff]  ;;  %s3228_s26 = sld [smem:[#allocation2 + $0x42]] }
  0xd4   : > { %v806_v56 = vadd.f32 %v802_v24, %v751_v37  ;;  %v374_v17 = vadd.f32 %v370_v48, %v319_v34  ;;  %v480_v52 = vmul.f32 %v2963_v41, %v2940_v61  ;;  %v748_v60 = vmul.f32 %v2392_v29, %v2763_v21 }
  0xd5   : > { %v1025_v12 = vadd.f32 %v2858_v0, %v970_v38  ;;  %v535_v62 = vmul.f32 %v2971_v46, %v2960_v11  ;;  %v2976_v10 = vstv %s2908_s6  ;;  %v642_v4 = vadd.f32 %v638_v23, %v587_v13  ;;  %s3242_s6 = sld [smem:[#allocation2 + $0x43]] }
  0xd6   : > { %v861_v24 = vadd.f32 %v857_v7, %v806_v56  ;;  %v429_v39 = vadd.f32 %v425_v15, %v374_v17  ;;  %v2981_v54 = vstv %s2912_s10  ;;  %v1022_v21 = vmul.f32 %v2466_v50, %v2799_v40  ;;  %v3049_v56 = vld [vmem:[%s2011_s7 + $0x8] sm:$0xff]  ;;  %s3255_s10 = sld [smem:[#allocation2 + $0x44]] }
  0xd7   : > { %v1080_v29 = vadd.f32 %v2877_v1, %v1025_v12  ;;  %v1077_v0 = vmul.f32 %v2483_v9, %v2803_v49  ;;  %v803_v8 = vmul.f32 %v2452_v58, %v2769_v14  ;;  %v697_v20 = vadd.f32 %v693_v5, %v642_v4  ;;  %v3003_v9 = vld [vmem:[%s2011_s7 + $0xe0] sm:$0xff]  ;;  %v3054_v17 = vld [vmem:[%s2011_s7 + $0x28] sm:$0xff] }
  0xd8   : > { %v916_v7 = vadd.f32 %v912_v47, %v861_v24  ;;  %v484_v6 = vadd.f32 %v480_v52, %v429_v39  ;;  %v590_v1 = vmul.f32 %v2995_v31, %v2976_v10  ;;  %v858_v50 = vmul.f32 %v2477_v36, %v2779_v42  ;;  %v3892_v42 = vld [vmem:[#allocation56_spill] sm:$0xff]  ;;  %v3059_v12 = vld [vmem:[%s2011_s7 + $0x48] sm:$0xff]  ;;  %v3065_v39 = vld [vmem:[%s2011_s7 + $0x140] sm:$0xff] }
  0xd9   : > { %v1143_v43 = vmul.f32 %v2820_v51, %v1080_v29  ;;  %v645_v58 = vmul.f32 %v3003_v9, %v2981_v54  ;;  %v3008_v14 = vstv %s2942_s20  ;;  %v752_v25 = vadd.f32 %v748_v60, %v697_v20  ;;  %v3075_v20 = vld [vmem:[%s2011_s7 + $0x68] sm:$0xff]  ;;  %s3257_s20 = sld [smem:[#allocation2 + $0x45]] }
  0xda   : > { %v971_v47 = vadd.f32 %v2904_v27, %v916_v7  ;;  %v539_v59 = vadd.f32 %v535_v62, %v484_v6  ;;  %v3014_v57 = vstv %s2949_s19  ;;  %v913_v36 = vmul.f32 %v2494_v44, %v2789_v28  ;;  %v3893_v44 = vld [vmem:[#allocation57_spill] sm:$0xff]  ;;  %s3301_s19 = sld [smem:[#allocation2 + $0x46]] }
  0xdb   : > { %v1147_v23 = vmax.f32 %v1143_v43, 0.0  ;;  %v968_v32 = vmul.f32 %v3892_v42, %v2796_v26  ;;  %v807_v53 = vadd.f32 %v803_v8, %v752_v25  ;;  %v700_v35 = vmul.f32 %v3023_v3, %v3008_v14  ;;  %v3030_v26 = vld [vmem:[%s2011_s7 + $0x120] sm:$0xff] }
  0xdc   : > { %v1026_v16 = vadd.f32 %v1022_v21, %v971_v47  ;;  %v594_v27 = vadd.f32 %v590_v1, %v539_v59  ;;  %v1023_v28 = vmul.f32 %v3893_v44, %v2799_v40  ;;  %v755_v2 = vmul.f32 %v3030_v26, %v3014_v57  ;;  %v3894_v21 = vld [vmem:[#allocation58_spill] sm:$0xff] }
  0xdd   : > { %v1151_v37 = vmin.f32 %v1147_v23, 1.0  ;;  %v3035_v34 = vstv %s2978_s4  ;;  %v862_v38 = vadd.f32 %v858_v50, %v807_v53  ;;  %v3042_v15 = vstv %s2983_s27  ;;  %v3085_v47 = vld [vmem:[%s2011_s7 + $0x180] sm:$0xff]  ;;  %s3312_s4 = sld [smem:[#allocation2 + $0x47]]  ;;  %s3337_s27 = sld [smem:[#allocation2 + $0x48]] }
  0xde   : > { %v1081_v48 = vadd.f32 %v1077_v0, %v1026_v16  ;;  %v649_v5 = vadd.f32 %v645_v58, %v594_v27  ;;  %v3046_v40 = vstv %s2992_s5  ;;  %v269_v13 = vmul.f32 %v3049_v56, %v2917_v18  ;;  %v3080_v58 = vld [vmem:[%s2011_s7 + $0x160] sm:$0xff]  ;;  %s3339_s5 = sld [smem:[#allocation2 + $0x49]] }
  0xdf   : > { %1487 = vst [vmem:[%s2501_s21 + $0x48] sm:$0xff] %v1151_v37  ;;  %v316_v52 = vmul.f32 %v3054_v17, %v2920_v30  ;;  %v371_v60 = vmul.f32 %v3059_v12, %v2934_v63  ;;  %v917_v24 = vadd.f32 %v913_v36, %v862_v38  ;;  %v810_v29 = vmul.f32 %v3065_v39, %v3035_v34  ;;  %v3093_v36 = vld [vmem:[%s2011_s7 + $0x88] sm:$0xff]  ;;  %v3098_v27 = vld [vmem:[%s2011_s7 + $0x1a0] sm:$0xff] }
  0xe0   : > { %v1144_v62 = vmul.f32 %v2820_v51, %v1081_v48  ;;  %v704_v4 = vadd.f32 %v700_v35, %v649_v5  ;;  %v1078_v0 = vmul.f32 %v3894_v21, %v2803_v49  ;;  %v3072_v8 = vstv %s3010_s22  ;;  %v3109_v48 = vld [vmem:[%s2011_s7 + $0xa8] sm:$0xff]  ;;  %v3130_v21 = vld [vmem:[%s2011_s7 + $0x30] sm:$0xff]  ;;  %s3344_s22 = sld [smem:[#allocation2 + $0x4a]] }
  0xe1   : > { %v320_v7 = vadd.f32 %v316_v52, %v269_v13  ;;  %v426_v6 = vmul.f32 %v3075_v20, %v2937_v33  ;;  %v972_v43 = vadd.f32 %v968_v32, %v917_v24  ;;  %v865_v49 = vmul.f32 %v3080_v58, %v3042_v15  ;;  %v3115_v13 = vld [vmem:[%s2011_s7 + $0x1c0] sm:$0xff] }
  0xe2   : > { %v1148_v1 = vmax.f32 %v1144_v62, 0.0  ;;  %v759_v50 = vadd.f32 %v755_v2, %v704_v4  ;;  %v920_v25 = vmul.f32 %v3085_v47, %v3046_v40  ;;  %v3090_v59 = vstv %s3020_s8  ;;  %v3125_v4 = vld [vmem:[%s2011_s7 + $0xc8] sm:$0xff]  ;;  %s3378_s8 = sld [smem:[#allocation2 + $0x4b]] }
  0xe3   : > { %v375_v23 = vadd.f32 %v371_v60, %v320_v7  ;;  %v481_v42 = vmul.f32 %v3093_v36, %v2940_v61  ;;  %v1027_v16 = vadd.f32 %v1023_v28, %v972_v43  ;;  %v975_v35 = vmul.f32 %v3098_v27, %v3072_v8  ;;  %v3120_v60 = vld [vmem:[%s2011_s7 + $0x10] sm:$0xff] }
  0xe4   : > { %v1152_v32 = vmin.f32 %v1148_v1, 1.0  ;;  %v814_v53 = vadd.f32 %v810_v29, %v759_v50  ;;  %v3103_v37 = vstv %s3037_s30  ;;  %v3106_v44 = vstv %s3039_s11  ;;  %v3135_v7 = vld [vmem:[%s2011_s7 + $0x50] sm:$0xff]  ;;  %v3141_v50 = vld [vmem:[%s2011_s7 + $0x1e0] sm:$0xff]  ;;  %s3395_s30 = sld [smem:[#allocation2 + $0x4c]]  ;;  %s3397_s11 = sld [smem:[#allocation2 + $0x4d]] }
  0xe5   : > { %v430_v2 = vadd.f32 %v426_v6, %v375_v23  ;;  %v536_v38 = vmul.f32 %v3109_v48, %v2960_v11  ;;  %v1082_v28 = vadd.f32 %v1078_v0, %v1027_v16  ;;  %v1030_v52 = vmul.f32 %v3115_v13, %v3090_v59  ;;  %3895 = vst [vmem:[#allocation38_spill] sm:$0xff] %v3141_v50  ;;  %v3146_v23 = vld [vmem:[%s2011_s7 + $0xe8] sm:$0xff] }
  0xe6   : > { %1488 = vst [vmem:[%s2501_s21 + $0x50] sm:$0xff] %v1152_v32  ;;  %v869_v5 = vadd.f32 %v865_v49, %v814_v53  ;;  %v270_v62 = vmul.f32 %v3120_v60, %v2917_v18  ;;  %v591_v29 = vmul.f32 %v3125_v4, %v2976_v10  ;;  %v317_v0 = vmul.f32 %v3130_v21, %v2920_v30  ;;  %v3151_v16 = vld [vmem:[%s2011_s7 + $0x108] sm:$0xff] }
  0xe7   : > { %v485_v24 = vadd.f32 %v481_v42, %v430_v2  ;;  %v372_v6 = vmul.f32 %v3135_v7, %v2934_v63  ;;  %v1145_v1 = vmul.f32 %v2820_v51, %v1082_v28  ;;  %v1085_v49 = vmul.f32 %v3141_v50, %v3103_v37  ;;  %3896 = vst [vmem:[#allocation47_spill] sm:$0xff] %v3146_v23  ;;  %v3161_v50 = vld [vmem:[%s2011_s7 + $0x128] sm:$0xff] }
  0xe8   : > { %v924_v43 = vadd.f32 %v920_v25, %v869_v5  ;;  %v646_v42 = vmul.f32 %v3146_v23, %v2981_v54  ;;  %3897 = vst [vmem:[#allocation49_spill] sm:$0xff] %v3151_v16  ;;  %v701_v51 = vmul.f32 %v3151_v16, %v3008_v14  ;;  %v321_v53 = vadd.f32 %v317_v0, %v270_v62  ;;  %v3156_v25 = vld [vmem:[%s2011_s7 + $0x70] sm:$0xff]  ;;  %v3171_v16 = vld [vmem:[%s2011_s7 + $0x168] sm:$0xff] }
  0xe9   : > { %v540_v32 = vadd.f32 %v536_v38, %v485_v24  ;;  %3898 = vst [vmem:[#allocation52_spill] sm:$0xff] %v3156_v25  ;;  %v427_v2 = vmul.f32 %v3156_v25, %v2937_v33  ;;  %v1149_v28 = vmax.f32 %v1145_v1, 0.0  ;;  %3899 = vst [vmem:[#allocation54_spill] sm:$0xff] %v3161_v50  ;;  %v756_v38 = vmul.f32 %v3161_v50, %v3014_v57  ;;  %v3166_v24 = vld [vmem:[%s2011_s7 + $0x148] sm:$0xff] }
  0xea   : > { %v979_v5 = vadd.f32 %v975_v35, %v924_v43  ;;  %3900 = vst [vmem:[#allocation55_spill] sm:$0xff] %v3166_v24  ;;  %v811_v62 = vmul.f32 %v3166_v24, %v3035_v34  ;;  %3901 = vst [vmem:[#allocation16_spill] sm:$0xff] %v3171_v16  ;;  %v3175_v1 = vmul.f32 %v3171_v16, %v3042_v15  ;;  %v3178_v43 = vld [vmem:[%s2011_s7 + $0x90] sm:$0xff]  ;;  %v3183_v24 = vld [vmem:[%s2011_s7 + $0x188] sm:$0xff] }
  0xeb   : > { %v595_v0 = vadd.f32 %v591_v29, %v540_v32  ;;  %v376_v35 = vadd.f32 %v372_v6, %v321_v53  ;;  %3902 = vst [vmem:[#allocation17_spill] sm:$0xff] %v3178_v43  ;;  %v482_v50 = vmul.f32 %v3178_v43, %v2940_v61  ;;  %v1153_v25 = vmin.f32 %v1149_v28, 1.0  ;;  %3903 = vst [vmem:[#allocation18_spill] sm:$0xff] %v3183_v24  ;;  %v3190_v32 = vld [vmem:[%s2011_s7 + $0x1a8] sm:$0xff]  ;;  %v3212_v43 = vld [vmem:[%s2011_s7 + $0x18] sm:$0xff] }
  0xec   : > { %v1034_v23 = vadd.f32 %v1030_v52, %v979_v5  ;;  %v3187_v29 = vmul.f32 %v3183_v24, %v3046_v40  ;;  %3904 = vst [vmem:[#allocation19_spill] sm:$0xff] %v3190_v32  ;;  %v3194_v6 = vmul.f32 %v3190_v32, %v3072_v8  ;;  %v3197_v16 = vld [vmem:[%s2011_s7 + $0x1c8] sm:$0xff]  ;;  %v3204_v5 = vld [vmem:[%s2011_s7 + $0xb0] sm:$0xff]  ;;  %3907 = vst [vmem:[#allocation15_spill] sm:$0xff] %v3212_v43 }
  0xed   : > { %v650_v53 = vadd.f32 %v646_v42, %v595_v0  ;;  %3905 = vst [vmem:[#allocation20_spill] sm:$0xff] %v3197_v16  ;;  %v3201_v52 = vmul.f32 %v3197_v16, %v3090_v59  ;;  %v431_v28 = vadd.f32 %v427_v2, %v376_v35  ;;  %3906 = vst [vmem:[#allocation14_spill] sm:$0xff] %v3204_v5  ;;  %v3217_v0 = vld [vmem:[%s2011_s7 + $0x38] sm:$0xff] }
  0xee   : > { %v537_v24 = vmul.f32 %v3204_v5, %v2960_v11  ;;  %1489 = vst [vmem:[%s2501_s21 + $0x58] sm:$0xff] %v1153_v25  ;;  %v1089_v32 = vadd.f32 %v1085_v49, %v1034_v23  ;;  %v271_v42 = vmul.f32 %v3212_v43, %v2917_v18  ;;  %3908 = vst [vmem:[#allocation23_spill] sm:$0xff] %v3217_v0  ;;  %v3222_v35 = vld [vmem:[%s2011_s7 + $0x58] sm:$0xff]  ;;  %v3231_v23 = vld [vmem:[%s2011_s7 + $0x1e8] sm:$0xff] }
  0xef   : > { %v318_v2 = vmul.f32 %v3217_v0, %v2920_v30  ;;  %3909 = vst [vmem:[#allocation24_spill] sm:$0xff] %v3222_v35  ;;  %v373_v16 = vmul.f32 %v3222_v35, %v2934_v63  ;;  %v705_v49 = vadd.f32 %v701_v51, %v650_v53  ;;  %3910 = vst [vmem:[#allocation21_spill] sm:$0xff] %v3231_v23  ;;  %v3238_v30 = vld [vmem:[%s2011_s7 + $0xd0] sm:$0xff]  ;;  %v3251_v35 = vld [vmem:[%s2011_s7 + $0x78] sm:$0xff] }
  0xf0   : > { %v3235_v18 = vmul.f32 %v3231_v23, %v3103_v37  ;;  %v486_v25 = vadd.f32 %v482_v50, %v431_v28  ;;  %3911 = vst [vmem:[#allocation22_spill] sm:$0xff] %v3238_v30  ;;  %v592_v0 = vmul.f32 %v3238_v30, %v2976_v10  ;;  %v1161_v63 = vmul.f32 %v3106_v44, %v1089_v32  ;;  %v3246_v51 = vld [vmem:[%s2011_s7 + $0xf0] sm:$0xff] }
  0xf1   : > { %3912 = vst [vmem:[#allocation25_spill] sm:$0xff] %v3246_v51  ;;  %v647_v53 = vmul.f32 %v3246_v51, %v2981_v54  ;;  %v322_v23 = vadd.f32 %v318_v2, %v271_v42  ;;  %3913 = vst [vmem:[#allocation27_spill] sm:$0xff] %v3251_v35  ;;  %v428_v50 = vmul.f32 %v3251_v35, %v2937_v33  ;;  %v3260_v30 = vld [vmem:[%s2011_s7 + $0x110] sm:$0xff] }
  0xf2   : > { %v760_v28 = vadd.f32 %v756_v38, %v705_v49  ;;  %v541_v32 = vadd.f32 %v537_v24, %v486_v25  ;;  %3914 = vst [vmem:[#allocation26_spill] sm:$0xff] %v3260_v30  ;;  %v702_v51 = vmul.f32 %v3260_v30, %v3008_v14  ;;  %v3265_v43 = vld [vmem:[%s2011_s7 + $0x130] sm:$0xff]  ;;  %v1165_v33 = vmax.f32 %v1161_v63, 0.0  ;;  %v3275_v24 = vld [vmem:[%s2011_s7 + $0x98] sm:$0xff] }
  0xf3   : > { %3915 = vst [vmem:[#allocation28_spill] sm:$0xff] %v3265_v43  ;;  %v757_v42 = vmul.f32 %v3265_v43, %v3014_v57  ;;  %v3270_v2 = vld [vmem:[%s2011_s7 + $0x150] sm:$0xff]  ;;  %v377_v49 = vadd.f32 %v373_v16, %v322_v23  ;;  %v483_v25 = vmul.f32 %v3275_v24, %v2940_v61  ;;  %v3292_v61 = vld [vmem:[%s2011_s7 + $0xb8] sm:$0xff] }
  0xf4   : > { %3916 = vst [vmem:[#allocation29_spill] sm:$0xff] %v3270_v2  ;;  %v812_v38 = vmul.f32 %v3270_v2, %v3035_v34  ;;  %v815_v30 = vadd.f32 %v811_v62, %v760_v28  ;;  %v596_v35 = vadd.f32 %v592_v0, %v541_v32  ;;  %v3280_v5 = vld [vmem:[%s2011_s7 + $0x170] sm:$0xff]  ;;  %v1169_v23 = vmin.f32 %v1165_v33, 1.0  ;;  %v3297_v0 = vld [vmem:[%s2011_s7 + $0xd8] sm:$0xff] }
  0xf5   : > { %3917 = vst [vmem:[#allocation32_spill] sm:$0xff] %v3280_v5  ;;  %v867_v63 = vmul.f32 %v3280_v5, %v3042_v15  ;;  %v3285_v43 = vld [vmem:[%s2011_s7 + $0x190] sm:$0xff]  ;;  %v432_v2 = vadd.f32 %v428_v50, %v377_v49  ;;  %v538_v62 = vmul.f32 %v3292_v61, %v2960_v11  ;;  %v593_v28 = vmul.f32 %v3297_v0, %v2976_v10  ;;  %v3305_v33 = vld [vmem:[%s2011_s7 + $0xf8] sm:$0xff] }
  0xf6   : > { %3918 = vst [vmem:[#allocation33_spill] sm:$0xff] %v3285_v43  ;;  %v3289_v16 = vmul.f32 %v3285_v43, %v3046_v40  ;;  %v870_v32 = vadd.f32 %v3175_v1, %v815_v30  ;;  %v651_v43 = vadd.f32 %v647_v53, %v596_v35  ;;  %3919 = vst [vmem:[#allocation30_spill] sm:$0xff] %v3305_v33  ;;  %v3310_v49 = vstv %s3208_s18  ;;  %s3429_s18 = sld [smem:[#allocation2 + $0x4e]] }
  0xf7   : > { %v648_v50 = vmul.f32 %v3305_v33, %v2981_v54  ;;  %1491 = vst [vmem:[%s2501_s21 + $0x60] sm:$0xff] %v1169_v23  ;;  %v487_v11 = vadd.f32 %v483_v25, %v432_v2  ;;  %v274_v10 = vmul.f32 %v2924_v45, %v3310_v49  ;;  %v3318_v5 = vstv %s3226_s25  ;;  %v3365_v33 = vld [vmem:[%s2011_s7 + $0x138] sm:$0xff]  ;;  %s3437_s25 = sld [smem:[#allocation2 + $0x4f]] }
  0xf8   : > { %v3321_v1 = vstv %s3228_s26  ;;  %v925_v35 = vadd.f32 %v3187_v29, %v870_v32  ;;  %v706_v30 = vadd.f32 %v702_v51, %v651_v43  ;;  %v325_v54 = vmul.f32 %v2929_v22, %v3318_v5  ;;  %v3347_v51 = vld [vmem:[%s2011_s7 + $0x1b0] sm:$0xff]  ;;  %s1505_s26 = smul.u32 2560, %s1795_s15  ;;  %s1810_s15 = smov [#allocation9]  }
  0xf9   : > { %v380_v53 = vmul.f32 %v2945_v19, %v3321_v1  ;;  %v542_v23 = vadd.f32 %v538_v62, %v487_v11  ;;  %v3329_v2 = vstv %s3242_s6  ;;  %v3332_v45 = vstv %s3255_s10  ;;  %3920 = vst [vmem:[#allocation31_spill] sm:$0xff] %v3347_v51  ;;  %v3352_v32 = vld [vmem:[%s2011_s7 + $0x1d0] sm:$0xff]  ;;  %s1214_s6 = sshll.u32 %s2501_s21, 4  ;;  %s3586_s6 = int_to_ptr.vmem [resolvable:$true] %s1214_s6 }
  0xfa   : > { %v3335_v25 = vstv %s3257_s20  ;;  %v980_v43 = vadd.f32 %v3194_v6, %v925_v35  ;;  %v761_v29 = vadd.f32 %v757_v42, %v706_v30  ;;  %v329_v22 = vadd.f32 %v325_v54, %v274_v10  ;;  %3921 = vst [vmem:[#allocation36_spill] sm:$0xff] %v3352_v32  ;;  %v3357_v42 = vld [vmem:[%s2011_s7 + $0x118] sm:$0xff] }
  0xfb   : > { %v435_v19 = vmul.f32 %v2955_v55, %v3329_v2  ;;  %v977_v62 = vmul.f32 %v3347_v51, %v3072_v8  ;;  %v1032_v11 = vmul.f32 %v3352_v32, %v3090_v59  ;;  %v597_v6 = vadd.f32 %v593_v28, %v542_v23 }
  0xfc   : > { %v703_v55 = vmul.f32 %v3357_v42, %v3008_v14  ;;  %v1035_v10 = vadd.f32 %v3201_v52, %v980_v43  ;;  %v816_v35 = vadd.f32 %v812_v38, %v761_v29  ;;  %v384_v30 = vadd.f32 %v380_v53, %v329_v22  ;;  %v3386_v43 = vld [vmem:[%s2011_s7 + $0x158] sm:$0xff] }
  0xfd   : > { %v490_v54 = vmul.f32 %v2963_v41, %v3332_v45  ;;  %v652_v51 = vadd.f32 %v648_v50, %v597_v6  ;;  %v758_v28 = vmul.f32 %v3365_v33, %v3014_v57  ;;  %v545_v23 = vmul.f32 %v2971_v46, %v3335_v25  ;;  %v3381_v41 = vld [vmem:[%s2011_s7 + $0x1f0] sm:$0xff] }
  0xfe   : > { %v3372_v32 = vstv %s3301_s19  ;;  %v1090_v14 = vadd.f32 %v3235_v18, %v1035_v10  ;;  %v871_v52 = vadd.f32 %v867_v63, %v816_v35  ;;  %v439_v38 = vadd.f32 %v435_v19, %v384_v30  ;;  %3922 = vst [vmem:[#allocation34_spill] sm:$0xff] %v3381_v41  ;;  %v3391_v18 = vld [vmem:[%s2011_s7 + $0x178] sm:$0xff]  ;;  %s3584_s19 = scalar_lea.hbm %s3639_s3, %s1505_s26 }
  0xff   : > { %v3376_v53 = vstv %s3312_s4  ;;  %v1087_v57 = vmul.f32 %v3381_v41, %v3103_v37  ;;  %v707_v50 = vadd.f32 %v703_v55, %v652_v51  ;;  %v813_v46 = vmul.f32 %v3386_v43, %v3035_v34  ;;  %s1198_s4 = scalar_lea.sflag [#allocation4], %s2007_s28 }
 0x100   : > { %v868_v63 = vmul.f32 %v3391_v18, %v3042_v15  ;;  %v1162_v29 = vmul.f32 %v3106_v44, %v1090_v14  ;;  %v926_v22 = vadd.f32 %v3289_v16, %v871_v52  ;;  %v494_v19 = vadd.f32 %v490_v54, %v439_v38  ;;  %v3415_v16 = vld [vmem:[%s2011_s7 + $0x198] sm:$0xff] }
 0x101   : > { %v600_v34 = vmul.f32 %v2995_v31, %v3372_v32  ;;  %v762_v51 = vadd.f32 %v758_v28, %v707_v50  ;;  %v655_v6 = vmul.f32 %v3003_v9, %v3376_v53  ;;  %v3406_v15 = vstv %s3337_s27  ;;  %v3420_v54 = vld [vmem:[%s2011_s7 + $0x1b8] sm:$0xff]  ;;  %s1713_s27 = scalar_lea.vmem %s3586_s6, 2560 }
 0x102   : > { %v3409_v55 = vstv %s3339_s5  ;;  %v1166_v10 = vmax.f32 %v1162_v29, 0.0  ;;  %v981_v35 = vadd.f32 %v977_v62, %v926_v22  ;;  %v549_v30 = vadd.f32 %v545_v23, %v494_v19  ;;  %v3425_v28 = vld [vmem:[%s2011_s7 + $0x1d8] sm:$0xff]  ;;  %p1714_p8 = scmp.ne.s32.totalorder %s3586_s6, %s1713_s27  ;;  %s1717_s5 = sshll.u32 %s1810_s15, 4  ;;  %s1718_s5 = int_to_ptr.vmem [resolvable:$false] %s1717_s5 }
 0x103   : > { %v3412_v41 = vstv %s3344_s22  ;;  %v817_v14 = vadd.f32 %v813_v46, %v762_v51  ;;  %v923_v31 = vmul.f32 %v3415_v16, %v3046_v40  ;;  %v978_v9 = vmul.f32 %v3420_v54, %v3072_v8  ;;  %s1719_s22 = scalar_lea.vmem %s1718_s5, 5120  ;;  %p1720_p0 = scmp.lt.s32.totalorder %s3586_s6, %s1718_s5 }
 0x104   : > { %v1033_v62 = vmul.f32 %v3425_v28, %v3090_v59  ;;  %v1170_v23 = vmin.f32 %v1166_v10, 1.0  ;;  %v1036_v52 = vadd.f32 %v1032_v11, %v981_v35  ;;  %v604_v38 = vadd.f32 %v600_v34, %v549_v30  ;;  %v3459_v10 = vld [vmem:[%s2011_s7 + $0x1f8] sm:$0xff]  ;;  %s1495_s7 = sld [smem:[#allocation6 + $0x4]]  ;;  %p1715_p13 = pnand %p1714_p8, %p3951_p9 }
 0x105   : > { %v710_v40 = vmul.f32 %v3023_v3, %v3406_v15  ;;  %v872_v50 = vadd.f32 %v868_v63, %v817_v14  ;;  %v765_v8 = vmul.f32 %v3030_v26, %v3409_v55  ;;  %v820_v46 = vmul.f32 %v3065_v39, %v3412_v41  ;;  %p1721_p11 = scmp.lt.s32.totalorder %s1719_s22, %s1713_s27 }
 0x106   : > { %v275_v59 = vmul.f32 %v3049_v56, %v3310_v49  ;;  %1492 = vst [vmem:[%s2501_s21 + $0x68] sm:$0xff] %v1170_v23  ;;  %v1091_v29 = vadd.f32 %v1087_v57, %v1036_v52  ;;  %v659_v11 = vadd.f32 %v655_v6, %v604_v38  ;;  %v3443_v22 = vstv %s3378_s8  ;;  %p1716_p4 = pneg %p1715_p13 }
 0x107   : > { %v326_v3 = vmul.f32 %v3054_v17, %v3318_v5  ;;  %v927_v63 = vadd.f32 %v923_v31, %v872_v50  ;;  %v3448_v19 = vstv %s3395_s30  ;;  %v3451_v26 = vstv %s3397_s11  ;;  %p1722_p6 = por %p1721_p11, %p1720_p0 }
 0x108   : > { %v381_v39 = vmul.f32 %v3059_v12, %v3321_v1  ;;  %v1163_v34 = vmul.f32 %v3106_v44, %v1091_v29  ;;  %v714_v56 = vadd.f32 %v710_v40, %v659_v11  ;;  %v436_v57 = vmul.f32 %v3075_v20, %v3329_v2  ;;  %v3923_v11 = vld [vmem:[#allocation47_spill] sm:$0xff] }
 0x109   : > { %v330_v51 = vadd.f32 %v326_v3, %v275_v59  ;;  %v982_v6 = vadd.f32 %v978_v9, %v927_v63  ;;  %v1088_v17 = vmul.f32 %v3459_v10, %v3103_v37  ;;  %v875_v35 = vmul.f32 %v3080_v58, %v3443_v22  ;;  %p1723_p2 = pnand %p1722_p6, %p1716_p4 }
 0x10a   : > { %v1167_v30 = vmax.f32 %v1163_v34, 0.0  ;;  %v769_v12 = vadd.f32 %v765_v8, %v714_v56  ;;  %v491_v31 = vmul.f32 %v3093_v36, %v3332_v45  ;;  %v930_v20 = vmul.f32 %v3085_v47, %v3448_v19 }
 0x10b   : > { %v385_v14 = vadd.f32 %v381_v39, %v330_v51  ;;  %v1037_v23 = vadd.f32 %v1033_v62, %v982_v6  ;;  %v985_v9 = vmul.f32 %v3098_v27, %v3451_v26  ;;  %v3472_v52 = vstv %s3429_s18  ;;  %v3924_v39 = vld [vmem:[#allocation52_spill] sm:$0xff] }
 0x10c   : > { %v1171_v37 = vmin.f32 %v1167_v30, 1.0  ;;  %v824_v38 = vadd.f32 %v820_v46, %v769_v12  ;;  %v546_v40 = vmul.f32 %v3109_v48, %v3335_v25  ;;  %v3477_v8 = vstv %s3437_s25 }
 0x10d   : > { %v440_v58 = vadd.f32 %v436_v57, %v385_v14  ;;  %v1092_v50 = vadd.f32 %v1088_v17, %v1037_v23  ;;  %v601_v36 = vmul.f32 %v3125_v4, %v3372_v32  ;;  %v276_v47 = vmul.f32 %v3120_v60, %v3310_v49  ;;  %v3927_v17 = vld [vmem:[#allocation17_spill] sm:$0xff]  ;;  %v3928_v14 = vld [vmem:[#allocation54_spill] sm:$0xff] }
 0x10e   : > { %1493 = vst [vmem:[%s2501_s21 + $0x70] sm:$0xff] %v1171_v37  ;;  %v879_v27 = vadd.f32 %v875_v35, %v824_v38  ;;  %v327_v59 = vmul.f32 %v3130_v21, %v3318_v5  ;;  %v382_v46 = vmul.f32 %v3135_v7, %v3321_v1  ;;  %v1040_v29 = vmul.f32 %v3115_v13, %v3472_v52  ;;  %v3925_v21 = vld [vmem:[#allocation38_spill] sm:$0xff]  ;;  %v3926_v7 = vld [vmem:[#allocation49_spill] sm:$0xff] }
 0x10f   : > { %v495_v62 = vadd.f32 %v491_v31, %v440_v58  ;;  %v1164_v48 = vmul.f32 %v3106_v44, %v1092_v50  ;;  %v656_v4 = vmul.f32 %v3923_v11, %v3376_v53  ;;  %v437_v34 = vmul.f32 %v3924_v39, %v3329_v2  ;;  %v3929_v38 = vld [vmem:[#allocation14_spill] sm:$0xff]  ;;  %v3931_v50 = vld [vmem:[#allocation15_spill] sm:$0xff] }
 0x110   : > { %v934_v3 = vadd.f32 %v930_v20, %v879_v27  ;;  %v331_v60 = vadd.f32 %v327_v59, %v276_v47  ;;  %v1095_v51 = vmul.f32 %v3925_v21, %v3477_v8  ;;  %v711_v44 = vmul.f32 %v3926_v7, %v3406_v15  ;;  %v3932_v47 = vld [vmem:[#allocation23_spill] sm:$0xff]  ;;  %v3934_v11 = vld [vmem:[#allocation22_spill] sm:$0xff]  ;;  %v3937_v21 = vld [vmem:[#allocation25_spill] sm:$0xff] }
 0x111   : > { %v550_v63 = vadd.f32 %v546_v40, %v495_v62  ;;  %v1168_v56 = vmax.f32 %v1164_v48, 0.0  ;;  %v492_v35 = vmul.f32 %v3927_v17, %v3332_v45  ;;  %v3501_v12 = vstv %s1495_s7  ;;  %v3933_v62 = vld [vmem:[#allocation24_spill] sm:$0xff]  ;;  %v3936_v39 = vld [vmem:[#allocation27_spill] sm:$0xff] }
 0x112   : > { %v989_v57 = vadd.f32 %v985_v9, %v934_v3  ;;  %v386_v13 = vadd.f32 %v382_v46, %v331_v60  ;;  %v766_v31 = vmul.f32 %v3928_v14, %v3409_v55  ;;  %v547_v58 = vmul.f32 %v3929_v38, %v3335_v25  ;;  %v3930_v9 = vld [vmem:[#allocation55_spill] sm:$0xff]  ;;  %v3935_v3 = vld [vmem:[#allocation16_spill] sm:$0xff] }
 0x113   : > { %v605_v6 = vadd.f32 %v601_v36, %v550_v63  ;;  %v1172_v30 = vmin.f32 %v1168_v56, 1.0  ;;  %v821_v40 = vmul.f32 %v3930_v9, %v3412_v41  ;;  %v277_v36 = vmul.f32 %v3931_v50, %v3310_v49  ;;  %v3942_v50 = vld [vmem:[#allocation20_spill] sm:$0xff] }
 0x114   : > { %v1044_v23 = vadd.f32 %v1040_v29, %v989_v57  ;;  %v441_v37 = vadd.f32 %v437_v34, %v386_v13  ;;  %v328_v27 = vmul.f32 %v3932_v47, %v3318_v5  ;;  %v383_v59 = vmul.f32 %v3933_v62, %v3321_v1 }
 0x115   : > { %v660_v20 = vadd.f32 %v656_v4, %v605_v6  ;;  %1494 = vst [vmem:[%s2501_s21 + $0x78] sm:$0xff] %v1172_v30  ;;  %v602_v4 = vmul.f32 %v3934_v11, %v3372_v32  ;;  %v876_v63 = vmul.f32 %v3935_v3, %v3443_v22  ;;  %v438_v34 = vmul.f32 %v3936_v39, %v3329_v2  ;;  %v3939_v2 = vld [vmem:[#allocation26_spill] sm:$0xff]  ;;  %v3940_v30 = vld [vmem:[#allocation19_spill] sm:$0xff]  ;;  %v3947_v39 = vld [vmem:[#allocation33_spill] sm:$0xff] }
 0x116   : > { %v1099_v46 = vadd.f32 %v1095_v51, %v1044_v23  ;;  %v496_v29 = vadd.f32 %v492_v35, %v441_v37  ;;  %v332_v60 = vadd.f32 %v328_v27, %v277_v36  ;;  %v657_v1 = vmul.f32 %v3937_v21, %v3376_v53  ;;  %v3938_v51 = vld [vmem:[#allocation18_spill] sm:$0xff]  ;;  %v3943_v27 = vld [vmem:[#allocation29_spill] sm:$0xff]  ;;  %v3948_v21 = vld [vmem:[#allocation31_spill] sm:$0xff] }
 0x117   : > { %v715_v48 = vadd.f32 %v711_v44, %v660_v20  ;;  %v931_v7 = vmul.f32 %v3938_v51, %v3448_v19  ;;  %v493_v57 = vmul.f32 %v3275_v24, %v3332_v45  ;;  %v712_v35 = vmul.f32 %v3939_v2, %v3406_v15 }
 0x118   : > { %v1180_v49 = vmul.f32 %v3501_v12, %v1099_v46  ;;  %v551_v5 = vadd.f32 %v547_v58, %v496_v29  ;;  %v387_v44 = vadd.f32 %v383_v59, %v332_v60  ;;  %v986_v14 = vmul.f32 %v3940_v30, %v3451_v26  ;;  %v3941_v58 = vld [vmem:[#allocation28_spill] sm:$0xff] }
 0x119   : > { %v770_v56 = vadd.f32 %v766_v31, %v715_v48  ;;  %v548_v23 = vmul.f32 %v3292_v61, %v3335_v25  ;;  %v767_v9 = vmul.f32 %v3941_v58, %v3409_v55  ;;  %v603_v45 = vmul.f32 %v3297_v0, %v3372_v32  ;;  %v3944_v25 = vld [vmem:[#allocation30_spill] sm:$0xff]  ;;  %v3945_v48 = vld [vmem:[#allocation21_spill] sm:$0xff]  ;;  %v3946_v0 = vld [vmem:[#allocation32_spill] sm:$0xff] }
 0x11a   : > { %v1184_v6 = vmax.f32 %v1180_v49, 0.0  ;;  %v606_v17 = vadd.f32 %v602_v4, %v551_v5  ;;  %v442_v31 = vadd.f32 %v438_v34, %v387_v44  ;;  %v1041_v36 = vmul.f32 %v3942_v50, %v3472_v52  ;;  %v3949_v44 = vld [vmem:[#allocation36_spill] sm:$0xff] }
 0x11b   : > { %v825_v13 = vadd.f32 %v821_v40, %v770_v56  ;;  %v822_v62 = vmul.f32 %v3943_v27, %v3412_v41  ;;  %v658_v59 = vmul.f32 %v3944_v25, %v3376_v53  ;;  %v1096_v29 = vmul.f32 %v3945_v48, %v3477_v8 }
 0x11c   : > { %v1188_v20 = vmin.f32 %v1184_v6, 1.0  ;;  %v661_v38 = vadd.f32 %v657_v1, %v606_v17  ;;  %v497_v24 = vadd.f32 %v493_v57, %v442_v31  ;;  %v877_v32 = vmul.f32 %v3946_v0, %v3443_v22  ;;  %v3950_v17 = vld [vmem:[#allocation34_spill] sm:$0xff] }
 0x11d   : > { %v880_v37 = vadd.f32 %v876_v63, %v825_v13  ;;  %v713_v3 = vmul.f32 %v3357_v42, %v3406_v15  ;;  %v932_v34 = vmul.f32 %v3947_v39, %v3448_v19  ;;  %v768_v53 = vmul.f32 %v3365_v33, %v3409_v55 }
 0x11e   : > { %1496 = vst [vmem:[%s2501_s21 + $0x80] sm:$0xff] %v1188_v20  ;;  %v716_v47 = vadd.f32 %v712_v35, %v661_v38  ;;  %v552_v61 = vadd.f32 %v548_v23, %v497_v24  ;;  %v987_v1 = vmul.f32 %v3948_v21, %v3451_v26  ;;  %v1042_v57 = vmul.f32 %v3949_v44, %v3472_v52 }
 0x11f   : > { %v935_v40 = vadd.f32 %v931_v7, %v880_v37  ;;  %v823_v7 = vmul.f32 %v3386_v43, %v3412_v41  ;;  %v878_v33 = vmul.f32 %v3391_v18, %v3443_v22  ;;  %v1097_v2 = vmul.f32 %v3950_v17, %v3477_v8 }
 0x120   : > { %v771_v11 = vadd.f32 %v767_v9, %v716_v47  ;;  %v607_v4 = vadd.f32 %v603_v45, %v552_v61  ;;  %v933_v30 = vmul.f32 %v3415_v16, %v3448_v19  ;;  %v988_v31 = vmul.f32 %v3420_v54, %v3451_v26 }
 0x121   : > { %v990_v46 = vadd.f32 %v986_v14, %v935_v40  ;;  %v1043_v23 = vmul.f32 %v3425_v28, %v3472_v52  ;;  %v1098_v19 = vmul.f32 %v3459_v10, %v3477_v8 }
 0x122   : > { %v826_v60 = vadd.f32 %v822_v62, %v771_v11  ;;  %v662_v49 = vadd.f32 %v658_v59, %v607_v4 }
 0x123   : > { %v1045_v63 = vadd.f32 %v1041_v36, %v990_v46 }
 0x124   : > { %v881_v5 = vadd.f32 %v877_v32, %v826_v60  ;;  %v717_v51 = vadd.f32 %v713_v3, %v662_v49 }
 0x125   : > { %v1100_v56 = vadd.f32 %v1096_v29, %v1045_v63 }
 0x126   : > { %v936_v15 = vadd.f32 %v932_v34, %v881_v5  ;;  %v772_v6 = vadd.f32 %v768_v53, %v717_v51 }
 0x127   : > { %v1181_v42 = vmul.f32 %v3501_v12, %v1100_v56 }
 0x128   : > { %v991_v13 = vadd.f32 %v987_v1, %v936_v15  ;;  %v827_v35 = vadd.f32 %v823_v7, %v772_v6 }
 0x129   : > { %v1185_v55 = vmax.f32 %v1181_v42, 0.0 }
 0x12a   : > { %v1046_v43 = vadd.f32 %v1042_v57, %v991_v13  ;;  %v882_v14 = vadd.f32 %v878_v33, %v827_v35 }
 0x12b   : > { %v1189_v41 = vmin.f32 %v1185_v55, 1.0 }
 0x12c   : > { %v1101_v18 = vadd.f32 %v1097_v2, %v1046_v43  ;;  %v937_v22 = vadd.f32 %v933_v30, %v882_v14 }
 0x12d   : > { %1497 = vst [vmem:[%s2501_s21 + $0x88] sm:$0xff] %v1189_v41 }
 0x12e   : > { %v1182_v20 = vmul.f32 %v3501_v12, %v1101_v18  ;;  %v992_v16 = vadd.f32 %v988_v31, %v937_v22 }
 0x130   : > { %v1186_v37 = vmax.f32 %v1182_v20, 0.0  ;;  %v1047_v38 = vadd.f32 %v1043_v23, %v992_v16 }
 0x132   : > { %v1190_v58 = vmin.f32 %v1186_v37, 1.0  ;;  %v1102_v9 = vadd.f32 %v1098_v19, %v1047_v38 }
 0x134   : > { %1498 = vst [vmem:[%s2501_s21 + $0x90] sm:$0xff] %v1190_v58  ;;  %v1183_v54 = vmul.f32 %v3501_v12, %v1102_v9 }
 0x136   : > { %v1187_v26 = vmax.f32 %v1183_v54, 0.0 }
 0x138   : > { %v1191_v28 = vmin.f32 %v1187_v26, 1.0 }
 0x13a   : > { %1499 = vst [vmem:[%s2501_s21 + $0x98] sm:$0xff] %v1191_v28 }
 0x13b   : > { %1726 = shalt.err (!%p1723_p2)
}
 0x13c   : > { %s1727_s21 = scalar_lea.hbm %s3584_s19, 2560  ;;  %s1731_s11 = scalar_lea.hbm %s3639_s3, 5120 }
 0x13d   : > { %p1728_p1 = scmp.ne.s32.totalorder %s3584_s19, %s1727_s21  ;;  %p1732_p10 = scmp.lt.u32.totalorder %s3584_s19, %s3639_s3 }
 0x13e   : > { %p1733_p12 = scmp.lt.u32.totalorder %s1731_s11, %s1727_s21  ;;  %p1735_p8 = scmp.lt.u32.totalorder %s1727_s21, %s3584_s19 }
 0x13f   : > { %p1729_p5 = pnand %p1728_p1, %p3951_p9 }
 0x140   : > { %p1734_p7 = por %p1733_p12, %p1732_p10 }
 0x141   : > { %p1730_p3 = pneg %p1729_p5 }
 0x142   : > { %p1736_p13 = por %p1735_p8, %p1734_p7 }
 0x144   : > { %p1737_p4 = pnand %p1736_p13, %p1730_p3 }
 0x146   : > { %1740 = shalt.err (!%p1737_p4)
}
 0x147   : > { %s1811_s7 = smov 128   ;;  %s1812_s26 = smov 8  }
 0x148   : > { %1516 = dma.vmem_to_hbm [thread:$0]  (%p3951_p9), %s3586_s6, 2560, %s3584_s19, %s1198_s4, %s1811_s7, %s1811_s7, %s1812_s26  }
 0x149 PF: > { %s1229_s10 = sand.u32 1, %s1783_s12   ;;  %p3952_p0 = scmp.ne.s32.totalorder %s3761_s24, 0 }
 0x14a   : > { %p3953_p11 = scmp.ge.s32.totalorder %s1803_s17, 2  ;;  %s1230_s20 = scalar_lea.sflag [#allocation4], %s1229_s10 }
 0x14c   : > { %p1530_p6 = pnand %p3953_p11, %p3952_p0 }
 0x14e   : > { %1778 = dma.done.wait (!%p1530_p6), %s1230_s20, 2560  }
 0x14f   : > { %1780 = vsyncadd (!%p1530_p6), %s1230_s20, 4294964736  ;;  %s21_s17 = sadd.s32 1, %s1803_s17   ;;  %s3954_s12 = smov %s1787_s13 }
 0x150   : > { %p18_p2 = scmp.ge.s32.totalorder %s21_s17, 4   ;;  %s3955_s13 = smov %s1791_s14 }
 0x151   : > { %s3956_s14 = smov %s1962_s9  ;;  %s3957_s15 = smov %s1799_s16 }
 0x152   : > { %s3958_s16 = smov %s3960_s29  ;;  %20 = sbr.rel (!%p18_p2) target bundleno = 8 (0x8), region = 105 }
 0x159   :  { %1235 = vsyncpa [#allocation3], 1 }
 0x15a   :  { %1237 = vsyncpa [#allocation3 + $0x1], 1 }
 0x15b   :  { %1238 = vsyncpa [#allocation4], 1 }
 0x15c   :  { %1240 = vsyncpa [#allocation4 + $0x1], 1 }
 0x15d   :  { %1241 = vsyncpa [#allocation5], 1 }
 0x15e   :  { %1243 = vsyncpa [#allocation5 + $0x1], 1 }
 0x15f   :  { %1244 = vsyncpa [#allocation7], 1 }

// kernel: a_call__.3
= control target key start
LH: loop header
LB: loop body
LE: loop exit
PB: predicated region body
PF: predicated region fallthrough
CT: control target
= control target key end

     0   :  { %s4664_s0 = inlined_call_operand.hbm [shape: f32[5,32,128], index: 0, kind: input, shape index: {}]   ;;  %s4665_s1 = inlined_call_operand.hbm [shape: f32[5,512,128], index: 1, kind: input, shape index: {}]   ;;  %s4666_s2 = inlined_call_operand.hbm [shape: f32[2,5,128,512], index: 2, kind: input, shape index: {}]   ;;  %s4667_s3 = inlined_call_operand.hbm [shape: f32[2,5,32,128], index: 3, kind: output, shape index: {}]  }
   0x1   :  { %4698 = sst [smem:[#allocation27_spill]] %s4664_s0 }
   0x2   :  { %4699 = sst [smem:[#allocation28_spill]] %s4665_s1 }
   0x3   :  { %8 = vsyncpa [#allocation3], 0 }
   0x4   :  { %9 = vsyncpa [#allocation6], 0 }
   0x5   :  { %10 = vsyncpa [#allocation4], 0 }
   0x6   :  { %12 = vsyncpa [#allocation4 + $0x1], 0  ;;  %s3967_s12 = smov 0   ;;  %s3969_s13 = smov 0  }
   0x7   :  { %s3971_s14 = smov 0   ;;  %s3973_s15 = smov 0  }
   0x8   :  { %s3975_s16 = smov 0   ;;  %s3977_s17 = smov 0  }
   0x9   :  { %s3979_s18 = smov 0   ;;  %s3981_s19 = smov 0  }
   0xa LB: > { %4700 = sst [smem:[#allocation13_spill]] %s3906_s12  ;;  %s4008_s20 = sadd.s32 4294967295, %s3934_s19   ;;  %s3934_s19 = sphi %s3981_s19, %s18_s19   ;;  %s3930_s18 = sphi %s3979_s18, %s4752_s18   ;;  %s3926_s17 = sphi %s3977_s17, %s4751_s17   ;;  %s3922_s16 = sphi %s3975_s16, %s4750_s16   ;;  %s3918_s15 = sphi %s3973_s15, %s4749_s15   ;;  %s3914_s14 = sphi %s3971_s14, %s4748_s14   ;;  %s3910_s13 = sphi %s3969_s13, %s4747_s13   ;;  %s3906_s12 = sphi %s3967_s12, %s4746_s12  }
   0xb   : > { %s2536_s21 = sadd.s32 4294967294, %s3934_s19   ;;  %p88_p0 = scmp.ne.s32.totalorder %s3914_s14, %s3910_s13 }
   0xc   : > { %p89_p1 = scmp.eq.s32.totalorder %s3934_s19, 0  ;;  %p94_p2 = scmp.ne.s32.totalorder %s3910_s13, %s3906_s12 }
   0xd   : > { %p4668_p3 = scmp.eq.s32.totalorder %s4008_s20, 0  ;;  %p120_p4 = scmp.eq.s32.totalorder %s4008_s20, 9 }
   0xe   : > { %p4019_p5 = por %p89_p1, %p88_p0  ;;  %p126_p6 = scmp.eq.s32.totalorder %s2536_s21, 9 }
   0xf   : > { %p4025_p7 = por %p4668_p3, %p94_p2  ;;  %p4029_p8 = por %p120_p4, %p88_p0 }
  0x10   : > { %p4033_p9 = por %p126_p6, %p94_p2  ;;  %p2537_p10 = scmp.ge.s32.totalorder %s3934_s19, 1 }
  0x11   : > { %s4702_s24 = scalar_select %p4025_p7, 1, 0 }
  0x12   : > { %s4703_s25 = scalar_select %p4029_p8, 1, 0 }
  0x13   : > { %s4704_s26 = scalar_select %p4033_p9, 1, 0 }
  0x14   : > { %p133_p11 = scmp.lt.s32.totalorder %s3934_s19, 11  ;;  %s3936_s28 = smov [#allocation2]  }
  0x15   : > { %4705 = sst [smem:[#allocation14_spill]] %s4704_s26  ;;  %s145_s29 = sshll.u32 %s3936_s28, 4  ;;  %s4043_s29 = int_to_ptr.vmem [resolvable:$true] %s145_s29 }
  0x16   : > { %p4039_p12 = pnand %p2537_p10, %p133_p11  ;;  %p3665_p0 = scmp.lt.s32.totalorder %s3934_s19, 10 }
  0x17   : > { %s3937_s4 = smov [#allocation5]   ;;  %s4709_s0 = sld [smem:[#allocation27_spill]] }
  0x18   : > { %p3648_p13 = pneg %p4039_p12  ;;  %s158_s5 = sshll.u32 %s3937_s4, 4  ;;  %s4060_s5 = int_to_ptr.vmem [resolvable:$true] %s158_s5 }
  0x19   : > { %p4056_p2 = pnand %p3665_p0, %p4019_p5 }
  0x1a   : > { %p4050_p1 = pnand %p3648_p13, %p4668_p3 }
  0x1c   : > { %p3744_p6 = pneg %p4050_p1 }
  0x1d   : > { %s3742_s9 = scalar_lea.hbm %s4709_s0, 2560 }
  0x1e   : > { %p3743_p4 = scmp.ne.s32.totalorder %s4709_s0, %s3742_s9  ;;  %p3749_p5 = scmp.lt.u32.totalorder %s3742_s9, %s4709_s0 }
  0x20   : > { %p3745_p10 = pnand %p3744_p6, %p3743_p4 }
  0x22   : > { %p3746_p11 = pneg %p3745_p10 }
  0x24   : > { %p3751_p13 = pnand %p3749_p5, %p3746_p11 }
  0x26   : > { %3754 = shalt.err (!%p3751_p13)
}
  0x27   : > { %s3755_s28 = scalar_lea.vmem %s4043_s29, 2560  ;;  %p3763_p8 = scmp.lt.s32.totalorder %s4043_s29, %s4043_s29 }
  0x28   : > { %p3756_p0 = scmp.ne.s32.totalorder %s4043_s29, %s3755_s28  ;;  %p3764_p4 = scmp.lt.s32.totalorder %s3755_s28, %s3755_s28 }
  0x2a   : > { %p3758_p3 = pnand %p3756_p0, %p3744_p6  ;;  %p3765_p10 = por %p3764_p4, %p3763_p8 }
  0x2c   : > { %p3759_p9 = pneg %p3758_p3 }
  0x2e   : > { %p3766_p7 = pnand %p3765_p10, %p3759_p9 }
  0x30   : > { %3769 = shalt.err (!%p3766_p7)
}
  0x31   : > { %s3938_s4 = smov 128   ;;  %s3939_s7 = smov 8  }
  0x32   : > { %3651 = dma.hbm_to_vmem [thread:$0]  (!%p4050_p1), %s4709_s0, 2560, %s4043_s29, [#allocation3], %s3938_s4, %s3938_s4, %s3939_s7  }
  0x33   : > { %s4710_s1 = sld [smem:[#allocation28_spill]] }
  0x39   : > { %s3770_s21 = scalar_lea.hbm %s4710_s1, 40960 }
  0x3a   : > { %p3771_p3 = scmp.ne.s32.totalorder %s4710_s1, %s3770_s21  ;;  %p3777_p9 = scmp.lt.u32.totalorder %s3770_s21, %s4710_s1 }
  0x3c   : > { %p3773_p7 = pnand %p3771_p3, %p3744_p6 }
  0x3e   : > { %p3774_p8 = pneg %p3773_p7 }
  0x40   : > { %p3779_p11 = pnand %p3777_p9, %p3774_p8 }
  0x42   : > { %3782 = shalt.err (!%p3779_p11)
}
  0x43   : > { %s3783_s29 = scalar_lea.vmem %s4060_s5, 40960  ;;  %p3791_p4 = scmp.lt.s32.totalorder %s4060_s5, %s4060_s5 }
  0x44   : > { %p3784_p5 = scmp.ne.s32.totalorder %s4060_s5, %s3783_s29  ;;  %p3792_p10 = scmp.lt.s32.totalorder %s3783_s29, %s3783_s29 }
  0x46   : > { %p3786_p13 = pnand %p3784_p5, %p3744_p6  ;;  %p3793_p3 = por %p3792_p10, %p3791_p4 }
  0x48   : > { %p3787_p0 = pneg %p3786_p13 }
  0x4a   : > { %p3794_p7 = pnand %p3793_p3, %p3787_p0 }
  0x4c   : > { %3797 = shalt.err (!%p3794_p7)
}
  0x4d   : > { %3654 = dma.hbm_to_vmem [thread:$0]  (!%p4050_p1), %s4710_s1, 40960, %s4060_s5, [#allocation6], %s3938_s4, %s3938_s4, %s3939_s7  }
  0x4e   : > { %s27_s8 = sadd.s32 1, %s3926_s17  ;;  %s30_s9 = sadd.s32 1, %s3930_s18 }
  0x4f   : > { %p28_p6 = scmp.ge.s32.totalorder %s27_s8, 5  ;;  %s172_s10 = sand.u32 1, %s3934_s19  }
  0x50   : > { %s174_s11 = sand.u32 1, %s3914_s14   ;;  %s2542_s23 = sshll.u32 %s3926_s17, 6 }
  0x51   : > { %s4754_s8 = smov (%p28_p6, %s27_s8), 0  ;;  %s4756_s9 = smov (!%p28_p6, %s30_s9), %s3930_s18 }
  0x52   : > { %4711 = sst [smem:[#allocation15_spill]] %s4754_s8  ;;  %s77_s30 = ssub.s32 %s3926_s17, %s4754_s8 }
  0x53   : > { %s2541_s21 = sshll.u32 %s174_s11, 9  ;;  %p32_p8 = scmp.ge.s32.totalorder %s4756_s9, 2 }
  0x54   : > { %s3634_s28 = smul.u32 320, %s3930_s18  ;;  %s176_s4 = scalar_lea.vmem [#allocation7], %s2541_s21 }
  0x55   : > { %s4758_s9 = smov (%p32_p8, %s4756_s9), 0  ;;  %s185_s7 = sshll.u32 %s176_s4, 4  ;;  %s4134_s7 = int_to_ptr.vmem [resolvable:$true] %s185_s7 }
  0x56   : > { %s182_s5 = sadd.s32 %s3634_s28, %s2542_s23  ;;  %s76_s29 = ssub.s32 %s3930_s18, %s4758_s9 }
  0x57   : > { %s2543_s22 = sshll.u32 %s182_s5, 7  ;;  %s78_s26 = sor.u32 %s77_s30, %s76_s29 }
  0x58   : > { %s4132_s12 = scalar_lea.hbm %s4666_s2, %s2543_s22  ;;  %p79_p1 = scmp.eq.s32.totalorder %s78_s26, 0 }
  0x59   : > { %s4712_s11 = sadd.s32 1, %s3914_s14  ;;  %s4141_s21 = scalar_lea.sflag [#allocation3], %s172_s10 }
  0x5a   : > { %s4139_s8 = scalar_select %p79_p1, %s3914_s14, %s4712_s11  }
  0x5b   : > { %s3798_s23 = scalar_lea.hbm %s4132_s12, 8192  ;;  %p3800_p11 = pneg %p4056_p2 }
  0x5c   : > { %p3799_p9 = scmp.ne.s32.totalorder %s4132_s12, %s3798_s23  ;;  %s3803_s30 = scalar_lea.hbm %s4666_s2, 81920 }
  0x5d   : > { %p3804_p0 = scmp.lt.u32.totalorder %s4132_s12, %s4666_s2  ;;  %p3805_p4 = scmp.lt.u32.totalorder %s3803_s30, %s3798_s23 }
  0x5e   : > { %p3801_p5 = pnand %p3800_p11, %p3799_p9  ;;  %p3807_p3 = scmp.lt.u32.totalorder %s3798_s23, %s4132_s12 }
  0x5f   : > { %p3806_p10 = por %p3805_p4, %p3804_p0 }
  0x60   : > { %p3802_p13 = pneg %p3801_p5 }
  0x61   : > { %p3808_p7 = por %p3807_p3, %p3806_p10 }
  0x63   : > { %p3809_p6 = pnand %p3808_p7, %p3802_p13 }
  0x65   : > { %3812 = shalt.err (!%p3809_p6)
}
  0x66   : > { %s3813_s10 = scalar_lea.vmem %s4134_s7, 8192  ;;  %s3940_s4 = smov [#allocation7]  }
  0x67   : > { %p3814_p8 = scmp.ne.s32.totalorder %s4134_s7, %s3813_s10  ;;  %s3818_s29 = sshll.u32 %s3940_s4, 4  ;;  %s3819_s29 = int_to_ptr.vmem [resolvable:$false] %s3818_s29 }
  0x68   : > { %s3820_s22 = scalar_lea.vmem %s3819_s29, 16384  ;;  %p3821_p5 = scmp.lt.s32.totalorder %s4134_s7, %s3819_s29 }
  0x69   : > { %p3816_p1 = pnand %p3814_p8, %p3800_p11  ;;  %p3822_p0 = scmp.lt.s32.totalorder %s3820_s22, %s3813_s10 }
  0x6b   : > { %p3817_p9 = pneg %p3816_p1  ;;  %p3823_p4 = por %p3822_p0, %p3821_p5 }
  0x6d   : > { %p3824_p10 = pnand %p3823_p4, %p3817_p9 }
  0x6f   : > { %3827 = shalt.err (!%p3824_p10)
}
  0x70   : > { %s3941_s26 = smov 512   ;;  %s3942_s11 = smov 32  }
  0x71   : > { %3658 = dma.hbm_to_vmem [thread:$0]  (!%p4056_p2), %s4132_s12, 8192, %s4134_s7, %s4141_s21, %s3941_s26, %s3941_s26, %s3942_s11  }
  0x72   : > { %197 = sbr.rel (%p4039_p12) target bundleno = 1436 (0x59c), region = 32 }
  0x79   : > { %p4713_p11 = scmp.eq.s32.totalorder %s4008_s20, 0 }
  0x7b   : > { %3889 = dma.done.wait (%p4713_p11), [#allocation3], 2560   ;;  %p4714_p13 = pmov %p4713_p11 }
  0x7c   : > { %p4715_p3 = pmov %p4713_p11 }
  0x7d   : > { %3891 = vsyncadd (%p4714_p13), [#allocation3], 4294964736 }
  0x7e   : > { %3893 = dma.done.wait (%p4715_p3), [#allocation6], 40960   ;;  %p4716_p7 = pmov %p4715_p3 }
  0x7f   : > { %s207_s6 = sand.u32 1, %s4008_s20   ;;  %s4181_s12 = sand.u32 1, %s3910_s13  }
  0x80   : > { %3895 = vsyncadd (%p4716_p7), [#allocation6], 4294926336  ;;  %s2547_s27 = sshll.u32 %s4181_s12, 9  ;;  %s208_s7 = scalar_lea.sflag [#allocation3], %s207_s6 }
  0x81   : > { %s4184_s21 = scalar_lea.vmem [#allocation7], %s2547_s27  ;;  %p4717_p12 = scmp.ne.s32.totalorder %s4702_s24, 0 }
  0x83   : > { %3897 = dma.done.wait (%p4717_p12), %s208_s7, 8192  }
  0x84   : > { %3899 = vsyncadd (%p4717_p12), %s208_s7, 4294959104  ;;  %v4674_v0 = vmov 0.0   ;;  %v235_v1 = vld [vmem:[%s4184_s21 + $0x8] sm:$0xff]  ;;  %v237_v3 = vld [vmem:[%s4184_s21 + $0x18] sm:$0xff]  ;;  %s2548_s20 = sshll.u32 %s4181_s12, 5  ;;  %s3635_s24 = smul.u32 20, %s3922_s16 }
  0x85   : > { %366 = vmatprep.mubr.f32.mxu0 %v4674_v0  ;;  %455 = vmatprep.mubr.f32.mxu1 %v4674_v0  ;;  %v239_v2 = vld [vmem:[%s4184_s21 + $0x28] sm:$0xff]  ;;  %v241_v5 = vld [vmem:[%s4184_s21 + $0x38] sm:$0xff]  ;;  %v234_v6 = vld [vmem:[%s4184_s21] sm:$0xff]  ;;  %s233_s23 = scalar_lea.vmem [#allocation8], %s2548_s20  ;;  %s2550_s0 = sshll.u32 %s3918_s15, 2 }
  0x86   : > { %v4195_v4 = vpack.c.bf16 %v239_v2, %v235_v1  ;;  %v238_v7 = vld [vmem:[%s4184_s21 + $0x20] sm:$0xff]  ;;  %v4200_v8 = vpack.c.bf16 %v241_v5, %v237_v3  ;;  %v236_v10 = vld [vmem:[%s4184_s21 + $0x10] sm:$0xff]  ;;  %v243_v12 = vld [vmem:[%s4184_s21 + $0x48] sm:$0xff]  ;;  %s2423_s1 = sadd.s32 %s3635_s24, %s2550_s0  ;;  %s2426_s16 = sshll.u32 %s233_s23, 4  ;;  %s4605_s16 = int_to_ptr.vmem [resolvable:$true] %s2426_s16 }
  0x87   : > { %v4202_v9 = vpack.c.bf16 %v238_v7, %v234_v6  ;;  %v240_v11 = vld [vmem:[%s4184_s21 + $0x30] sm:$0xff]  ;;  %v247_v14 = vld [vmem:[%s4184_s21 + $0x68] sm:$0xff]  ;;  %v245_v15 = vld [vmem:[%s4184_s21 + $0x58] sm:$0xff]  ;;  %s2551_s30 = sshll.u32 %s2423_s1, 7  ;;  %s2411_s10 = scalar_lea.sflag [#allocation4], %s4181_s12 }
  0x88   : > { %2995 = vmatprep.subr.bf16.mxu0 %v4195_v4  ;;  %v4208_v13 = vpack.c.bf16 %v240_v11, %v236_v10  ;;  %v249_v16 = vld [vmem:[%s4184_s21 + $0x78] sm:$0xff]  ;;  %3027 = vmatprep.subr.bf16.mxu1 %v4200_v8  ;;  %v4215_v17 = vpack.c.bf16 %v247_v14, %v243_v12  ;;  %v242_v19 = vld [vmem:[%s4184_s21 + $0x40] sm:$0xff]  ;;  %v244_v21 = vld [vmem:[%s4184_s21 + $0x50] sm:$0xff]  ;;  %s4610_s5 = scalar_lea.hbm %s4667_s3, %s2551_s30  ;;  %s3828_s4 = scalar_lea.vmem %s4605_s16, 512 }
  0x89   : > { %2997 = vmatpush1.bf16.msra.mxu0 %v4202_v9  ;;  %v4217_v18 = vpack.c.bf16 %v249_v16, %v245_v15  ;;  %v246_v20 = vld [vmem:[%s4184_s21 + $0x60] sm:$0xff]  ;;  %v248_v23 = vld [vmem:[%s4184_s21 + $0x70] sm:$0xff]  ;;  %v251_v24 = vld [vmem:[%s4184_s21 + $0x88] sm:$0xff]  ;;  %p3829_p2 = scmp.ne.s32.totalorder %s4605_s16, %s3828_s4  ;;  %p4741_p6 = scmp.ne.s32.totalorder %s4703_s25, 0 }
  0x8a   : > { %3029 = vmatpush1.bf16.msra.mxu1 %v4208_v13  ;;  %v4223_v22 = vpack.c.bf16 %v246_v20, %v242_v19  ;;  %v255_v25 = vld [vmem:[%s4184_s21 + $0xa8] sm:$0xff]  ;;  %2999 = vmatprep.subr.bf16.mxu0 %v4215_v17  ;;  %v4230_v26 = vpack.c.bf16 %v248_v23, %v244_v21  ;;  %v253_v28 = vld [vmem:[%s4184_s21 + $0x98] sm:$0xff]  ;;  %v250_v30 = vld [vmem:[%s4184_s21 + $0x80] sm:$0xff]  ;;  %s3944_s29 = smov [#allocation8]  }
  0x8b   : > { %3031 = vmatprep.subr.bf16.mxu1 %v4217_v18  ;;  %v4232_v27 = vpack.c.bf16 %v255_v25, %v251_v24  ;;  %v257_v29 = vld [vmem:[%s4184_s21 + $0xb8] sm:$0xff]  ;;  %v254_v32 = vld [vmem:[%s4184_s21 + $0xa0] sm:$0xff]  ;;  %v252_v33 = vld [vmem:[%s4184_s21 + $0x90] sm:$0xff]  ;;  %p3830_p8 = pnand %p3829_p2, %p4741_p6  ;;  %s3832_s22 = sshll.u32 %s3944_s29, 4  ;;  %s3833_s22 = int_to_ptr.vmem [resolvable:$false] %s3832_s22 }
  0x8c   : > { %v4237_v31 = vpack.c.bf16 %v257_v29, %v253_v28  ;;  %v256_v34 = vld [vmem:[%s4184_s21 + $0xb0] sm:$0xff]  ;;  %v4243_v35 = vpack.c.bf16 %v254_v32, %v250_v30  ;;  %v259_v36 = vld [vmem:[%s4184_s21 + $0xc8] sm:$0xff]  ;;  %v261_v38 = vld [vmem:[%s4184_s21 + $0xd8] sm:$0xff]  ;;  %s3834_s26 = scalar_lea.vmem %s3833_s22, 1024  ;;  %p3835_p9 = scmp.lt.s32.totalorder %s4605_s16, %s3833_s22 }
  0x8d   : > { %3001 = vmatpush1.bf16.msra.mxu0 %v4223_v22  ;;  %v263_v37 = vld [vmem:[%s4184_s21 + $0xe8] sm:$0xff]  ;;  %v4250_v39 = vpack.c.bf16 %v256_v34, %v252_v33  ;;  %v265_v41 = vld [vmem:[%s4184_s21 + $0xf8] sm:$0xff]  ;;  %v258_v42 = vld [vmem:[%s4184_s21 + $0xc0] sm:$0xff]  ;;  %p3831_p1 = pneg %p3830_p8  ;;  %p3836_p5 = scmp.lt.s32.totalorder %s3834_s26, %s3828_s4 }
  0x8e   : > { %3033 = vmatpush1.bf16.msra.mxu1 %v4230_v26  ;;  %3003 = vmatprep.subr.bf16.mxu0 %v4232_v27  ;;  %v4252_v40 = vpack.c.bf16 %v263_v37, %v259_v36  ;;  %v262_v43 = vld [vmem:[%s4184_s21 + $0xe0] sm:$0xff]  ;;  %v4258_v44 = vpack.c.bf16 %v265_v41, %v261_v38  ;;  %v260_v45 = vld [vmem:[%s4184_s21 + $0xd0] sm:$0xff]  ;;  %v267_v47 = vld [vmem:[%s4184_s21 + $0x108] sm:$0xff] }
  0x8f   : > { %3035 = vmatprep.subr.bf16.mxu1 %v4237_v31  ;;  %v264_v46 = vld [vmem:[%s4184_s21 + $0xf0] sm:$0xff]  ;;  %v271_v48 = vld [vmem:[%s4184_s21 + $0x128] sm:$0xff]  ;;  %v269_v49 = vld [vmem:[%s4184_s21 + $0x118] sm:$0xff]  ;;  %v4267_v51 = vpack.c.bf16 %v262_v43, %v258_v42  ;;  %p3837_p0 = por %p3836_p5, %p3835_p9 }
  0x90   : > { %v273_v50 = vld [vmem:[%s4184_s21 + $0x138] sm:$0xff]  ;;  %v4271_v52 = vpack.c.bf16 %v264_v46, %v260_v45  ;;  %v4273_v53 = vpack.c.bf16 %v271_v48, %v267_v47  ;;  %v266_v54 = vld [vmem:[%s4184_s21 + $0x100] sm:$0xff]  ;;  %v268_v56 = vld [vmem:[%s4184_s21 + $0x110] sm:$0xff] }
  0x91   : > { %3005 = vmatpush1.bf16.msra.mxu0 %v4243_v35  ;;  %v270_v55 = vld [vmem:[%s4184_s21 + $0x120] sm:$0xff]  ;;  %v4279_v57 = vpack.c.bf16 %v273_v50, %v269_v49  ;;  %v272_v58 = vld [vmem:[%s4184_s21 + $0x130] sm:$0xff]  ;;  %v275_v59 = vld [vmem:[%s4184_s21 + $0x148] sm:$0xff]  ;;  %p3838_p4 = pnand %p3837_p0, %p3831_p1 }
  0x92   : > { %3037 = vmatpush1.bf16.msra.mxu1 %v4250_v39  ;;  %3007 = vmatprep.subr.bf16.mxu0 %v4252_v40  ;;  %v279_v60 = vld [vmem:[%s4184_s21 + $0x168] sm:$0xff]  ;;  %v277_v61 = vld [vmem:[%s4184_s21 + $0x158] sm:$0xff]  ;;  %v4287_v63 = vpack.c.bf16 %v270_v55, %v266_v54  ;;  %v4291_v1 = vpack.c.bf16 %v272_v58, %v268_v56  ;;  %v274_v3 = vld [vmem:[%s4184_s21 + $0x140] sm:$0xff] }
  0x93   : > { %3039 = vmatprep.subr.bf16.mxu1 %v4258_v44  ;;  %v281_v62 = vld [vmem:[%s4184_s21 + $0x178] sm:$0xff]  ;;  %v4293_v2 = vpack.c.bf16 %v279_v60, %v275_v59  ;;  %v278_v5 = vld [vmem:[%s4184_s21 + $0x160] sm:$0xff]  ;;  %v276_v6 = vld [vmem:[%s4184_s21 + $0x150] sm:$0xff] }
  0x94   : > { %v4299_v7 = vpack.c.bf16 %v281_v62, %v277_v61  ;;  %v280_v10 = vld [vmem:[%s4184_s21 + $0x170] sm:$0xff]  ;;  %v283_v11 = vld [vmem:[%s4184_s21 + $0x188] sm:$0xff]  ;;  %v285_v14 = vld [vmem:[%s4184_s21 + $0x198] sm:$0xff]  ;;  %v4307_v16 = vpack.c.bf16 %v278_v5, %v274_v3 }
  0x95   : > { %3009 = vmatpush1.bf16.msra.mxu0 %v4267_v51  ;;  %v287_v12 = vld [vmem:[%s4184_s21 + $0x1a8] sm:$0xff]  ;;  %v289_v15 = vld [vmem:[%s4184_s21 + $0x1b8] sm:$0xff]  ;;  %v4311_v19 = vpack.c.bf16 %v280_v10, %v276_v6  ;;  %v282_v21 = vld [vmem:[%s4184_s21 + $0x180] sm:$0xff] }
  0x96   : > { %3041 = vmatpush1.bf16.msra.mxu1 %v4271_v52  ;;  %3011 = vmatprep.subr.bf16.mxu0 %v4273_v53  ;;  %4718 = vst [vmem:[#allocation16_spill] sm:$0xff] %v4299_v7  ;;  %4719 = vst [vmem:[#allocation17_spill] sm:$0xff] %v4307_v16  ;;  %v4313_v20 = vpack.c.bf16 %v287_v12, %v283_v11  ;;  %v286_v23 = vld [vmem:[%s4184_s21 + $0x1a0] sm:$0xff]  ;;  %v284_v24 = vld [vmem:[%s4184_s21 + $0x190] sm:$0xff]  ;;  %v4319_v25 = vpack.c.bf16 %v289_v15, %v285_v14 }
  0x97   : > { %3043 = vmatprep.subr.bf16.mxu1 %v4279_v57  ;;  %4720 = vst [vmem:[#allocation18_spill] sm:$0xff] %v4311_v19  ;;  %v288_v28 = vld [vmem:[%s4184_s21 + $0x1b0] sm:$0xff]  ;;  %v291_v29 = vld [vmem:[%s4184_s21 + $0x1c8] sm:$0xff]  ;;  %v293_v32 = vld [vmem:[%s4184_s21 + $0x1d8] sm:$0xff]  ;;  %v4327_v34 = vpack.c.bf16 %v286_v23, %v282_v21 }
  0x98   : > { %4721 = vst [vmem:[#allocation19_spill] sm:$0xff] %v4313_v20  ;;  %4722 = vst [vmem:[#allocation20_spill] sm:$0xff] %v4319_v25  ;;  %v295_v30 = vld [vmem:[%s4184_s21 + $0x1e8] sm:$0xff]  ;;  %v297_v33 = vld [vmem:[%s4184_s21 + $0x1f8] sm:$0xff]  ;;  %v4331_v36 = vpack.c.bf16 %v288_v28, %v284_v24 }
  0x99   : > { %3013 = vmatpush1.bf16.msra.mxu0 %v4287_v63  ;;  %4723 = vst [vmem:[#allocation21_spill] sm:$0xff] %v4327_v34  ;;  %v4333_v37 = vpack.c.bf16 %v295_v30, %v291_v29  ;;  %v290_v38 = vld [vmem:[%s4184_s21 + $0x1c0] sm:$0xff]  ;;  %v4338_v42 = vpack.c.bf16 %v297_v33, %v293_v32  ;;  %v292_v43 = vld [vmem:[%s4184_s21 + $0x1d0] sm:$0xff]  ;;  %v299_v49 = vld [vmem:[#allocation2 + $0x8] sm:$0xff] }
  0x9a   : > { %3045 = vmatpush1.bf16.msra.mxu1 %v4291_v1  ;;  %3015 = vmatprep.subr.bf16.mxu0 %v4293_v2  ;;  %4724 = vst [vmem:[#allocation22_spill] sm:$0xff] %v4331_v36  ;;  %v294_v41 = vld [vmem:[%s4184_s21 + $0x1e0] sm:$0xff]  ;;  %v296_v45 = vld [vmem:[%s4184_s21 + $0x1f0] sm:$0xff]  ;;  %v301_v54 = vld [vmem:[#allocation2 + $0x18] sm:$0xff] }
  0x9b   : > { %3047 = vmatprep.subr.bf16.mxu1 %v4299_v7  ;;  %4725 = vst [vmem:[#allocation23_spill] sm:$0xff] %v4333_v37  ;;  %4726 = vst [vmem:[#allocation24_spill] sm:$0xff] %v4338_v42  ;;  %v4343_v46 = vpack.c.bf16 %v294_v41, %v290_v38  ;;  %v4347_v47 = vpack.c.bf16 %v296_v45, %v292_v43  ;;  %v298_v48 = vld [vmem:[#allocation2] sm:$0xff]  ;;  %v300_v50 = vld [vmem:[#allocation2 + $0x10] sm:$0xff] }
  0x9c   : > { %v545_v55 = vld [vmem:[#allocation2 + $0x20] sm:$0xff]  ;;  %v546_v56 = vld [vmem:[#allocation2 + $0x28] sm:$0xff]  ;;  %v547_v58 = vld [vmem:[#allocation2 + $0x30] sm:$0xff] }
  0x9d   : > { %3017 = vmatpush1.bf16.msra.mxu0 %v4307_v16  ;;  %4727 = vst [vmem:[#allocation25_spill] sm:$0xff] %v4343_v46  ;;  %4728 = vst [vmem:[#allocation26_spill] sm:$0xff] %v4347_v47  ;;  %v548_v59 = vld [vmem:[#allocation2 + $0x38] sm:$0xff]  ;;  %v744_v60 = vld [vmem:[#allocation5 + $0x280] sm:$0xff] }
  0x9e   : > { %3049 = vmatpush1.bf16.msra.mxu1 %v4311_v19  ;;  %3019 = vmatprep.subr.bf16.mxu0 %v4313_v20  ;;  %v745_v61 = vld [vmem:[#allocation5 + $0x288] sm:$0xff]  ;;  %v776_v62 = vld [vmem:[#allocation5 + $0x380] sm:$0xff]  ;;  %v746_v21 = vld [vmem:[#allocation5 + $0x290] sm:$0xff] }
  0x9f   : > { %3051 = vmatprep.subr.bf16.mxu1 %v4319_v25  ;;  %v3122_v3 = vpack.c.bf16 %v745_v61, %v744_v60  ;;  %v777_v5 = vld [vmem:[#allocation5 + $0x388] sm:$0xff]  ;;  %v728_v6 = vld [vmem:[#allocation5 + $0x200] sm:$0xff]  ;;  %v747_v24 = vld [vmem:[#allocation5 + $0x298] sm:$0xff] }
  0xa0   : > { %v729_v10 = vld [vmem:[#allocation5 + $0x208] sm:$0xff]  ;;  %v3154_v11 = vpack.c.bf16 %v777_v5, %v776_v62  ;;  %v760_v14 = vld [vmem:[#allocation5 + $0x300] sm:$0xff]  ;;  %v778_v28 = vld [vmem:[#allocation5 + $0x390] sm:$0xff]  ;;  %v3126_v30 = vpack.c.bf16 %v747_v24, %v746_v21 }
  0xa1   : > { %3021 = vmatpush1.bf16.msra.mxu0 %v4327_v34  ;;  %v3124_v12 = vpack.c.bf16 %v729_v10, %v728_v6  ;;  %v761_v15 = vld [vmem:[#allocation5 + $0x308] sm:$0xff]  ;;  %v779_v29 = vld [vmem:[#allocation5 + $0x398] sm:$0xff]  ;;  %v730_v33 = vld [vmem:[#allocation5 + $0x210] sm:$0xff] }
  0xa2   : > { %3053 = vmatpush1.bf16.msra.mxu1 %v4331_v36  ;;  %3023 = vmatprep.subr.bf16.mxu0 %v4333_v37  ;;  %v3156_v23 = vpack.c.bf16 %v761_v15, %v760_v14  ;;  %v3158_v32 = vpack.c.bf16 %v779_v29, %v778_v28  ;;  %v731_v38 = vld [vmem:[#allocation5 + $0x218] sm:$0xff]  ;;  %v762_v41 = vld [vmem:[#allocation5 + $0x310] sm:$0xff]  ;;  %v733_v60 = vld [vmem:[#allocation5 + $0x228] sm:$0xff] }
  0xa3   : > { %3055 = vmatprep.subr.bf16.mxu1 %v4338_v42  ;;  %v3128_v43 = vpack.c.bf16 %v731_v38, %v730_v33  ;;  %v763_v45 = vld [vmem:[#allocation5 + $0x318] sm:$0xff]  ;;  %v764_v61 = vld [vmem:[#allocation5 + $0x320] sm:$0xff]  ;;  %v765_v62 = vld [vmem:[#allocation5 + $0x328] sm:$0xff] }
  0xa4   : > { %v750_v5 = vld [vmem:[#allocation5 + $0x2b0] sm:$0xff]  ;;  %v751_v6 = vld [vmem:[#allocation5 + $0x2b8] sm:$0xff]  ;;  %v752_v29 = vld [vmem:[#allocation5 + $0x2c0] sm:$0xff] }
  0xa5   : > { %3025 = vmatpush1.bf16.msra.mxu0 %v4343_v46  ;;  %v782_v10 = vld [vmem:[#allocation5 + $0x3b0] sm:$0xff]  ;;  %v783_v14 = vld [vmem:[#allocation5 + $0x3b8] sm:$0xff]  ;;  %v785_v33 = vld [vmem:[#allocation5 + $0x3c8] sm:$0xff] }
  0xa6   : > { %3057 = vmatpush1.bf16.msra.mxu1 %v4347_v47  ;;  %3059 = vmatprep.subr.bf16.mxu0 %v4195_v4  ;;  %v734_v15 = vld [vmem:[#allocation5 + $0x230] sm:$0xff]  ;;  %v735_v21 = vld [vmem:[#allocation5 + $0x238] sm:$0xff] }
  0xa7   : > { %3091 = vmatprep.subr.bf16.mxu1 %v4200_v8  ;;  %v766_v24 = vld [vmem:[#allocation5 + $0x330] sm:$0xff]  ;;  %v767_v28 = vld [vmem:[#allocation5 + $0x338] sm:$0xff]  ;;  %v3136_v38 = vpack.c.bf16 %v735_v21, %v734_v15  ;;  %v788_v15 = vld [vmem:[#allocation5 + $0x3e0] sm:$0xff] }
  0xa8   : > { %367 = vmatmul.mubr.f32.vlgmr.msra.gmra.mrb[0].mxu0 %v298_v48  ;;  %v789_v21 = vld [vmem:[#allocation5 + $0x3e8] sm:$0xff] }
  0xa9   : > { %456 = vmatmul.mubr.f32.vlgmr.msra.gmra.mrb[0].mxu1 %v298_v48  ;;  %3061 = vmatpush1.bf16.msra.mxu0 %v4202_v9  ;;  %v748_v48 = vld [vmem:[#allocation5 + $0x2a0] sm:$0xff] }
  0xaa   : > { %3093 = vmatpush1.bf16.msra.mxu1 %v4208_v13  ;;  %3063 = vmatprep.subr.bf16.mxu0 %v4215_v17 }
  0xab   : > { %3095 = vmatprep.subr.bf16.mxu1 %v4217_v18  ;;  %372 = vmatprep.mubr.f32.mxu0 %v4674_v0 }
  0xac   : > { %461 = vmatprep.mubr.f32.mxu1 %v4674_v0  ;;  %373 = vmatmul.mubr.f32.gmra.mrb[2].mxu0 %v299_v49 }
  0xad   : > { %3065 = vmatpush1.bf16.msra.mxu0 %v4223_v22  ;;  %462 = vmatmul.mubr.f32.gmra.mrb[2].mxu1 %v299_v49  ;;  %v749_v49 = vld [vmem:[#allocation5 + $0x2a8] sm:$0xff] }
  0xae   : > { %3097 = vmatpush1.bf16.msra.mxu1 %v4230_v26  ;;  %3067 = vmatprep.subr.bf16.mxu0 %v4232_v27 }
  0xaf   : > { %3099 = vmatprep.subr.bf16.mxu1 %v4237_v31  ;;  %378 = vmatprep.mubr.f32.mxu0 %v4674_v0 }
  0xb0   : > { %467 = vmatprep.mubr.f32.mxu1 %v4674_v0  ;;  %379 = vmatmul.mubr.f32.gmra.mrb[4].mxu0 %v300_v50 }
  0xb1   : > { %3069 = vmatpush1.bf16.msra.mxu0 %v4243_v35  ;;  %468 = vmatmul.mubr.f32.gmra.mrb[4].mxu1 %v300_v50  ;;  %v3160_v50 = vpack.c.bf16 %v763_v45, %v762_v41  ;;  %v3168_v41 = vpack.c.bf16 %v767_v28, %v766_v24  ;;  %v736_v45 = vld [vmem:[#allocation5 + $0x240] sm:$0xff] }
  0xb2   : > { %3101 = vmatpush1.bf16.msra.mxu1 %v4250_v39  ;;  %3071 = vmatprep.subr.bf16.mxu0 %v4252_v40 }
  0xb3   : > { %3103 = vmatprep.subr.bf16.mxu1 %v4258_v44  ;;  %384 = vmatprep.mubr.f32.mxu0 %v4674_v0 }
  0xb4   : > { %473 = vmatprep.mubr.f32.mxu1 %v4674_v0  ;;  %385 = vmatmul.mubr.f32.gmra.mrb[6].mxu0 %v301_v54 }
  0xb5   : > { %3073 = vmatpush1.bf16.msra.mxu0 %v4267_v51  ;;  %474 = vmatmul.mubr.f32.gmra.mrb[6].mxu1 %v301_v54  ;;  %v3130_v54 = vpack.c.bf16 %v749_v49, %v748_v48  ;;  %v737_v48 = vld [vmem:[#allocation5 + $0x248] sm:$0xff]  ;;  %v768_v49 = vld [vmem:[#allocation5 + $0x340] sm:$0xff] }
  0xb6   : > { %3105 = vmatpush1.bf16.msra.mxu1 %v4271_v52  ;;  %3075 = vmatprep.subr.bf16.mxu0 %v4273_v53 }
  0xb7   : > { %3107 = vmatprep.subr.bf16.mxu1 %v4279_v57  ;;  %613 = vmatprep.mubr.f32.mxu0 %v4674_v0 }
  0xb8   : > { %702 = vmatprep.mubr.f32.mxu1 %v4674_v0 }
  0xb9   : > { %3077 = vmatpush1.bf16.msra.mxu0 %v4287_v63 }
  0xba   : > { %3109 = vmatpush1.bf16.msra.mxu1 %v4291_v1  ;;  %3079 = vmatprep.subr.bf16.mxu0 %v4293_v2 }
  0xbb   : > { %3111 = vmatprep.subr.bf16.mxu1 %v4299_v7  ;;  %v503_v7 = vld [vmem:[#allocation5 + $0xb8] sm:$0xff] }
  0xbd   : > { %3081 = vmatpush1.bf16.msra.mxu0 %v4307_v16  ;;  %v502_v16 = vld [vmem:[#allocation5 + $0xb0] sm:$0xff] }
  0xbe   : > { %3113 = vmatpush1.bf16.msra.mxu1 %v4311_v19  ;;  %3083 = vmatprep.subr.bf16.mxu0 %v4313_v20  ;;  %v533_v20 = vld [vmem:[#allocation5 + $0x1a8] sm:$0xff]  ;;  %v484_v19 = vld [vmem:[#allocation5 + $0x20] sm:$0xff] }
  0xbf   : > { %3115 = vmatprep.subr.bf16.mxu1 %v4319_v25  ;;  %v532_v25 = vld [vmem:[#allocation5 + $0x1a0] sm:$0xff] }
  0xc1   : > { %3085 = vmatpush1.bf16.msra.mxu0 %v4327_v34  ;;  %v501_v34 = vld [vmem:[#allocation5 + $0xa8] sm:$0xff] }
  0xc2   : > { %3117 = vmatpush1.bf16.msra.mxu1 %v4331_v36  ;;  %3087 = vmatprep.subr.bf16.mxu0 %v4333_v37  ;;  %v515_v37 = vld [vmem:[#allocation5 + $0x118] sm:$0xff]  ;;  %v500_v36 = vld [vmem:[#allocation5 + $0xa0] sm:$0xff] }
  0xc3   : > { %3119 = vmatprep.subr.bf16.mxu1 %v4338_v42 }
  0xc5   : > { %3089 = vmatpush1.bf16.msra.mxu0 %v4343_v46 }
  0xc6   : > { %3121 = vmatpush1.bf16.msra.mxu1 %v4347_v47  ;;  %3123 = vmatprep.subr.bf16.mxu0 %v3122_v3  ;;  %v514_v47 = vld [vmem:[#allocation5 + $0x110] sm:$0xff] }
  0xc7   : > { %3155 = vmatprep.subr.bf16.mxu1 %v3154_v11  ;;  %v3164_v11 = vpack.c.bf16 %v765_v62, %v764_v61 }
  0xc8   : > { %614 = vmatmul.mubr.f32.vlgmr.msra.gmra.mrb[8].mxu0 %v545_v55 }
  0xc9   : > { %703 = vmatmul.mubr.f32.vlgmr.msra.gmra.mrb[8].mxu1 %v545_v55  ;;  %619 = vmatprep.mubr.f32.mxu0 %v4674_v0  ;;  %v780_v55 = vld [vmem:[#allocation5 + $0x3a0] sm:$0xff] }
  0xca   : > { %708 = vmatprep.mubr.f32.mxu1 %v4674_v0  ;;  %3125 = vmatpush3.bf16.msra.mxu0 %v3124_v12  ;;  %v3134_v12 = vpack.c.bf16 %v751_v6, %v750_v5  ;;  %v739_v5 = vld [vmem:[#allocation5 + $0x258] sm:$0xff]  ;;  %v770_v6 = vld [vmem:[#allocation5 + $0x350] sm:$0xff] }
  0xcb   : > { %3157 = vmatpush3.bf16.msra.mxu1 %v3156_v23  ;;  %3127 = vmatprep.subr.bf16.mxu0 %v3126_v30  ;;  %v3166_v23 = vpack.c.bf16 %v783_v14, %v782_v10  ;;  %v753_v30 = vld [vmem:[#allocation5 + $0x2c8] sm:$0xff] }
  0xcc   : > { %620 = vmatmul.mubr.f32.gmra.mrb[10].mxu0 %v546_v56  ;;  %3159 = vmatprep.subr.bf16.mxu1 %v3158_v32  ;;  %v784_v32 = vld [vmem:[#allocation5 + $0x3c0] sm:$0xff]  ;;  %v757_v14 = vld [vmem:[#allocation5 + $0x2e8] sm:$0xff] }
  0xcd   : > { %709 = vmatmul.mubr.f32.gmra.mrb[10].mxu1 %v546_v56  ;;  %625 = vmatprep.mubr.f32.mxu0 %v4674_v0  ;;  %v781_v56 = vld [vmem:[#allocation5 + $0x3a8] sm:$0xff] }
  0xce   : > { %714 = vmatprep.mubr.f32.mxu1 %v4674_v0  ;;  %3129 = vmatpush3.bf16.msra.mxu0 %v3128_v43  ;;  %v3138_v43 = vpack.c.bf16 %v753_v30, %v752_v29  ;;  %v740_v29 = vld [vmem:[#allocation5 + $0x260] sm:$0xff]  ;;  %v741_v30 = vld [vmem:[#allocation5 + $0x268] sm:$0xff] }
  0xcf   : > { %3161 = vmatpush3.bf16.msra.mxu1 %v3160_v50  ;;  %3131 = vmatprep.subr.bf16.mxu0 %v3130_v54  ;;  %v3170_v50 = vpack.c.bf16 %v785_v33, %v784_v32  ;;  %v769_v54 = vld [vmem:[#allocation5 + $0x348] sm:$0xff]  ;;  %v772_v32 = vld [vmem:[#allocation5 + $0x360] sm:$0xff]  ;;  %v3178_v33 = vpack.c.bf16 %v789_v21, %v788_v15 }
  0xd0   : > { %626 = vmatmul.mubr.f32.gmra.mrb[12].mxu0 %v547_v58  ;;  %v3172_v61 = vpack.c.bf16 %v769_v54, %v768_v49  ;;  %v3148_v49 = vpack.c.bf16 %v741_v30, %v740_v29 }
  0xd1   : > { %715 = vmatmul.mubr.f32.gmra.mrb[12].mxu1 %v547_v58  ;;  %631 = vmatprep.mubr.f32.mxu0 %v4674_v0  ;;  %v732_v58 = vld [vmem:[#allocation5 + $0x220] sm:$0xff] }
  0xd2   : > { %720 = vmatprep.mubr.f32.mxu1 %v4674_v0  ;;  %v3132_v3 = vpack.c.bf16 %v733_v60, %v732_v58  ;;  %v786_v58 = vld [vmem:[#allocation5 + $0x3d0] sm:$0xff]  ;;  %v3140_v60 = vpack.c.bf16 %v737_v48, %v736_v45  ;;  %v791_v48 = vld [vmem:[#allocation5 + $0x3f8] sm:$0xff] }
  0xd3   : > { %v790_v45 = vld [vmem:[#allocation5 + $0x3f0] sm:$0xff]  ;;  %v483_v0 = vld [vmem:[#allocation5 + $0x18] sm:$0xff] }
  0xd4   : > { %632 = vmatmul.mubr.f32.gmra.mrb[14].mxu0 %v548_v59 }
  0xd5   : > { %721 = vmatmul.mubr.f32.gmra.mrb[14].mxu1 %v548_v59  ;;  %v3162_v59 = vpack.c.bf16 %v781_v56, %v780_v55  ;;  %3133 = vmatpush3.bf16.msra.mxu0 %v3132_v3  ;;  %v754_v55 = vld [vmem:[#allocation5 + $0x2d0] sm:$0xff]  ;;  %v755_v56 = vld [vmem:[#allocation5 + $0x2d8] sm:$0xff] }
  0xd6   : > { %3135 = vmatprep.subr.bf16.mxu0 %v3134_v12  ;;  %v3142_v62 = vpack.c.bf16 %v755_v56, %v754_v55  ;;  %v738_v3 = vld [vmem:[#allocation5 + $0x250] sm:$0xff]  ;;  %v756_v12 = vld [vmem:[#allocation5 + $0x2e0] sm:$0xff]  ;;  %v743_v56 = vld [vmem:[#allocation5 + $0x278] sm:$0xff] }
  0xd7   : > { %3163 = vmatprep.subr.bf16.mxu1 %v3162_v59  ;;  %v787_v59 = vld [vmem:[#allocation5 + $0x3d8] sm:$0xff]  ;;  %v3146_v28 = vpack.c.bf16 %v757_v14, %v756_v12  ;;  %v742_v55 = vld [vmem:[#allocation5 + $0x270] sm:$0xff] }
  0xd8   : > { %3165 = vmatpush3.bf16.msra.mxu1 %v3164_v11  ;;  %v3174_v10 = vpack.c.bf16 %v787_v59, %v786_v58  ;;  %v771_v11 = vld [vmem:[#allocation5 + $0x358] sm:$0xff]  ;;  %v3182_v58 = vpack.c.bf16 %v791_v48, %v790_v45  ;;  %v774_v59 = vld [vmem:[#allocation5 + $0x370] sm:$0xff] }
  0xd9   : > { %3167 = vmatprep.subr.bf16.mxu1 %v3166_v23  ;;  %3137 = vmatpush3.bf16.msra.mxu0 %v3136_v38  ;;  %v3144_v23 = vpack.c.bf16 %v739_v5, %v738_v3  ;;  %v3176_v24 = vpack.c.bf16 %v771_v11, %v770_v6  ;;  %v773_v38 = vld [vmem:[#allocation5 + $0x368] sm:$0xff]  ;;  %v496_v3 = vld [vmem:[#allocation5 + $0x80] sm:$0xff] }
  0xda   : > { %3139 = vmatprep.subr.bf16.mxu0 %v3138_v43  ;;  %v759_v43 = vld [vmem:[#allocation5 + $0x2f8] sm:$0xff]  ;;  %v497_v5 = vld [vmem:[#allocation5 + $0x88] sm:$0xff]  ;;  %v528_v6 = vld [vmem:[#allocation5 + $0x180] sm:$0xff] }
  0xdb   : > { %v529_v11 = vld [vmem:[#allocation5 + $0x188] sm:$0xff] }
  0xdc   : > { %3169 = vmatpush3.bf16.msra.mxu1 %v3168_v41  ;;  %v758_v41 = vld [vmem:[#allocation5 + $0x2f0] sm:$0xff]  ;;  %v3218_v12 = vpack.c.bf16 %v529_v11, %v528_v6 }
  0xdd   : > { %3171 = vmatprep.subr.bf16.mxu1 %v3170_v50  ;;  %3141 = vmatpush3.bf16.msra.mxu0 %v3140_v60  ;;  %v3180_v50 = vpack.c.bf16 %v773_v38, %v772_v32  ;;  %v3150_v54 = vpack.c.bf16 %v759_v43, %v758_v41  ;;  %v775_v60 = vld [vmem:[#allocation5 + $0x378] sm:$0xff] }
  0xde   : > { %3143 = vmatprep.subr.bf16.mxu0 %v3142_v62  ;;  %v3184_v62 = vpack.c.bf16 %v775_v60, %v774_v59  ;;  %v499_v59 = vld [vmem:[#allocation5 + $0x98] sm:$0xff]  ;;  %v530_v60 = vld [vmem:[#allocation5 + $0x190] sm:$0xff] }
  0xe0   : > { %3173 = vmatpush3.bf16.msra.mxu1 %v3172_v61  ;;  %v3152_v61 = vpack.c.bf16 %v743_v56, %v742_v55  ;;  %v512_v55 = vld [vmem:[#allocation5 + $0x100] sm:$0xff]  ;;  %v513_v56 = vld [vmem:[#allocation5 + $0x108] sm:$0xff] }
  0xe1   : > { %3175 = vmatprep.subr.bf16.mxu1 %v3174_v10  ;;  %3145 = vmatpush3.bf16.msra.mxu0 %v3144_v23  ;;  %v3186_v10 = vpack.c.bf16 %v497_v5, %v496_v3 }
  0xe2   : > { %3147 = vmatprep.subr.bf16.mxu0 %v3146_v28 }
  0xe4   : > { %3177 = vmatpush3.bf16.msra.mxu1 %v3176_v24 }
  0xe5   : > { %3179 = vmatprep.subr.bf16.mxu1 %v3178_v33  ;;  %3149 = vmatpush3.bf16.msra.mxu0 %v3148_v49 }
  0xe6   : > { %3151 = vmatprep.subr.bf16.mxu0 %v3150_v54  ;;  %v481_v54 = vld [vmem:[#allocation5 + $0x8] sm:$0xff] }
  0xe8   : > { %3181 = vmatpush3.bf16.msra.mxu1 %v3180_v50  ;;  %v480_v50 = vld [vmem:[#allocation5] sm:$0xff] }
  0xe9   : > { %3183 = vmatprep.subr.bf16.mxu1 %v3182_v58  ;;  %3153 = vmatpush3.bf16.msra.mxu0 %v3152_v61  ;;  %v498_v58 = vld [vmem:[#allocation5 + $0x90] sm:$0xff]  ;;  %v531_v61 = vld [vmem:[#allocation5 + $0x198] sm:$0xff]  ;;  %v3188_v3 = vpack.c.bf16 %v481_v54, %v480_v50 }
  0xea   : > { %3187 = vmatprep.subr.bf16.mxu0 %v3186_v10  ;;  %v3220_v10 = vpack.c.bf16 %v513_v56, %v512_v55  ;;  %v3190_v11 = vpack.c.bf16 %v499_v59, %v498_v58  ;;  %v3222_v42 = vpack.c.bf16 %v531_v61, %v530_v60  ;;  %v3224_v58 = vpack.c.bf16 %v515_v37, %v514_v47  ;;  %v516_v60 = vld [vmem:[#allocation5 + $0x120] sm:$0xff] }
  0xeb   : > { %v3194_v59 = vpack.c.bf16 %v501_v34, %v500_v36  ;;  %v3198_v47 = vpack.c.bf16 %v503_v7, %v502_v16 }
  0xec   : > { %3185 = vmatpush3.bf16.msra.mxu1 %v3184_v62 }
  0xed   : > { %3219 = vmatprep.subr.bf16.mxu1 %v3218_v12  ;;  %v482_v12 = vld [vmem:[#allocation5 + $0x10] sm:$0xff] }
  0xee   : > { %v3192_v54 = vpack.c.bf16 %v483_v0, %v482_v12  ;;  %v535_v0 = vld [vmem:[#allocation5 + $0x1b8] sm:$0xff]  ;;  %v518_v12 = vld [vmem:[#allocation5 + $0x130] sm:$0xff] }
 0x17b   : > { %v4398_v14 = vpop.f32.mrb[0].mxu0 }
 0x17c   : > { %v4400_v15 = vpop.f32.mrb[0].mxu1  ;;  %v4402_v21 = vpop.f32.mrb[1].mxu0 }
 0x17d   : > { %v4404_v23 = vpop.f32.mrb[1].mxu1 }
 0x17f   : > { %v4406_v24 = vpop.f32.mrb[2].mxu0 }
 0x180   : > { %v4408_v28 = vpop.f32.mrb[2].mxu1  ;;  %v4410_v29 = vpop.f32.mrb[3].mxu0 }
 0x181   : > { %v4412_v30 = vpop.f32.mrb[3].mxu1 }
 0x183   : > { %v4414_v32 = vpop.f32.mrb[4].mxu0 }
 0x184   : > { %v4416_v33 = vpop.f32.mrb[4].mxu1  ;;  %v4418_v38 = vpop.f32.mrb[5].mxu0 }
 0x185   : > { %v4420_v41 = vpop.f32.mrb[5].mxu1 }
 0x187   : > { %v4422_v43 = vpop.f32.mrb[6].mxu0 }
 0x188   : > { %v4424_v45 = vpop.f32.mrb[6].mxu1  ;;  %v4426_v48 = vpop.f32.mrb[7].mxu0 }
 0x189   : > { %v4428_v49 = vpop.f32.mrb[7].mxu1 }
 0x19b   : > { %v615_v62 = vpop.f32.mrb[8].mxu0 }
 0x19c   : > { %v704_v5 = vpop.f32.mrb[8].mxu1  ;;  %v617_v6 = vpop.f32.mrb[9].mxu0 }
 0x19d   : > { %v706_v46 = vpop.f32.mrb[9].mxu1  ;;  %856 = vmatprep.mubr.f32.mxu0 %v617_v6  ;;  %v485_v6 = vld [vmem:[#allocation5 + $0x28] sm:$0xff] }
 0x19e   : > { %941 = vmatprep.mubr.f32.mxu1 %v706_v46  ;;  %857 = vmatmul.mubr.f32.vlgmr.msra.gmra.mrb[16].mxu0 %v615_v62  ;;  %v3226_v46 = vpack.c.bf16 %v533_v20, %v532_v25  ;;  %v517_v62 = vld [vmem:[#allocation5 + $0x128] sm:$0xff] }
 0x19f   : > { %942 = vmatmul.mubr.f32.vlgmr.msra.gmra.mrb[16].mxu1 %v704_v5  ;;  %3189 = vmatpush3.bf16.msra.mxu0 %v3188_v3  ;;  %v621_v50 = vpop.f32.mrb[10].mxu0  ;;  %v534_v3 = vld [vmem:[#allocation5 + $0x1b0] sm:$0xff]  ;;  %v3228_v37 = vpack.c.bf16 %v517_v62, %v516_v60  ;;  %v488_v60 = vld [vmem:[#allocation5 + $0x40] sm:$0xff] }
 0x1a0   : > { %3221 = vmatpush3.bf16.msra.mxu1 %v3220_v10  ;;  %v710_v55 = vpop.f32.mrb[10].mxu1  ;;  %v623_v56 = vpop.f32.mrb[11].mxu0  ;;  %3191 = vmatprep.subr.bf16.mxu0 %v3190_v11  ;;  %v3196_v10 = vpack.c.bf16 %v485_v6, %v484_v19  ;;  %v486_v11 = vld [vmem:[#allocation5 + $0x30] sm:$0xff]  ;;  %v3230_v25 = vpack.c.bf16 %v535_v0, %v534_v3  ;;  %v521_v0 = vld [vmem:[#allocation5 + $0x148] sm:$0xff] }
 0x1a1   : > { %v712_v61 = vpop.f32.mrb[11].mxu1  ;;  %861 = vmatprep.mubr.f32.mxu0 %v623_v56  ;;  %3223 = vmatprep.subr.bf16.mxu1 %v3222_v42  ;;  %v487_v42 = vld [vmem:[#allocation5 + $0x38] sm:$0xff] }
 0x1a2   : > { %946 = vmatprep.mubr.f32.mxu1 %v712_v61  ;;  %862 = vmatmul.mubr.f32.gmra.mrb[18].mxu0 %v621_v50  ;;  %v519_v50 = vld [vmem:[#allocation5 + $0x138] sm:$0xff]  ;;  %v3200_v56 = vpack.c.bf16 %v487_v42, %v486_v11  ;;  %v489_v61 = vld [vmem:[#allocation5 + $0x48] sm:$0xff] }
 0x1a3   : > { %947 = vmatmul.mubr.f32.gmra.mrb[18].mxu1 %v710_v55  ;;  %3193 = vmatpush3.bf16.msra.mxu0 %v3192_v54  ;;  %v627_v5 = vpop.f32.mrb[12].mxu0  ;;  %v504_v55 = vld [vmem:[#allocation5 + $0xc0] sm:$0xff]  ;;  %v505_v54 = vld [vmem:[#allocation5 + $0xc8] sm:$0xff]  ;;  %v3232_v6 = vpack.c.bf16 %v519_v50, %v518_v12  ;;  %v539_v11 = vld [vmem:[#allocation5 + $0x1d8] sm:$0xff] }
 0x1a4   : > { %3225 = vmatpush3.bf16.msra.mxu1 %v3224_v58  ;;  %v716_v34 = vpop.f32.mrb[12].mxu1  ;;  %v629_v36 = vpop.f32.mrb[13].mxu0  ;;  %3195 = vmatprep.subr.bf16.mxu0 %v3194_v59  ;;  %v536_v58 = vld [vmem:[#allocation5 + $0x1c0] sm:$0xff]  ;;  %v537_v59 = vld [vmem:[#allocation5 + $0x1c8] sm:$0xff]  ;;  %v3202_v3 = vpack.c.bf16 %v505_v54, %v504_v55  ;;  %v491_v12 = vld [vmem:[#allocation5 + $0x58] sm:$0xff] }
 0x1a5   : > { %v718_v20 = vpop.f32.mrb[13].mxu1  ;;  %866 = vmatprep.mubr.f32.mxu0 %v629_v36  ;;  %3227 = vmatprep.subr.bf16.mxu1 %v3226_v46  ;;  %v520_v46 = vld [vmem:[#allocation5 + $0x140] sm:$0xff]  ;;  %v538_v36 = vld [vmem:[#allocation5 + $0x1d0] sm:$0xff]  ;;  %v523_v55 = vld [vmem:[#allocation5 + $0x158] sm:$0xff] }
 0x1a6   : > { %951 = vmatprep.mubr.f32.mxu1 %v718_v20  ;;  %867 = vmatmul.mubr.f32.gmra.mrb[20].mxu0 %v627_v5  ;;  %v506_v5 = vld [vmem:[#allocation5 + $0xd0] sm:$0xff]  ;;  %v3238_v50 = vpack.c.bf16 %v539_v11, %v538_v36  ;;  %v508_v54 = vld [vmem:[#allocation5 + $0xe0] sm:$0xff]  ;;  %v495_v11 = vld [vmem:[#allocation5 + $0x78] sm:$0xff] }
 0x1a7   : > { %952 = vmatmul.mubr.f32.gmra.mrb[20].mxu1 %v716_v34  ;;  %3197 = vmatpush3.bf16.msra.mxu0 %v3196_v10  ;;  %v633_v19 = vpop.f32.mrb[14].mxu0  ;;  %v507_v34 = vld [vmem:[#allocation5 + $0xd8] sm:$0xff]  ;;  %v3234_v10 = vpack.c.bf16 %v537_v59, %v536_v58  ;;  %v490_v20 = vld [vmem:[#allocation5 + $0x50] sm:$0xff]  ;;  %v540_v58 = vld [vmem:[#allocation5 + $0x1e0] sm:$0xff] }
 0x1a8   : > { %3229 = vmatpush3.bf16.msra.mxu1 %v3228_v37  ;;  %v722_v7 = vpop.f32.mrb[14].mxu1  ;;  %v635_v16 = vpop.f32.mrb[15].mxu0  ;;  %3199 = vmatprep.subr.bf16.mxu0 %v3198_v47  ;;  %v3204_v37 = vpack.c.bf16 %v489_v61, %v488_v60  ;;  %v3236_v47 = vpack.c.bf16 %v521_v0, %v520_v46  ;;  %v3206_v42 = vpack.c.bf16 %v507_v34, %v506_v5  ;;  %v541_v59 = vld [vmem:[#allocation5 + $0x1e8] sm:$0xff]  ;;  %v524_v60 = vld [vmem:[#allocation5 + $0x160] sm:$0xff]  ;;  %v510_v46 = vld [vmem:[#allocation5 + $0xf0] sm:$0xff] }
 0x1a9   : > { %v724_v62 = vpop.f32.mrb[15].mxu1  ;;  %871 = vmatprep.mubr.f32.mxu0 %v635_v16  ;;  %3231 = vmatprep.subr.bf16.mxu1 %v3230_v25  ;;  %v522_v25 = vld [vmem:[#allocation5 + $0x150] sm:$0xff]  ;;  %v492_v16 = vld [vmem:[#allocation5 + $0x60] sm:$0xff]  ;;  %v3242_v61 = vpack.c.bf16 %v541_v59, %v540_v58  ;;  %v543_v0 = vld [vmem:[#allocation5 + $0x1f8] sm:$0xff] }
 0x1aa   : > { %956 = vmatprep.mubr.f32.mxu1 %v724_v62  ;;  %872 = vmatmul.mubr.f32.gmra.mrb[22].mxu0 %v633_v19  ;;  %v509_v19 = vld [vmem:[#allocation5 + $0xe8] sm:$0xff]  ;;  %v511_v62 = vld [vmem:[#allocation5 + $0xf8] sm:$0xff]  ;;  %v494_v36 = vld [vmem:[#allocation5 + $0x70] sm:$0xff] }
 0x1ab   : > { %957 = vmatmul.mubr.f32.gmra.mrb[22].mxu1 %v722_v7  ;;  %3201 = vmatpush3.bf16.msra.mxu0 %v3200_v56  ;;  %v3208_v56 = vpack.c.bf16 %v491_v12, %v490_v20  ;;  %v3210_v7 = vpack.c.bf16 %v509_v19, %v508_v54  ;;  %v3216_v20 = vpack.c.bf16 %v495_v11, %v494_v36  ;;  %v1333_v54 = vld [vmem:[#allocation5 + $0x488] sm:$0xff]  ;;  %v1364_v19 = vld [vmem:[#allocation5 + $0x580] sm:$0xff]  ;;  %v1350_v11 = vld [vmem:[#allocation5 + $0x510] sm:$0xff] }
 0x1ac   : > { %3233 = vmatpush3.bf16.msra.mxu1 %v3232_v6  ;;  %1026 = vmatprep.mubr.f32.mxu0 %v4402_v21  ;;  %v3240_v21 = vpack.c.bf16 %v523_v55, %v522_v25  ;;  %v493_v6 = vld [vmem:[#allocation5 + $0x68] sm:$0xff]  ;;  %v1135_v25 = vld [vmem:[#allocation2 + $0x50] sm:$0xff]  ;;  %v1332_v55 = vld [vmem:[#allocation5 + $0x480] sm:$0xff] }
 0x1ad   : > { %1111 = vmatprep.mubr.f32.mxu1 %v4404_v23  ;;  %3203 = vmatprep.subr.bf16.mxu0 %v3202_v3  ;;  %v525_v23 = vld [vmem:[#allocation5 + $0x168] sm:$0xff]  ;;  %v542_v3 = vld [vmem:[#allocation5 + $0x1f0] sm:$0xff]  ;;  %v3212_v5 = vpack.c.bf16 %v493_v6, %v492_v16  ;;  %v3314_v58 = vpack.c.bf16 %v1333_v54, %v1332_v55  ;;  %v1348_v6 = vld [vmem:[#allocation5 + $0x500] sm:$0xff] }
 0x1ae   : > { %3235 = vmatprep.subr.bf16.mxu1 %v3234_v10  ;;  %v3244_v34 = vpack.c.bf16 %v525_v23, %v524_v60  ;;  %v3214_v10 = vpack.c.bf16 %v511_v62, %v510_v46  ;;  %v1365_v59 = vld [vmem:[#allocation5 + $0x588] sm:$0xff]  ;;  %v1334_v23 = vld [vmem:[#allocation5 + $0x490] sm:$0xff]  ;;  %v1335_v46 = vld [vmem:[#allocation5 + $0x498] sm:$0xff] }
 0x1af   : > { %3205 = vmatpush3.bf16.msra.mxu0 %v3204_v37  ;;  %v3246_v37 = vpack.c.bf16 %v543_v0, %v542_v3  ;;  %v1349_v60 = vld [vmem:[#allocation5 + $0x508] sm:$0xff]  ;;  %v1366_v62 = vld [vmem:[#allocation5 + $0x590] sm:$0xff]  ;;  %v3318_v3 = vpack.c.bf16 %v1335_v46, %v1334_v23  ;;  %v1367_v0 = vld [vmem:[#allocation5 + $0x598] sm:$0xff] }
 0x1b0   : > { %3237 = vmatpush3.bf16.msra.mxu1 %v3236_v47  ;;  %3207 = vmatprep.subr.bf16.mxu0 %v3206_v42  ;;  %v526_v47 = vld [vmem:[#allocation5 + $0x170] sm:$0xff]  ;;  %v527_v42 = vld [vmem:[#allocation5 + $0x178] sm:$0xff] }
 0x1b1   : > { %3239 = vmatprep.subr.bf16.mxu1 %v3238_v50  ;;  %v3248_v12 = vpack.c.bf16 %v527_v42, %v526_v47  ;;  %v1136_v50 = vld [vmem:[#allocation2 + $0x58] sm:$0xff]  ;;  %v1336_v42 = vld [vmem:[#allocation5 + $0x4a0] sm:$0xff] }
 0x1b3   : > { %3209 = vmatpush3.bf16.msra.mxu0 %v3208_v56  ;;  %v1316_v56 = vld [vmem:[#allocation5 + $0x400] sm:$0xff] }
 0x1b4   : > { %3241 = vmatpush3.bf16.msra.mxu1 %v3240_v21  ;;  %3211 = vmatprep.subr.bf16.mxu0 %v3210_v7  ;;  %v1317_v21 = vld [vmem:[#allocation5 + $0x408] sm:$0xff]  ;;  %v3346_v7 = vpack.c.bf16 %v1365_v59, %v1364_v19  ;;  %v1352_v19 = vld [vmem:[#allocation5 + $0x520] sm:$0xff] }
 0x1b5   : > { %3243 = vmatprep.subr.bf16.mxu1 %v3242_v61  ;;  %v3316_v16 = vpack.c.bf16 %v1317_v21, %v1316_v56  ;;  %v3348_v61 = vpack.c.bf16 %v1349_v60, %v1348_v6  ;;  %v1338_v56 = vld [vmem:[#allocation5 + $0x4b0] sm:$0xff]  ;;  %v1339_v21 = vld [vmem:[#allocation5 + $0x4b8] sm:$0xff] }
 0x1b6   : > { %v1371_v6 = vld [vmem:[#allocation5 + $0x5b8] sm:$0xff]  ;;  %v1322_v60 = vld [vmem:[#allocation5 + $0x430] sm:$0xff] }
 0x1b7   : > { %3213 = vmatpush3.bf16.msra.mxu0 %v3212_v5  ;;  %v1318_v5 = vld [vmem:[#allocation5 + $0x410] sm:$0xff] }
 0x1b8   : > { %3245 = vmatpush3.bf16.msra.mxu1 %v3244_v34  ;;  %3215 = vmatprep.subr.bf16.mxu0 %v3214_v10  ;;  %v1319_v34 = vld [vmem:[#allocation5 + $0x418] sm:$0xff]  ;;  %v3350_v10 = vpack.c.bf16 %v1367_v0, %v1366_v62  ;;  %v1354_v62 = vld [vmem:[#allocation5 + $0x530] sm:$0xff] }
 0x1b9   : > { %3247 = vmatprep.subr.bf16.mxu1 %v3246_v37  ;;  %v3320_v36 = vpack.c.bf16 %v1319_v34, %v1318_v5  ;;  %v1351_v37 = vld [vmem:[#allocation5 + $0x518] sm:$0xff]  ;;  %v1340_v5 = vld [vmem:[#allocation5 + $0x4c0] sm:$0xff]  ;;  %v1341_v34 = vld [vmem:[#allocation5 + $0x4c8] sm:$0xff] }
 0x1ba   : > { %v3352_v47 = vpack.c.bf16 %v1351_v37, %v1350_v11  ;;  %v1373_v11 = vld [vmem:[#allocation5 + $0x5c8] sm:$0xff]  ;;  %v1324_v37 = vld [vmem:[#allocation5 + $0x440] sm:$0xff] }
 0x1bb   : > { %3217 = vmatpush3.bf16.msra.mxu0 %v3216_v20  ;;  %v1337_v20 = vld [vmem:[#allocation5 + $0x4a8] sm:$0xff] }
 0x1bc   : > { %3249 = vmatpush3.bf16.msra.mxu1 %v3248_v12  ;;  %3251 = vmatprep.subr.bf16.mxu0 %v4195_v4  ;;  %v1368_v12 = vld [vmem:[#allocation5 + $0x5a0] sm:$0xff] }
 0x1bd   : > { %3283 = vmatprep.subr.bf16.mxu1 %v4200_v8 }
 0x1be   : > { %1027 = vmatmul.mubr.f32.vlgmr.msra.gmra.mrb[24].mxu0 %v4398_v14  ;;  %v4729_v14 = vmov 0.0  }
 0x1bf   : > { %1112 = vmatmul.mubr.f32.vlgmr.msra.gmra.mrb[24].mxu1 %v4400_v15  ;;  %1031 = vmatprep.mubr.f32.mxu0 %v4410_v29  ;;  %v4730_v15 = vld [vmem:[#allocation16_spill] sm:$0xff]  ;;  %v4733_v29 = vld [vmem:[#allocation19_spill] sm:$0xff] }
 0x1c0   : > { %1116 = vmatprep.mubr.f32.mxu1 %v4412_v30  ;;  %3253 = vmatpush1.bf16.msra.mxu0 %v4202_v9  ;;  %v4734_v30 = vld [vmem:[#allocation20_spill] sm:$0xff] }
 0x1c1   : > { %3285 = vmatpush1.bf16.msra.mxu1 %v4208_v13  ;;  %3255 = vmatprep.subr.bf16.mxu0 %v4215_v17 }
 0x1c2   : > { %1032 = vmatmul.mubr.f32.gmra.mrb[26].mxu0 %v4406_v24  ;;  %3287 = vmatprep.subr.bf16.mxu1 %v4217_v18  ;;  %v4731_v24 = vld [vmem:[#allocation17_spill] sm:$0xff] }
 0x1c3   : > { %1117 = vmatmul.mubr.f32.gmra.mrb[26].mxu1 %v4408_v28  ;;  %1036 = vmatprep.mubr.f32.mxu0 %v4418_v38  ;;  %v4732_v28 = vld [vmem:[#allocation18_spill] sm:$0xff]  ;;  %v4737_v38 = vld [vmem:[#allocation23_spill] sm:$0xff] }
 0x1c4   : > { %1121 = vmatprep.mubr.f32.mxu1 %v4420_v41  ;;  %3257 = vmatpush1.bf16.msra.mxu0 %v4223_v22  ;;  %v4738_v41 = vld [vmem:[#allocation24_spill] sm:$0xff] }
 0x1c5   : > { %3289 = vmatpush1.bf16.msra.mxu1 %v4230_v26  ;;  %3259 = vmatprep.subr.bf16.mxu0 %v4232_v27 }
 0x1c6   : > { %1037 = vmatmul.mubr.f32.gmra.mrb[28].mxu0 %v4414_v32  ;;  %3291 = vmatprep.subr.bf16.mxu1 %v4237_v31  ;;  %v4735_v32 = vld [vmem:[#allocation21_spill] sm:$0xff] }
 0x1c7   : > { %1122 = vmatmul.mubr.f32.gmra.mrb[28].mxu1 %v4416_v33  ;;  %1041 = vmatprep.mubr.f32.mxu0 %v4426_v48  ;;  %v4736_v33 = vld [vmem:[#allocation22_spill] sm:$0xff] }
 0x1c8   : > { %1126 = vmatprep.mubr.f32.mxu1 %v4428_v49  ;;  %3261 = vmatpush1.bf16.msra.mxu0 %v4243_v35  ;;  %v4740_v48 = vld [vmem:[#allocation26_spill] sm:$0xff]  ;;  %v1134_v49 = vld [vmem:[#allocation2 + $0x48] sm:$0xff] }
 0x1c9   : > { %3293 = vmatpush1.bf16.msra.mxu1 %v4250_v39  ;;  %3263 = vmatprep.subr.bf16.mxu0 %v4252_v40 }
 0x1ca   : > { %1042 = vmatmul.mubr.f32.gmra.mrb[30].mxu0 %v4422_v43  ;;  %3295 = vmatprep.subr.bf16.mxu1 %v4258_v44  ;;  %v4739_v43 = vld [vmem:[#allocation25_spill] sm:$0xff] }
 0x1cb   : > { %1127 = vmatmul.mubr.f32.gmra.mrb[30].mxu1 %v4424_v45  ;;  %1201 = vmatprep.mubr.f32.mxu0 %v4729_v14  ;;  %v1133_v45 = vld [vmem:[#allocation2 + $0x40] sm:$0xff] }
 0x1cc   : > { %3265 = vmatpush1.bf16.msra.mxu0 %v4267_v51  ;;  %1290 = vmatprep.mubr.f32.mxu1 %v4729_v14 }
 0x1cd   : > { %3297 = vmatpush1.bf16.msra.mxu1 %v4271_v52  ;;  %3267 = vmatprep.subr.bf16.mxu0 %v4273_v53 }
 0x1ce   : > { %3299 = vmatprep.subr.bf16.mxu1 %v4279_v57 }
 0x1d0   : > { %3269 = vmatpush1.bf16.msra.mxu0 %v4287_v63 }
 0x1d1   : > { %3301 = vmatpush1.bf16.msra.mxu1 %v4291_v1  ;;  %3271 = vmatprep.subr.bf16.mxu0 %v4293_v2 }
 0x1d2   : > { %3303 = vmatprep.subr.bf16.mxu1 %v4730_v15 }
 0x1d4   : > { %3273 = vmatpush1.bf16.msra.mxu0 %v4731_v24 }
 0x1d5   : > { %3305 = vmatpush1.bf16.msra.mxu1 %v4732_v28  ;;  %3275 = vmatprep.subr.bf16.mxu0 %v4733_v29 }
 0x1d6   : > { %3307 = vmatprep.subr.bf16.mxu1 %v4734_v30 }
 0x1d8   : > { %3277 = vmatpush1.bf16.msra.mxu0 %v4735_v32 }
 0x1d9   : > { %3309 = vmatpush1.bf16.msra.mxu1 %v4736_v33  ;;  %3279 = vmatprep.subr.bf16.mxu0 %v4737_v38 }
 0x1da   : > { %3311 = vmatprep.subr.bf16.mxu1 %v4738_v41 }
 0x1dc   : > { %3281 = vmatpush1.bf16.msra.mxu0 %v4739_v43 }
 0x1dd   : > { %3313 = vmatpush1.bf16.msra.mxu1 %v4740_v48  ;;  %3315 = vmatprep.subr.bf16.mxu0 %v3314_v58  ;;  %v1353_v58 = vld [vmem:[#allocation5 + $0x528] sm:$0xff] }
 0x1de   : > { %3347 = vmatprep.subr.bf16.mxu1 %v3346_v7  ;;  %v3356_v59 = vpack.c.bf16 %v1353_v58, %v1352_v19  ;;  %v1370_v7 = vld [vmem:[#allocation5 + $0x5b0] sm:$0xff] }
 0x1df   : > { %1202 = vmatmul.mubr.f32.vlgmr.msra.gmra.mrb[32].mxu0 %v1133_v45  ;;  %v3358_v23 = vpack.c.bf16 %v1371_v6, %v1370_v7  ;;  %v1344_v6 = vld [vmem:[#allocation5 + $0x4e0] sm:$0xff] }
 0x1e0   : > { %1291 = vmatmul.mubr.f32.vlgmr.msra.gmra.mrb[32].mxu1 %v1133_v45  ;;  %1207 = vmatprep.mubr.f32.mxu0 %v4729_v14  ;;  %v3322_v45 = vpack.c.bf16 %v1337_v20, %v1336_v42 }
 0x1e1   : > { %1296 = vmatprep.mubr.f32.mxu1 %v4729_v14  ;;  %3317 = vmatpush3.bf16.msra.mxu0 %v3316_v16  ;;  %v3326_v16 = vpack.c.bf16 %v1339_v21, %v1338_v56  ;;  %v1327_v56 = vld [vmem:[#allocation5 + $0x458] sm:$0xff]  ;;  %v1358_v21 = vld [vmem:[#allocation5 + $0x550] sm:$0xff] }
 0x1e2   : > { %3349 = vmatpush3.bf16.msra.mxu1 %v3348_v61  ;;  %3319 = vmatprep.subr.bf16.mxu0 %v3318_v3  ;;  %v1323_v61 = vld [vmem:[#allocation5 + $0x438] sm:$0xff] }
 0x1e3   : > { %1208 = vmatmul.mubr.f32.gmra.mrb[34].mxu0 %v1134_v49  ;;  %3351 = vmatprep.subr.bf16.mxu1 %v3350_v10  ;;  %v3328_v46 = vpack.c.bf16 %v1323_v61, %v1322_v60  ;;  %v1355_v3 = vld [vmem:[#allocation5 + $0x538] sm:$0xff]  ;;  %v1372_v10 = vld [vmem:[#allocation5 + $0x5c0] sm:$0xff]  ;;  %v1345_v60 = vld [vmem:[#allocation5 + $0x4e8] sm:$0xff] }
 0x1e4   : > { %1297 = vmatmul.mubr.f32.gmra.mrb[34].mxu1 %v1134_v49  ;;  %1213 = vmatprep.mubr.f32.mxu0 %v4729_v14  ;;  %v1369_v49 = vld [vmem:[#allocation5 + $0x5a8] sm:$0xff]  ;;  %v3360_v0 = vpack.c.bf16 %v1355_v3, %v1354_v62  ;;  %v3362_v42 = vpack.c.bf16 %v1373_v11, %v1372_v10  ;;  %v1328_v3 = vld [vmem:[#allocation5 + $0x460] sm:$0xff]  ;;  %v1346_v11 = vld [vmem:[#allocation5 + $0x4f0] sm:$0xff] }
 0x1e5   : > { %1302 = vmatprep.mubr.f32.mxu1 %v4729_v14  ;;  %3321 = vmatpush3.bf16.msra.mxu0 %v3320_v36  ;;  %v3354_v55 = vpack.c.bf16 %v1369_v49, %v1368_v12  ;;  %v3330_v36 = vpack.c.bf16 %v1341_v34, %v1340_v5  ;;  %v1356_v12 = vld [vmem:[#allocation5 + $0x540] sm:$0xff]  ;;  %v1342_v49 = vld [vmem:[#allocation5 + $0x4d0] sm:$0xff]  ;;  %v1377_v62 = vld [vmem:[#allocation5 + $0x5e8] sm:$0xff] }
 0x1e6   : > { %3353 = vmatpush3.bf16.msra.mxu1 %v3352_v47  ;;  %3323 = vmatprep.subr.bf16.mxu0 %v3322_v45  ;;  %v1325_v47 = vld [vmem:[#allocation5 + $0x448] sm:$0xff]  ;;  %v1360_v34 = vld [vmem:[#allocation5 + $0x560] sm:$0xff] }
 0x1e7   : > { %1214 = vmatmul.mubr.f32.gmra.mrb[36].mxu0 %v1135_v25  ;;  %3355 = vmatprep.subr.bf16.mxu1 %v3354_v55  ;;  %v3332_v20 = vpack.c.bf16 %v1325_v47, %v1324_v37  ;;  %v1357_v45 = vld [vmem:[#allocation5 + $0x548] sm:$0xff]  ;;  %v1374_v55 = vld [vmem:[#allocation5 + $0x5d0] sm:$0xff]  ;;  %v1347_v37 = vld [vmem:[#allocation5 + $0x4f8] sm:$0xff] }
 0x1e8   : > { %1303 = vmatmul.mubr.f32.gmra.mrb[36].mxu1 %v1135_v25  ;;  %1219 = vmatprep.mubr.f32.mxu0 %v4729_v14  ;;  %v1320_v25 = vld [vmem:[#allocation5 + $0x420] sm:$0xff]  ;;  %v1329_v5 = vld [vmem:[#allocation5 + $0x468] sm:$0xff]  ;;  %v1378_v47 = vld [vmem:[#allocation5 + $0x5f0] sm:$0xff] }
 0x1e9   : > { %1308 = vmatprep.mubr.f32.mxu1 %v4729_v14  ;;  %v1361_v10 = vld [vmem:[#allocation5 + $0x568] sm:$0xff] }
 0x1ea   : > { %3357 = vmatpush3.bf16.msra.mxu1 %v3356_v59  ;;  %v1326_v59 = vld [vmem:[#allocation5 + $0x450] sm:$0xff] }
 0x1eb   : > { %1220 = vmatmul.mubr.f32.gmra.mrb[38].mxu0 %v1136_v50  ;;  %3359 = vmatprep.subr.bf16.mxu1 %v3358_v23  ;;  %v3336_v7 = vpack.c.bf16 %v1327_v56, %v1326_v59  ;;  %v3338_v23 = vpack.c.bf16 %v1345_v60, %v1344_v6 }
 0x1ec   : > { %1309 = vmatmul.mubr.f32.gmra.mrb[38].mxu1 %v1136_v50  ;;  %v1321_v50 = vld [vmem:[#allocation5 + $0x428] sm:$0xff] }
 0x1ed   : > { %v3324_v54 = vpack.c.bf16 %v1321_v50, %v1320_v25  ;;  %v3364_v25 = vpack.c.bf16 %v1357_v45, %v1356_v12  ;;  %v1343_v50 = vld [vmem:[#allocation5 + $0x4d8] sm:$0xff]  ;;  %v1330_v45 = vld [vmem:[#allocation5 + $0x470] sm:$0xff] }
 0x1ee   : > { %3361 = vmatpush3.bf16.msra.mxu1 %v3360_v0  ;;  %v3334_v19 = vpack.c.bf16 %v1343_v50, %v1342_v49  ;;  %v1379_v12 = vld [vmem:[#allocation5 + $0x5f8] sm:$0xff]  ;;  %v1362_v50 = vld [vmem:[#allocation5 + $0x570] sm:$0xff] }
 0x1ef   : > { %3325 = vmatpush3.bf16.msra.mxu0 %v3324_v54  ;;  %v1375_v54 = vld [vmem:[#allocation5 + $0x5d8] sm:$0xff]  ;;  %3363 = vmatprep.subr.bf16.mxu1 %v3362_v42  ;;  %v3372_v42 = vpack.c.bf16 %v1361_v10, %v1360_v34 }
 0x1f0   : > { %3327 = vmatprep.subr.bf16.mxu0 %v3326_v16  ;;  %v3366_v58 = vpack.c.bf16 %v1375_v54, %v1374_v55  ;;  %v1359_v16 = vld [vmem:[#allocation5 + $0x558] sm:$0xff] }
 0x1f1   : > { %v3368_v61 = vpack.c.bf16 %v1359_v16, %v1358_v21  ;;  %v1331_v49 = vld [vmem:[#allocation5 + $0x478] sm:$0xff] }
 0x1f2   : > { %3365 = vmatpush3.bf16.msra.mxu1 %v3364_v25  ;;  %v3374_v25 = vpack.c.bf16 %v1379_v12, %v1378_v47  ;;  %v1363_v55 = vld [vmem:[#allocation5 + $0x578] sm:$0xff]  ;;  %v3344_v54 = vpack.c.bf16 %v1331_v49, %v1330_v45 }
 0x1f3   : > { %3329 = vmatpush3.bf16.msra.mxu0 %v3328_v46  ;;  %3367 = vmatprep.subr.bf16.mxu1 %v3366_v58  ;;  %v1376_v46 = vld [vmem:[#allocation5 + $0x5e0] sm:$0xff] }
 0x1f4   : > { %3331 = vmatprep.subr.bf16.mxu0 %v3330_v36  ;;  %v3370_v0 = vpack.c.bf16 %v1377_v62, %v1376_v46  ;;  %v3340_v36 = vpack.c.bf16 %v1329_v5, %v1328_v3 }
 0x1f6   : > { %3369 = vmatpush3.bf16.msra.mxu1 %v3368_v61 }
 0x1f7   : > { %3333 = vmatpush3.bf16.msra.mxu0 %v3332_v20  ;;  %v3342_v20 = vpack.c.bf16 %v1347_v37, %v1346_v11  ;;  %3371 = vmatprep.subr.bf16.mxu1 %v3370_v0 }
 0x1f8   : > { %3335 = vmatprep.subr.bf16.mxu0 %v3334_v19  ;;  %v3376_v19 = vpack.c.bf16 %v1363_v55, %v1362_v50 }
 0x1fa   : > { %3373 = vmatpush3.bf16.msra.mxu1 %v3372_v42 }
 0x1fb   : > { %3337 = vmatpush3.bf16.msra.mxu0 %v3336_v7  ;;  %3375 = vmatprep.subr.bf16.mxu1 %v3374_v25 }
 0x1fc   : > { %3339 = vmatprep.subr.bf16.mxu0 %v3338_v23 }
 0x1fe   : > { %3377 = vmatpush3.bf16.msra.mxu1 %v3376_v19 }
 0x1ff   : > { %3341 = vmatpush3.bf16.msra.mxu0 %v3340_v36  ;;  %3411 = vmatprep.subr.bf16.mxu1 %v4200_v8 }
 0x200   : > { %3343 = vmatprep.subr.bf16.mxu0 %v3342_v20 }
 0x203   : > { %3345 = vmatpush3.bf16.msra.mxu0 %v3344_v54 }
 0x204   : > { %3379 = vmatprep.subr.bf16.mxu0 %v4195_v4 }
 0x271   : > { %v2586_v58 = vpop.f32.mrb[16].mxu0 }
 0x272   : > { %v2630_v59 = vpop.f32.mrb[16].mxu1  ;;  %v2587_v56 = vpop.f32.mrb[17].mxu0 }
 0x273   : > { %v2588_v21 = vadd.f32 %v2587_v56, %v2586_v58  ;;  %v2631_v7 = vpop.f32.mrb[17].mxu1 }
 0x274   : > { %v2632_v16 = vadd.f32 %v2631_v7, %v2630_v59 }
 0x275   : > { %v2589_v6 = vpop.f32.mrb[18].mxu0 }
 0x276   : > { %v944_v60 = vadd.f32 %v2632_v16, %v2588_v21  ;;  %v2633_v61 = vpop.f32.mrb[18].mxu1  ;;  %v2590_v23 = vpop.f32.mrb[19].mxu0 }
 0x277   : > { %v2591_v46 = vadd.f32 %v2590_v23, %v2589_v6  ;;  %v2634_v62 = vpop.f32.mrb[19].mxu1 }
 0x278   : > { %v2635_v3 = vadd.f32 %v2634_v62, %v2633_v61 }
 0x279   : > { %v2592_v0 = vpop.f32.mrb[20].mxu0 }
 0x27a   : > { %v949_v5 = vadd.f32 %v2635_v3, %v2591_v46  ;;  %v2636_v34 = vpop.f32.mrb[20].mxu1  ;;  %v2593_v10 = vpop.f32.mrb[21].mxu0 }
 0x27b   : > { %v2594_v36 = vadd.f32 %v2593_v10, %v2592_v0  ;;  %v2637_v11 = vpop.f32.mrb[21].mxu1 }
 0x27c   : > { %v2638_v37 = vadd.f32 %v2637_v11, %v2636_v34 }
 0x27d   : > { %v2595_v47 = vpop.f32.mrb[22].mxu0 }
 0x27e   : > { %v954_v42 = vadd.f32 %v2638_v37, %v2594_v36  ;;  %v2639_v20 = vpop.f32.mrb[22].mxu1  ;;  %v2596_v12 = vpop.f32.mrb[23].mxu0 }
 0x27f   : > { %v2597_v45 = vadd.f32 %v2596_v12, %v2595_v47  ;;  %v2640_v49 = vpop.f32.mrb[23].mxu1 }
 0x280   : > { %v2641_v25 = vadd.f32 %v2640_v49, %v2639_v20 }
 0x282   : > { %v959_v50 = vadd.f32 %v2641_v25, %v2597_v45 }
 0x291   : > { %v2674_v55 = vpop.f32.mrb[24].mxu0 }
 0x292   : > { %v2718_v54 = vpop.f32.mrb[24].mxu1  ;;  %v2675_v19 = vpop.f32.mrb[25].mxu0 }
 0x293   : > { %v2676_v58 = vadd.f32 %v2675_v19, %v2674_v55  ;;  %v2719_v59 = vpop.f32.mrb[25].mxu1 }
 0x294   : > { %v2720_v56 = vadd.f32 %v2719_v59, %v2718_v54 }
 0x295   : > { %v1029_v21 = vadd.f32 %v2676_v58, %v944_v60  ;;  %v2677_v7 = vpop.f32.mrb[26].mxu0 }
 0x296   : > { %v2721_v16 = vpop.f32.mrb[26].mxu1  ;;  %v2678_v6 = vpop.f32.mrb[27].mxu0 }
 0x297   : > { %v4488_v61 = vadd.f32 %v2720_v56, %v1029_v21  ;;  %v2679_v23 = vadd.f32 %v2678_v6, %v2677_v7  ;;  %v2722_v46 = vpop.f32.mrb[27].mxu1 }
 0x298   : > { %v2723_v62 = vadd.f32 %v2722_v46, %v2721_v16 }
 0x299   : > { %v1034_v3 = vadd.f32 %v2679_v23, %v949_v5  ;;  %v2680_v0 = vpop.f32.mrb[28].mxu0 }
 0x29a   : > { %v2724_v34 = vpop.f32.mrb[28].mxu1  ;;  %v2681_v10 = vpop.f32.mrb[29].mxu0 }
 0x29b   : > { %v4490_v36 = vadd.f32 %v2723_v62, %v1034_v3  ;;  %v2682_v11 = vadd.f32 %v2681_v10, %v2680_v0  ;;  %v2725_v37 = vpop.f32.mrb[29].mxu1 }
 0x29c   : > { %v2726_v47 = vadd.f32 %v2725_v37, %v2724_v34  ;;  %v1556_v37 = vld [vmem:[#allocation2 + $0x68] sm:$0xff] }
 0x29d   : > { %v1039_v20 = vadd.f32 %v2682_v11, %v954_v42  ;;  %v2683_v12 = vpop.f32.mrb[30].mxu0  ;;  %v1555_v11 = vld [vmem:[#allocation2 + $0x60] sm:$0xff] }
 0x29e   : > { %v2727_v60 = vpop.f32.mrb[30].mxu1  ;;  %v2684_v45 = vpop.f32.mrb[31].mxu0 }
 0x29f   : > { %v4492_v49 = vadd.f32 %v2726_v47, %v1039_v20  ;;  %v2685_v25 = vadd.f32 %v2684_v45, %v2683_v12  ;;  %v2728_v55 = vpop.f32.mrb[31].mxu1  ;;  %v1557_v47 = vld [vmem:[#allocation2 + $0x70] sm:$0xff]  ;;  %v1558_v20 = vld [vmem:[#allocation2 + $0x78] sm:$0xff]  ;;  %v1754_v12 = vld [vmem:[#allocation5 + $0x680] sm:$0xff] }
 0x2a0   : > { %v2729_v54 = vadd.f32 %v2728_v55, %v2727_v60  ;;  %v1755_v60 = vld [vmem:[#allocation5 + $0x688] sm:$0xff]  ;;  %v1786_v45 = vld [vmem:[#allocation5 + $0x780] sm:$0xff] }
 0x2a1   : > { %v1044_v19 = vadd.f32 %v2685_v25, %v959_v50  ;;  %v3442_v25 = vpack.c.bf16 %v1755_v60, %v1754_v12  ;;  %v1787_v55 = vld [vmem:[#allocation5 + $0x788] sm:$0xff] }
 0x2a2   : > { %v1791_v60 = vld [vmem:[#allocation5 + $0x7a8] sm:$0xff] }
 0x2a3   : > { %v4494_v58 = vadd.f32 %v2729_v54, %v1044_v19  ;;  %v1738_v54 = vld [vmem:[#allocation5 + $0x600] sm:$0xff]  ;;  %v1739_v19 = vld [vmem:[#allocation5 + $0x608] sm:$0xff] }
 0x2b2   : > { %v1203_v5 = vpop.f32.mrb[32].mxu0 }
 0x2b3   : > { %v1292_v59 = vpop.f32.mrb[32].mxu1  ;;  %v1205_v56 = vpop.f32.mrb[33].mxu0 }
 0x2b4   : > { %v1294_v21 = vpop.f32.mrb[33].mxu1  ;;  %1444 = vmatprep.mubr.f32.mxu0 %v1205_v56  ;;  %v1770_v56 = vld [vmem:[#allocation5 + $0x700] sm:$0xff] }
 0x2b5   : > { %1529 = vmatprep.mubr.f32.mxu1 %v1294_v21  ;;  %1445 = vmatmul.mubr.f32.vlgmr.msra.gmra.mrb[40].mxu0 %v1203_v5  ;;  %v3474_v5 = vpack.c.bf16 %v1787_v55, %v1786_v45  ;;  %v1771_v21 = vld [vmem:[#allocation5 + $0x708] sm:$0xff]  ;;  %v1742_v45 = vld [vmem:[#allocation5 + $0x620] sm:$0xff] }
 0x2b6   : > { %1530 = vmatmul.mubr.f32.vlgmr.msra.gmra.mrb[40].mxu1 %v1292_v59  ;;  %3381 = vmatpush1.bf16.msra.mxu0 %v4202_v9  ;;  %v1209_v42 = vpop.f32.mrb[34].mxu0  ;;  %v3444_v59 = vpack.c.bf16 %v1739_v19, %v1738_v54  ;;  %v1774_v19 = vld [vmem:[#allocation5 + $0x720] sm:$0xff] }
 0x2b7   : > { %3413 = vmatpush1.bf16.msra.mxu1 %v4208_v13  ;;  %v1298_v7 = vpop.f32.mrb[34].mxu1  ;;  %v1211_v16 = vpop.f32.mrb[35].mxu0  ;;  %3383 = vmatprep.subr.bf16.mxu0 %v4215_v17 }
 0x2b8   : > { %v1300_v50 = vpop.f32.mrb[35].mxu1  ;;  %1449 = vmatprep.mubr.f32.mxu0 %v1211_v16  ;;  %3415 = vmatprep.subr.bf16.mxu1 %v4217_v18  ;;  %v1757_v16 = vld [vmem:[#allocation5 + $0x698] sm:$0xff] }
 0x2b9   : > { %1534 = vmatprep.mubr.f32.mxu1 %v1300_v50  ;;  %1450 = vmatmul.mubr.f32.gmra.mrb[42].mxu0 %v1209_v42  ;;  %v3476_v42 = vpack.c.bf16 %v1771_v21, %v1770_v56  ;;  %v1788_v50 = vld [vmem:[#allocation5 + $0x790] sm:$0xff]  ;;  %v1761_v21 = vld [vmem:[#allocation5 + $0x6b8] sm:$0xff] }
 0x2ba   : > { %1535 = vmatmul.mubr.f32.gmra.mrb[42].mxu1 %v1298_v7  ;;  %3385 = vmatpush1.bf16.msra.mxu0 %v4223_v22  ;;  %v1215_v6 = vpop.f32.mrb[36].mxu0  ;;  %v1756_v7 = vld [vmem:[#allocation5 + $0x690] sm:$0xff] }
 0x2bb   : > { %3417 = vmatpush1.bf16.msra.mxu1 %v4230_v26  ;;  %v1304_v23 = vpop.f32.mrb[36].mxu1  ;;  %v1217_v46 = vpop.f32.mrb[37].mxu0  ;;  %3387 = vmatprep.subr.bf16.mxu0 %v4232_v27  ;;  %v1760_v56 = vld [vmem:[#allocation5 + $0x6b0] sm:$0xff] }
 0x2bc   : > { %v1306_v62 = vpop.f32.mrb[37].mxu1  ;;  %1454 = vmatprep.mubr.f32.mxu0 %v1217_v46  ;;  %3419 = vmatprep.subr.bf16.mxu1 %v4237_v31  ;;  %v1740_v46 = vld [vmem:[#allocation5 + $0x610] sm:$0xff] }
 0x2bd   : > { %1539 = vmatprep.mubr.f32.mxu1 %v1306_v62  ;;  %1455 = vmatmul.mubr.f32.gmra.mrb[44].mxu0 %v1215_v6  ;;  %v3446_v6 = vpack.c.bf16 %v1757_v16, %v1756_v7  ;;  %v1741_v62 = vld [vmem:[#allocation5 + $0x618] sm:$0xff]  ;;  %v3454_v7 = vpack.c.bf16 %v1761_v21, %v1760_v56 }
 0x2be   : > { %1540 = vmatmul.mubr.f32.gmra.mrb[44].mxu1 %v1304_v23  ;;  %3389 = vmatpush1.bf16.msra.mxu0 %v4243_v35  ;;  %v1221_v3 = vpop.f32.mrb[38].mxu0  ;;  %v1789_v23 = vld [vmem:[#allocation5 + $0x798] sm:$0xff] }
 0x2bf   : > { %3421 = vmatpush1.bf16.msra.mxu1 %v4250_v39  ;;  %v1310_v0 = vpop.f32.mrb[38].mxu1  ;;  %v1223_v34 = vpop.f32.mrb[39].mxu0  ;;  %3391 = vmatprep.subr.bf16.mxu0 %v4252_v40  ;;  %v1793_v16 = vld [vmem:[#allocation5 + $0x7b8] sm:$0xff] }
 0x2c0   : > { %v1312_v10 = vpop.f32.mrb[39].mxu1  ;;  %1459 = vmatprep.mubr.f32.mxu0 %v1223_v34  ;;  %3423 = vmatprep.subr.bf16.mxu1 %v4258_v44  ;;  %v1772_v34 = vld [vmem:[#allocation5 + $0x710] sm:$0xff]  ;;  %v1797_v21 = vld [vmem:[#allocation5 + $0x7d8] sm:$0xff] }
 0x2c1   : > { %1544 = vmatprep.mubr.f32.mxu1 %v1312_v10  ;;  %1460 = vmatmul.mubr.f32.gmra.mrb[46].mxu0 %v1221_v3  ;;  %v3478_v3 = vpack.c.bf16 %v1789_v23, %v1788_v50  ;;  %v1773_v10 = vld [vmem:[#allocation5 + $0x718] sm:$0xff]  ;;  %v1744_v50 = vld [vmem:[#allocation5 + $0x630] sm:$0xff] }
 0x2c2   : > { %1545 = vmatmul.mubr.f32.gmra.mrb[46].mxu1 %v1310_v0  ;;  %3393 = vmatpush1.bf16.msra.mxu0 %v4267_v51  ;;  %v3448_v0 = vpack.c.bf16 %v1741_v62, %v1740_v46  ;;  %v1776_v62 = vld [vmem:[#allocation5 + $0x730] sm:$0xff] }
 0x2c3   : > { %3425 = vmatpush1.bf16.msra.mxu1 %v4271_v52  ;;  %3395 = vmatprep.subr.bf16.mxu0 %v4273_v53 }
 0x2c4   : > { %3427 = vmatprep.subr.bf16.mxu1 %v4279_v57  ;;  %1623 = vmatprep.mubr.f32.mxu0 %v4729_v14 }
 0x2c5   : > { %1712 = vmatprep.mubr.f32.mxu1 %v4729_v14 }
 0x2c6   : > { %3397 = vmatpush1.bf16.msra.mxu0 %v4287_v63 }
 0x2c7   : > { %3429 = vmatpush1.bf16.msra.mxu1 %v4291_v1  ;;  %3399 = vmatprep.subr.bf16.mxu0 %v4293_v2 }
 0x2c8   : > { %3431 = vmatprep.subr.bf16.mxu1 %v4730_v15 }
 0x2ca   : > { %3401 = vmatpush1.bf16.msra.mxu0 %v4731_v24 }
 0x2cb   : > { %3433 = vmatpush1.bf16.msra.mxu1 %v4732_v28  ;;  %3403 = vmatprep.subr.bf16.mxu0 %v4733_v29 }
 0x2cc   : > { %3435 = vmatprep.subr.bf16.mxu1 %v4734_v30 }
 0x2ce   : > { %3405 = vmatpush1.bf16.msra.mxu0 %v4735_v32 }
 0x2cf   : > { %3437 = vmatpush1.bf16.msra.mxu1 %v4736_v33  ;;  %3407 = vmatprep.subr.bf16.mxu0 %v4737_v38 }
 0x2d0   : > { %3439 = vmatprep.subr.bf16.mxu1 %v4738_v41 }
 0x2d2   : > { %3409 = vmatpush1.bf16.msra.mxu0 %v4739_v43 }
 0x2d3   : > { %3441 = vmatpush1.bf16.msra.mxu1 %v4740_v48  ;;  %3443 = vmatprep.subr.bf16.mxu0 %v3442_v25  ;;  %v1743_v25 = vld [vmem:[#allocation5 + $0x628] sm:$0xff] }
 0x2d4   : > { %3475 = vmatprep.subr.bf16.mxu1 %v3474_v5  ;;  %v3452_v54 = vpack.c.bf16 %v1743_v25, %v1742_v45  ;;  %v1775_v5 = vld [vmem:[#allocation5 + $0x728] sm:$0xff]  ;;  %v1778_v25 = vld [vmem:[#allocation5 + $0x740] sm:$0xff] }
 0x2d5   : > { %1624 = vmatmul.mubr.f32.vlgmr.msra.gmra.mrb[48].mxu0 %v1555_v11 }
 0x2d6   : > { %1713 = vmatmul.mubr.f32.vlgmr.msra.gmra.mrb[48].mxu1 %v1555_v11  ;;  %1629 = vmatprep.mubr.f32.mxu0 %v4729_v14  ;;  %v3480_v11 = vpack.c.bf16 %v1773_v10, %v1772_v34  ;;  %v1762_v34 = vld [vmem:[#allocation5 + $0x6c0] sm:$0xff]  ;;  %v1763_v10 = vld [vmem:[#allocation5 + $0x6c8] sm:$0xff] }
 0x2d7   : > { %1718 = vmatprep.mubr.f32.mxu1 %v4729_v14  ;;  %3445 = vmatpush3.bf16.msra.mxu0 %v3444_v59  ;;  %v3484_v59 = vpack.c.bf16 %v1775_v5, %v1774_v19  ;;  %v1764_v19 = vld [vmem:[#allocation5 + $0x6d0] sm:$0xff]  ;;  %v1765_v5 = vld [vmem:[#allocation5 + $0x6d8] sm:$0xff] }
 0x2d8   : > { %3477 = vmatpush3.bf16.msra.mxu1 %v3476_v42  ;;  %3447 = vmatprep.subr.bf16.mxu0 %v3446_v6  ;;  %v1792_v42 = vld [vmem:[#allocation5 + $0x7b0] sm:$0xff]  ;;  %v1745_v6 = vld [vmem:[#allocation5 + $0x638] sm:$0xff]  ;;  %v3462_v56 = vpack.c.bf16 %v1765_v5, %v1764_v19 }
 0x2d9   : > { %1630 = vmatmul.mubr.f32.gmra.mrb[50].mxu0 %v1556_v37  ;;  %3479 = vmatprep.subr.bf16.mxu1 %v3478_v3  ;;  %v3486_v23 = vpack.c.bf16 %v1793_v16, %v1792_v42  ;;  %v3456_v46 = vpack.c.bf16 %v1745_v6, %v1744_v50  ;;  %v1777_v3 = vld [vmem:[#allocation5 + $0x738] sm:$0xff]  ;;  %v1748_v42 = vld [vmem:[#allocation5 + $0x650] sm:$0xff] }
 0x2da   : > { %1719 = vmatmul.mubr.f32.gmra.mrb[50].mxu1 %v1556_v37  ;;  %1635 = vmatprep.mubr.f32.mxu0 %v4729_v14  ;;  %v1758_v37 = vld [vmem:[#allocation5 + $0x6a0] sm:$0xff]  ;;  %v1780_v6 = vld [vmem:[#allocation5 + $0x750] sm:$0xff]  ;;  %v1801_v5 = vld [vmem:[#allocation5 + $0x7f8] sm:$0xff] }
 0x2db   : > { %1724 = vmatprep.mubr.f32.mxu1 %v4729_v14  ;;  %3449 = vmatpush3.bf16.msra.mxu0 %v3448_v0  ;;  %v3488_v0 = vpack.c.bf16 %v1777_v3, %v1776_v62  ;;  %v1767_v3 = vld [vmem:[#allocation5 + $0x6e8] sm:$0xff]  ;;  %v1800_v19 = vld [vmem:[#allocation5 + $0x7f0] sm:$0xff] }
 0x2dc   : > { %3481 = vmatpush3.bf16.msra.mxu1 %v3480_v11  ;;  %v1794_v11 = vld [vmem:[#allocation5 + $0x7c0] sm:$0xff] }
 0x2dd   : > { %1636 = vmatmul.mubr.f32.gmra.mrb[52].mxu0 %v1557_v47 }
 0x2de   : > { %1725 = vmatmul.mubr.f32.gmra.mrb[52].mxu1 %v1557_v47  ;;  %1641 = vmatprep.mubr.f32.mxu0 %v4729_v14  ;;  %v1759_v47 = vld [vmem:[#allocation5 + $0x6a8] sm:$0xff] }
 0x2df   : > { %1730 = vmatprep.mubr.f32.mxu1 %v4729_v14  ;;  %v3450_v12 = vpack.c.bf16 %v1759_v47, %v1758_v37  ;;  %v3458_v37 = vpack.c.bf16 %v1763_v10, %v1762_v34  ;;  %v1795_v47 = vld [vmem:[#allocation5 + $0x7c8] sm:$0xff] }
 0x2e0   : > { %v1799_v34 = vld [vmem:[#allocation5 + $0x7e8] sm:$0xff] }
 0x2e1   : > { %1642 = vmatmul.mubr.f32.gmra.mrb[54].mxu0 %v1558_v20  ;;  %3451 = vmatprep.subr.bf16.mxu0 %v3450_v12  ;;  %v1747_v12 = vld [vmem:[#allocation5 + $0x648] sm:$0xff] }
 0x2e2   : > { %1731 = vmatmul.mubr.f32.gmra.mrb[54].mxu1 %v1558_v20  ;;  %v1790_v20 = vld [vmem:[#allocation5 + $0x7a0] sm:$0xff]  ;;  %3453 = vmatpush3.bf16.msra.mxu0 %v3452_v54 }
 0x2e3   : > { %v3482_v55 = vpack.c.bf16 %v1791_v60, %v1790_v20  ;;  %3455 = vmatprep.subr.bf16.mxu0 %v3454_v7  ;;  %v1746_v20 = vld [vmem:[#allocation5 + $0x640] sm:$0xff]  ;;  %v3490_v60 = vpack.c.bf16 %v1795_v47, %v1794_v11  ;;  %v1749_v7 = vld [vmem:[#allocation5 + $0x658] sm:$0xff]  ;;  %v1751_v47 = vld [vmem:[#allocation5 + $0x668] sm:$0xff] }
 0x2e4   : > { %v3460_v45 = vpack.c.bf16 %v1747_v12, %v1746_v20  ;;  %v3464_v50 = vpack.c.bf16 %v1749_v7, %v1748_v42  ;;  %v1782_v20 = vld [vmem:[#allocation5 + $0x760] sm:$0xff]  ;;  %v1784_v42 = vld [vmem:[#allocation5 + $0x770] sm:$0xff]  ;;  %v1785_v7 = vld [vmem:[#allocation5 + $0x778] sm:$0xff] }
 0x2e5   : > { %3483 = vmatprep.subr.bf16.mxu1 %v3482_v55  ;;  %v1779_v55 = vld [vmem:[#allocation5 + $0x748] sm:$0xff] }
 0x2e6   : > { %3485 = vmatpush3.bf16.msra.mxu1 %v3484_v59  ;;  %3457 = vmatpush3.bf16.msra.mxu0 %v3456_v46  ;;  %v3492_v54 = vpack.c.bf16 %v1779_v55, %v1778_v25  ;;  %v1796_v59 = vld [vmem:[#allocation5 + $0x7d0] sm:$0xff]  ;;  %v1766_v46 = vld [vmem:[#allocation5 + $0x6e0] sm:$0xff]  ;;  %v1769_v25 = vld [vmem:[#allocation5 + $0x6f8] sm:$0xff] }
 0x2e7   : > { %3487 = vmatprep.subr.bf16.mxu1 %v3486_v23  ;;  %3459 = vmatprep.subr.bf16.mxu0 %v3458_v37  ;;  %v3494_v16 = vpack.c.bf16 %v1797_v21, %v1796_v59  ;;  %v1781_v23 = vld [vmem:[#allocation5 + $0x758] sm:$0xff]  ;;  %v3466_v10 = vpack.c.bf16 %v1767_v3, %v1766_v46  ;;  %v1750_v37 = vld [vmem:[#allocation5 + $0x660] sm:$0xff]  ;;  %v1752_v59 = vld [vmem:[#allocation5 + $0x670] sm:$0xff] }
 0x2e8   : > { %v3496_v62 = vpack.c.bf16 %v1781_v23, %v1780_v6  ;;  %v3468_v12 = vpack.c.bf16 %v1751_v47, %v1750_v37  ;;  %v1753_v21 = vld [vmem:[#allocation5 + $0x678] sm:$0xff] }
 0x2ea   : > { %3489 = vmatpush3.bf16.msra.mxu1 %v3488_v0  ;;  %3461 = vmatpush3.bf16.msra.mxu0 %v3460_v45  ;;  %v1798_v0 = vld [vmem:[#allocation5 + $0x7e0] sm:$0xff]  ;;  %v1768_v45 = vld [vmem:[#allocation5 + $0x6f0] sm:$0xff] }
 0x2eb   : > { %3491 = vmatprep.subr.bf16.mxu1 %v3490_v60  ;;  %3463 = vmatprep.subr.bf16.mxu0 %v3462_v56  ;;  %v3498_v11 = vpack.c.bf16 %v1799_v34, %v1798_v0  ;;  %v1783_v60 = vld [vmem:[#allocation5 + $0x768] sm:$0xff]  ;;  %v3502_v56 = vpack.c.bf16 %v1801_v5, %v1800_v19 }
 0x2ec   : > { %v3500_v55 = vpack.c.bf16 %v1783_v60, %v1782_v20 }
 0x2ee   : > { %3493 = vmatpush3.bf16.msra.mxu1 %v3492_v54  ;;  %3465 = vmatpush3.bf16.msra.mxu0 %v3464_v50  ;;  %v3470_v54 = vpack.c.bf16 %v1769_v25, %v1768_v45  ;;  %v3504_v50 = vpack.c.bf16 %v1785_v7, %v1784_v42 }
 0x2ef   : > { %3495 = vmatprep.subr.bf16.mxu1 %v3494_v16  ;;  %3467 = vmatprep.subr.bf16.mxu0 %v3466_v10  ;;  %v3472_v16 = vpack.c.bf16 %v1753_v21, %v1752_v59 }
 0x2f2   : > { %3497 = vmatpush3.bf16.msra.mxu1 %v3496_v62  ;;  %3469 = vmatpush3.bf16.msra.mxu0 %v3468_v12 }
 0x2f3   : > { %3499 = vmatprep.subr.bf16.mxu1 %v3498_v11  ;;  %3471 = vmatprep.subr.bf16.mxu0 %v3470_v54 }
 0x2f6   : > { %3501 = vmatpush3.bf16.msra.mxu1 %v3500_v55  ;;  %3473 = vmatpush3.bf16.msra.mxu0 %v3472_v16 }
 0x2f7   : > { %3503 = vmatprep.subr.bf16.mxu1 %v3502_v56  ;;  %3507 = vmatprep.subr.bf16.mxu0 %v4195_v4 }
 0x2fa   : > { %3505 = vmatpush3.bf16.msra.mxu1 %v3504_v50 }
 0x2fb   : > { %3539 = vmatprep.subr.bf16.mxu1 %v4200_v8 }
 0x388   : > { %v2762_v6 = vpop.f32.mrb[40].mxu0 }
 0x389   : > { %v2806_v23 = vpop.f32.mrb[40].mxu1  ;;  %v2763_v46 = vpop.f32.mrb[41].mxu0 }
 0x38a   : > { %v2764_v62 = vadd.f32 %v2763_v46, %v2762_v6  ;;  %v2807_v3 = vpop.f32.mrb[41].mxu1 }
 0x38b   : > { %v2808_v0 = vadd.f32 %v2807_v3, %v2806_v23 }
 0x38c   : > { %v2765_v34 = vpop.f32.mrb[42].mxu0 }
 0x38d   : > { %v1532_v10 = vadd.f32 %v2808_v0, %v2764_v62  ;;  %v2809_v11 = vpop.f32.mrb[42].mxu1  ;;  %v2766_v37 = vpop.f32.mrb[43].mxu0 }
 0x38e   : > { %v2767_v47 = vadd.f32 %v2766_v37, %v2765_v34  ;;  %v2810_v20 = vpop.f32.mrb[43].mxu1  ;;  %v2194_v37 = vld [vmem:[#allocation5 + $0x910] sm:$0xff] }
 0x38f   : > { %v4537_v12 = vadd.f32 %v1532_v10, %v4488_v61  ;;  %v2811_v60 = vadd.f32 %v2810_v20, %v2809_v11 }
 0x390   : > { %v2768_v45 = vpop.f32.mrb[44].mxu0 }
 0x391   : > { %v1537_v4 = vadd.f32 %v2811_v60, %v2767_v47  ;;  %v2812_v25 = vpop.f32.mrb[44].mxu1  ;;  %v2769_v8 = vpop.f32.mrb[45].mxu0  ;;  %v2195_v47 = vld [vmem:[#allocation5 + $0x918] sm:$0xff]  ;;  %v2180_v60 = vld [vmem:[#allocation5 + $0x8a0] sm:$0xff] }
 0x392   : > { %v2770_v55 = vadd.f32 %v2769_v8, %v2768_v45  ;;  %v2813_v54 = vpop.f32.mrb[45].mxu1  ;;  %v3608_v20 = vpack.c.bf16 %v2195_v47, %v2194_v37  ;;  %v2181_v45 = vld [vmem:[#allocation5 + $0x8a8] sm:$0xff] }
 0x393   : > { %v4540_v19 = vadd.f32 %v1537_v4, %v4490_v36  ;;  %v2814_v5 = vadd.f32 %v2813_v54, %v2812_v25  ;;  %v2212_v4 = vld [vmem:[#allocation5 + $0x9a0] sm:$0xff]  ;;  %v3578_v25 = vpack.c.bf16 %v2181_v45, %v2180_v60  ;;  %v2213_v8 = vld [vmem:[#allocation5 + $0x9a8] sm:$0xff]  ;;  %v2191_v60 = vld [vmem:[#allocation5 + $0x8f8] sm:$0xff] }
 0x394   : > { %v2771_v59 = vpop.f32.mrb[46].mxu0  ;;  %v2165_v54 = vld [vmem:[#allocation5 + $0x828] sm:$0xff]  ;;  %v2222_v45 = vld [vmem:[#allocation5 + $0x9f0] sm:$0xff] }
 0x395   : > { %v1542_v56 = vadd.f32 %v2814_v5, %v2770_v55  ;;  %v2815_v21 = vpop.f32.mrb[46].mxu1  ;;  %v2772_v42 = vpop.f32.mrb[47].mxu0  ;;  %v2164_v55 = vld [vmem:[#allocation5 + $0x820] sm:$0xff]  ;;  %v3610_v5 = vpack.c.bf16 %v2213_v8, %v2212_v4  ;;  %v2205_v37 = vld [vmem:[#allocation5 + $0x968] sm:$0xff]  ;;  %v2223_v8 = vld [vmem:[#allocation5 + $0x9f8] sm:$0xff] }
 0x396   : > { %v2773_v7 = vadd.f32 %v2772_v42, %v2771_v59  ;;  %v2816_v16 = vpop.f32.mrb[47].mxu1  ;;  %v3580_v59 = vpack.c.bf16 %v2165_v54, %v2164_v55  ;;  %v3630_v55 = vpack.c.bf16 %v2223_v8, %v2222_v45  ;;  %v2174_v54 = vld [vmem:[#allocation5 + $0x870] sm:$0xff] }
 0x397   : > { %v4543_v61 = vadd.f32 %v1542_v56, %v4492_v49  ;;  %v2817_v50 = vadd.f32 %v2816_v16, %v2815_v21  ;;  %v2196_v56 = vld [vmem:[#allocation5 + $0x920] sm:$0xff]  ;;  %v2197_v21 = vld [vmem:[#allocation5 + $0x928] sm:$0xff]  ;;  %v2183_v16 = vld [vmem:[#allocation5 + $0x8b8] sm:$0xff] }
 0x398   : > { %v3612_v42 = vpack.c.bf16 %v2197_v21, %v2196_v56  ;;  %v2207_v21 = vld [vmem:[#allocation5 + $0x978] sm:$0xff] }
 0x399   : > { %v1547_v6 = vadd.f32 %v2817_v50, %v2773_v7  ;;  %v2182_v7 = vld [vmem:[#allocation5 + $0x8b0] sm:$0xff] }
 0x39a   : > { %v2214_v50 = vld [vmem:[#allocation5 + $0x9b0] sm:$0xff] }
 0x39b   : > { %v4546_v23 = vadd.f32 %v1547_v6, %v4494_v58  ;;  %v3582_v6 = vpack.c.bf16 %v2183_v16, %v2182_v7 }
 0x3a8   : > { %v1625_v46 = vpop.f32.mrb[48].mxu0 }
 0x3a9   : > { %v1714_v62 = vpop.f32.mrb[48].mxu1  ;;  %v1627_v3 = vpop.f32.mrb[49].mxu0 }
 0x3aa   : > { %v1716_v36 = vpop.f32.mrb[49].mxu1  ;;  %1866 = vmatprep.mubr.f32.mxu0 %v1627_v3  ;;  %v2167_v3 = vld [vmem:[#allocation5 + $0x838] sm:$0xff] }
 0x3ab   : > { %1951 = vmatprep.mubr.f32.mxu1 %v1716_v36  ;;  %1867 = vmatmul.mubr.f32.vlgmr.msra.gmra.mrb[56].mxu0 %v1625_v46  ;;  %v2215_v46 = vld [vmem:[#allocation5 + $0x9b8] sm:$0xff] }
 0x3ac   : > { %1952 = vmatmul.mubr.f32.vlgmr.msra.gmra.mrb[56].mxu1 %v1714_v62  ;;  %3509 = vmatpush1.bf16.msra.mxu0 %v4202_v9  ;;  %v1631_v0 = vpop.f32.mrb[50].mxu0  ;;  %v2166_v62 = vld [vmem:[#allocation5 + $0x830] sm:$0xff]  ;;  %v3614_v36 = vpack.c.bf16 %v2215_v46, %v2214_v50 }
 0x3ad   : > { %3541 = vmatpush1.bf16.msra.mxu1 %v4208_v13  ;;  %v1720_v49 = vpop.f32.mrb[50].mxu1  ;;  %v1633_v34 = vpop.f32.mrb[51].mxu0  ;;  %3511 = vmatprep.subr.bf16.mxu0 %v4215_v17 }
 0x3ae   : > { %v1722_v10 = vpop.f32.mrb[51].mxu1  ;;  %1871 = vmatprep.mubr.f32.mxu0 %v1633_v34  ;;  %3543 = vmatprep.subr.bf16.mxu1 %v4217_v18  ;;  %v2199_v34 = vld [vmem:[#allocation5 + $0x938] sm:$0xff] }
 0x3af   : > { %1956 = vmatprep.mubr.f32.mxu1 %v1722_v10  ;;  %1872 = vmatmul.mubr.f32.gmra.mrb[58].mxu0 %v1631_v0  ;;  %v3584_v0 = vpack.c.bf16 %v2167_v3, %v2166_v62 }
 0x3b0   : > { %1957 = vmatmul.mubr.f32.gmra.mrb[58].mxu1 %v1720_v49  ;;  %3513 = vmatpush1.bf16.msra.mxu0 %v4223_v22  ;;  %v1637_v58 = vpop.f32.mrb[52].mxu0  ;;  %v2198_v49 = vld [vmem:[#allocation5 + $0x930] sm:$0xff] }
 0x3b1   : > { %3545 = vmatpush1.bf16.msra.mxu1 %v4230_v26  ;;  %v1726_v9 = vpop.f32.mrb[52].mxu1  ;;  %v1639_v11 = vpop.f32.mrb[53].mxu0  ;;  %3515 = vmatprep.subr.bf16.mxu0 %v4232_v27  ;;  %v1977_v27 = vld [vmem:[#allocation2 + $0x80] sm:$0xff]  ;;  %v3616_v10 = vpack.c.bf16 %v2199_v34, %v2198_v49 }
 0x3b2   : > { %v1728_v13 = vpop.f32.mrb[53].mxu1  ;;  %1876 = vmatprep.mubr.f32.mxu0 %v1639_v11  ;;  %3547 = vmatprep.subr.bf16.mxu1 %v4237_v31  ;;  %v1978_v31 = vld [vmem:[#allocation2 + $0x88] sm:$0xff]  ;;  %v2216_v11 = vld [vmem:[#allocation5 + $0x9c0] sm:$0xff] }
 0x3b3   : > { %1961 = vmatprep.mubr.f32.mxu1 %v1728_v13  ;;  %1877 = vmatmul.mubr.f32.gmra.mrb[60].mxu0 %v1637_v58  ;;  %v2184_v58 = vld [vmem:[#allocation5 + $0x8c0] sm:$0xff] }
 0x3b4   : > { %1962 = vmatmul.mubr.f32.gmra.mrb[60].mxu1 %v1726_v9  ;;  %3517 = vmatpush1.bf16.msra.mxu0 %v4243_v35  ;;  %v1643_v17 = vpop.f32.mrb[54].mxu0  ;;  %v1979_v35 = vld [vmem:[#allocation2 + $0x90] sm:$0xff]  ;;  %v2185_v9 = vld [vmem:[#allocation5 + $0x8c8] sm:$0xff] }
 0x3b5   : > { %3549 = vmatpush1.bf16.msra.mxu1 %v4250_v39  ;;  %v1732_v18 = vpop.f32.mrb[54].mxu1  ;;  %v1645_v22 = vpop.f32.mrb[55].mxu0  ;;  %3519 = vmatprep.subr.bf16.mxu0 %v4252_v40  ;;  %v1980_v39 = vld [vmem:[#allocation2 + $0x98] sm:$0xff]  ;;  %v2176_v40 = vld [vmem:[#allocation5 + $0x880] sm:$0xff]  ;;  %v3586_v13 = vpack.c.bf16 %v2185_v9, %v2184_v58 }
 0x3b6   : > { %v1734_v26 = vpop.f32.mrb[55].mxu1  ;;  %1881 = vmatprep.mubr.f32.mxu0 %v1645_v22  ;;  %3551 = vmatprep.subr.bf16.mxu1 %v4258_v44  ;;  %v2177_v44 = vld [vmem:[#allocation5 + $0x888] sm:$0xff] }
 0x3b7   : > { %1966 = vmatprep.mubr.f32.mxu1 %v1734_v26  ;;  %1882 = vmatmul.mubr.f32.gmra.mrb[62].mxu0 %v1643_v17  ;;  %v2217_v17 = vld [vmem:[#allocation5 + $0x9c8] sm:$0xff] }
 0x3b8   : > { %1967 = vmatmul.mubr.f32.gmra.mrb[62].mxu1 %v1732_v18  ;;  %3521 = vmatpush1.bf16.msra.mxu0 %v4267_v51  ;;  %v2208_v51 = vld [vmem:[#allocation5 + $0x980] sm:$0xff]  ;;  %v2169_v22 = vld [vmem:[#allocation5 + $0x848] sm:$0xff]  ;;  %v3618_v26 = vpack.c.bf16 %v2217_v17, %v2216_v11 }
 0x3b9   : > { %3553 = vmatpush1.bf16.msra.mxu1 %v4271_v52  ;;  %3523 = vmatprep.subr.bf16.mxu0 %v4273_v53  ;;  %v3570_v52 = vpack.c.bf16 %v2177_v44, %v2176_v40  ;;  %v2209_v53 = vld [vmem:[#allocation5 + $0x988] sm:$0xff]  ;;  %v2168_v18 = vld [vmem:[#allocation5 + $0x840] sm:$0xff]  ;;  %v2187_v44 = vld [vmem:[#allocation5 + $0x8d8] sm:$0xff] }
 0x3ba   : > { %3555 = vmatprep.subr.bf16.mxu1 %v4279_v57  ;;  %2045 = vmatprep.mubr.f32.mxu0 %v4729_v14  ;;  %v2160_v57 = vld [vmem:[#allocation5 + $0x800] sm:$0xff] }
 0x3bb   : > { %2134 = vmatprep.mubr.f32.mxu1 %v4729_v14 }
 0x3bc   : > { %3525 = vmatpush1.bf16.msra.mxu0 %v4287_v63  ;;  %v2161_v63 = vld [vmem:[#allocation5 + $0x808] sm:$0xff] }
 0x3bd   : > { %3557 = vmatpush1.bf16.msra.mxu1 %v4291_v1  ;;  %3527 = vmatprep.subr.bf16.mxu0 %v4293_v2  ;;  %v3602_v1 = vpack.c.bf16 %v2209_v53, %v2208_v51  ;;  %v3572_v2 = vpack.c.bf16 %v2161_v63, %v2160_v57  ;;  %v2218_v51 = vld [vmem:[#allocation5 + $0x9d0] sm:$0xff] }
 0x3be   : > { %3559 = vmatprep.subr.bf16.mxu1 %v4730_v15  ;;  %v2192_v15 = vld [vmem:[#allocation5 + $0x900] sm:$0xff]  ;;  %v2170_v63 = vld [vmem:[#allocation5 + $0x850] sm:$0xff] }
 0x3c0   : > { %3529 = vmatpush1.bf16.msra.mxu0 %v4731_v24  ;;  %v2193_v24 = vld [vmem:[#allocation5 + $0x908] sm:$0xff] }
 0x3c1   : > { %3561 = vmatpush1.bf16.msra.mxu1 %v4732_v28  ;;  %3531 = vmatprep.subr.bf16.mxu0 %v4733_v29  ;;  %v3604_v28 = vpack.c.bf16 %v2193_v24, %v2192_v15  ;;  %v2178_v29 = vld [vmem:[#allocation5 + $0x890] sm:$0xff]  ;;  %v2203_v24 = vld [vmem:[#allocation5 + $0x958] sm:$0xff] }
 0x3c2   : > { %3563 = vmatprep.subr.bf16.mxu1 %v4734_v30  ;;  %v2179_v30 = vld [vmem:[#allocation5 + $0x898] sm:$0xff] }
 0x3c4   : > { %3533 = vmatpush1.bf16.msra.mxu0 %v4735_v32  ;;  %v3574_v32 = vpack.c.bf16 %v2179_v30, %v2178_v29  ;;  %v2189_v29 = vld [vmem:[#allocation5 + $0x8e8] sm:$0xff] }
 0x3c5   : > { %3565 = vmatpush1.bf16.msra.mxu1 %v4736_v33  ;;  %3535 = vmatprep.subr.bf16.mxu0 %v4737_v38  ;;  %v2211_v33 = vld [vmem:[#allocation5 + $0x998] sm:$0xff]  ;;  %v2162_v38 = vld [vmem:[#allocation5 + $0x810] sm:$0xff] }
 0x3c6   : > { %3567 = vmatprep.subr.bf16.mxu1 %v4738_v41  ;;  %v2163_v41 = vld [vmem:[#allocation5 + $0x818] sm:$0xff] }
 0x3c8   : > { %3537 = vmatpush1.bf16.msra.mxu0 %v4739_v43 }
 0x3c9   : > { %3569 = vmatpush1.bf16.msra.mxu1 %v4740_v48  ;;  %3571 = vmatprep.subr.bf16.mxu0 %v3570_v52  ;;  %v3576_v48 = vpack.c.bf16 %v2163_v41, %v2162_v38  ;;  %v2219_v52 = vld [vmem:[#allocation5 + $0x9d8] sm:$0xff]  ;;  %v2172_v38 = vld [vmem:[#allocation5 + $0x860] sm:$0xff] }
 0x3ca   : > { %3603 = vmatprep.subr.bf16.mxu1 %v3602_v1  ;;  %v3622_v57 = vpack.c.bf16 %v2219_v52, %v2218_v51  ;;  %v2171_v1 = vld [vmem:[#allocation5 + $0x858] sm:$0xff] }
 0x3cb   : > { %2046 = vmatmul.mubr.f32.vlgmr.msra.gmra.mrb[64].mxu0 %v1977_v27  ;;  %v3592_v15 = vpack.c.bf16 %v2171_v1, %v2170_v63 }
 0x3cc   : > { %2135 = vmatmul.mubr.f32.vlgmr.msra.gmra.mrb[64].mxu1 %v1977_v27  ;;  %2051 = vmatprep.mubr.f32.mxu0 %v4729_v14  ;;  %v3588_v27 = vpack.c.bf16 %v2169_v22, %v2168_v18 }
 0x3cd   : > { %2140 = vmatprep.mubr.f32.mxu1 %v4729_v14  ;;  %3573 = vmatpush3.bf16.msra.mxu0 %v3572_v2  ;;  %v2202_v2 = vld [vmem:[#allocation5 + $0x950] sm:$0xff] }
 0x3ce   : > { %3605 = vmatpush3.bf16.msra.mxu1 %v3604_v28  ;;  %3575 = vmatprep.subr.bf16.mxu0 %v3574_v32  ;;  %v2188_v28 = vld [vmem:[#allocation5 + $0x8e0] sm:$0xff]  ;;  %v3624_v30 = vpack.c.bf16 %v2203_v24, %v2202_v2 }
 0x3cf   : > { %2052 = vmatmul.mubr.f32.gmra.mrb[66].mxu0 %v1978_v31  ;;  %v2220_v32 = vld [vmem:[#allocation5 + $0x9e0] sm:$0xff] }
 0x3d0   : > { %2141 = vmatmul.mubr.f32.gmra.mrb[66].mxu1 %v1978_v31  ;;  %2057 = vmatprep.mubr.f32.mxu0 %v4729_v14  ;;  %v2200_v31 = vld [vmem:[#allocation5 + $0x940] sm:$0xff] }
 0x3d1   : > { %2146 = vmatprep.mubr.f32.mxu1 %v4729_v14  ;;  %3577 = vmatpush3.bf16.msra.mxu0 %v3576_v48  ;;  %v2204_v48 = vld [vmem:[#allocation5 + $0x960] sm:$0xff] }
 0x3d2   : > { %3579 = vmatprep.subr.bf16.mxu0 %v3578_v25  ;;  %v3628_v4 = vpack.c.bf16 %v2205_v37, %v2204_v48 }
 0x3d3   : > { %2058 = vmatmul.mubr.f32.gmra.mrb[68].mxu0 %v1979_v35 }
 0x3d4   : > { %2147 = vmatmul.mubr.f32.gmra.mrb[68].mxu1 %v1979_v35  ;;  %2063 = vmatprep.mubr.f32.mxu0 %v4729_v14  ;;  %v2201_v35 = vld [vmem:[#allocation5 + $0x948] sm:$0xff] }
 0x3d5   : > { %2152 = vmatprep.mubr.f32.mxu1 %v4729_v14  ;;  %v2210_v14 = vld [vmem:[#allocation5 + $0x990] sm:$0xff]  ;;  %3581 = vmatpush3.bf16.msra.mxu0 %v3580_v59  ;;  %v3620_v40 = vpack.c.bf16 %v2201_v35, %v2200_v31 }
 0x3d6   : > { %v3606_v43 = vpack.c.bf16 %v2211_v33, %v2210_v14  ;;  %3583 = vmatprep.subr.bf16.mxu0 %v3582_v6  ;;  %v3594_v14 = vpack.c.bf16 %v2189_v29, %v2188_v28  ;;  %v2221_v33 = vld [vmem:[#allocation5 + $0x9e8] sm:$0xff]  ;;  %v2206_v59 = vld [vmem:[#allocation5 + $0x970] sm:$0xff] }
 0x3d7   : > { %2064 = vmatmul.mubr.f32.gmra.mrb[70].mxu0 %v1980_v39  ;;  %v3626_v41 = vpack.c.bf16 %v2221_v33, %v2220_v32 }
 0x3d8   : > { %2153 = vmatmul.mubr.f32.gmra.mrb[70].mxu1 %v1980_v39  ;;  %3607 = vmatprep.subr.bf16.mxu1 %v3606_v43  ;;  %v2186_v39 = vld [vmem:[#allocation5 + $0x8d0] sm:$0xff]  ;;  %v2173_v43 = vld [vmem:[#allocation5 + $0x868] sm:$0xff] }
 0x3d9   : > { %3609 = vmatpush3.bf16.msra.mxu1 %v3608_v20  ;;  %3585 = vmatpush3.bf16.msra.mxu0 %v3584_v0  ;;  %v3590_v53 = vpack.c.bf16 %v2187_v44, %v2186_v39  ;;  %v3596_v47 = vpack.c.bf16 %v2173_v43, %v2172_v38  ;;  %v2190_v20 = vld [vmem:[#allocation5 + $0x8f0] sm:$0xff] }
 0x3da   : > { %3611 = vmatprep.subr.bf16.mxu1 %v3610_v5  ;;  %3587 = vmatprep.subr.bf16.mxu0 %v3586_v13  ;;  %v3598_v25 = vpack.c.bf16 %v2191_v60, %v2190_v20  ;;  %v2175_v5 = vld [vmem:[#allocation5 + $0x878] sm:$0xff] }
 0x3db   : > { %v3600_v56 = vpack.c.bf16 %v2175_v5, %v2174_v54 }
 0x3dd   : > { %3613 = vmatpush3.bf16.msra.mxu1 %v3612_v42  ;;  %3589 = vmatpush3.bf16.msra.mxu0 %v3588_v27  ;;  %v3632_v42 = vpack.c.bf16 %v2207_v21, %v2206_v59 }
 0x3de   : > { %3615 = vmatprep.subr.bf16.mxu1 %v3614_v36  ;;  %3591 = vmatprep.subr.bf16.mxu0 %v3590_v53 }
 0x3e1   : > { %3617 = vmatpush3.bf16.msra.mxu1 %v3616_v10  ;;  %3593 = vmatpush3.bf16.msra.mxu0 %v3592_v15 }
 0x3e2   : > { %3619 = vmatprep.subr.bf16.mxu1 %v3618_v26  ;;  %3595 = vmatprep.subr.bf16.mxu0 %v3594_v14 }
 0x3e5   : > { %3621 = vmatpush3.bf16.msra.mxu1 %v3620_v40  ;;  %3597 = vmatpush3.bf16.msra.mxu0 %v3596_v47 }
 0x3e6   : > { %3623 = vmatprep.subr.bf16.mxu1 %v3622_v57  ;;  %3599 = vmatprep.subr.bf16.mxu0 %v3598_v25 }
 0x3e9   : > { %3625 = vmatpush3.bf16.msra.mxu1 %v3624_v30  ;;  %3601 = vmatpush3.bf16.msra.mxu0 %v3600_v56 }
 0x3ea   : > { %3627 = vmatprep.subr.bf16.mxu1 %v3626_v41 }
 0x3ed   : > { %3629 = vmatpush3.bf16.msra.mxu1 %v3628_v4 }
 0x3ee   : > { %3631 = vmatprep.subr.bf16.mxu1 %v3630_v55 }
 0x3f1   : > { %3633 = vmatpush3.bf16.msra.mxu1 %v3632_v42 }
 0x47e   : > { %v2850_v7 = vpop.f32.mrb[56].mxu0 }
 0x47f   : > { %v2894_v16 = vpop.f32.mrb[56].mxu1  ;;  %v2851_v50 = vpop.f32.mrb[57].mxu0 }
 0x480   : > { %v2852_v6 = vadd.f32 %v2851_v50, %v2850_v7  ;;  %v2895_v46 = vpop.f32.mrb[57].mxu1 }
 0x481   : > { %v2896_v62 = vadd.f32 %v2895_v46, %v2894_v16 }
 0x482   : > { %v2853_v3 = vpop.f32.mrb[58].mxu0 }
 0x483   : > { %v1954_v36 = vadd.f32 %v2896_v62, %v2852_v6  ;;  %v2897_v0 = vpop.f32.mrb[58].mxu1  ;;  %v2854_v49 = vpop.f32.mrb[59].mxu0 }
 0x484   : > { %v2855_v34 = vadd.f32 %v2854_v49, %v2853_v3  ;;  %v2898_v10 = vpop.f32.mrb[59].mxu1 }
 0x485   : > { %v4587_v58 = vadd.f32 %v1954_v36, %v4537_v12  ;;  %v2899_v9 = vadd.f32 %v2898_v10, %v2897_v0 }
 0x486   : > { %v2856_v11 = vpop.f32.mrb[60].mxu0 }
 0x487   : > { %v1959_v13 = vadd.f32 %v2899_v9, %v2855_v34  ;;  %v2900_v17 = vpop.f32.mrb[60].mxu1  ;;  %v2857_v18 = vpop.f32.mrb[61].mxu0 }
 0x488   : > { %v2858_v22 = vadd.f32 %v2857_v18, %v2856_v11  ;;  %v2901_v26 = vpop.f32.mrb[61].mxu1 }
 0x489   : > { %v4590_v27 = vadd.f32 %v1959_v13, %v4540_v19  ;;  %v2902_v31 = vadd.f32 %v2901_v26, %v2900_v17 }
 0x48a   : > { %v2859_v35 = vpop.f32.mrb[62].mxu0 }
 0x48b   : > { %v1964_v39 = vadd.f32 %v2902_v31, %v2858_v22  ;;  %v2903_v40 = vpop.f32.mrb[62].mxu1  ;;  %v2860_v44 = vpop.f32.mrb[63].mxu0 }
 0x48c   : > { %v2861_v51 = vadd.f32 %v2860_v44, %v2859_v35  ;;  %v2904_v52 = vpop.f32.mrb[63].mxu1 }
 0x48d   : > { %v4593_v12 = vadd.f32 %v1964_v39, %v4543_v61  ;;  %v2905_v53 = vadd.f32 %v2904_v52, %v2903_v40 }
 0x48f   : > { %v1969_v57 = vadd.f32 %v2905_v53, %v2861_v51 }
 0x491   : > { %v4596_v63 = vadd.f32 %v1969_v57, %v4546_v23 }
 0x49e   : > { %v2047_v1 = vpop.f32.mrb[64].mxu0 }
 0x49f   : > { %v2136_v2 = vpop.f32.mrb[64].mxu1  ;;  %v2049_v15 = vpop.f32.mrb[65].mxu0 }
 0x4a0   : > { %v2138_v19 = vpop.f32.mrb[65].mxu1  ;;  %2288 = vmatprep.mubr.f32.mxu0 %v2049_v15 }
 0x4a1   : > { %2373 = vmatprep.mubr.f32.mxu1 %v2138_v19  ;;  %2289 = vmatmul.mubr.f32.vlgmr.msra.gmra.mrb[72].mxu0 %v2047_v1 }
 0x4a2   : > { %2374 = vmatmul.mubr.f32.vlgmr.msra.gmra.mrb[72].mxu1 %v2136_v2  ;;  %v2053_v24 = vpop.f32.mrb[66].mxu0 }
 0x4a3   : > { %v2142_v28 = vpop.f32.mrb[66].mxu1  ;;  %v2055_v29 = vpop.f32.mrb[67].mxu0 }
 0x4a4   : > { %v2144_v30 = vpop.f32.mrb[67].mxu1  ;;  %2293 = vmatprep.mubr.f32.mxu0 %v2055_v29 }
 0x4a5   : > { %2378 = vmatprep.mubr.f32.mxu1 %v2144_v30  ;;  %2294 = vmatmul.mubr.f32.gmra.mrb[74].mxu0 %v2053_v24 }
 0x4a6   : > { %2379 = vmatmul.mubr.f32.gmra.mrb[74].mxu1 %v2142_v28  ;;  %v2059_v61 = vpop.f32.mrb[68].mxu0 }
 0x4a7   : > { %v2148_v14 = vpop.f32.mrb[68].mxu1  ;;  %v2061_v23 = vpop.f32.mrb[69].mxu0 }
 0x4a8   : > { %v2150_v32 = vpop.f32.mrb[69].mxu1  ;;  %2298 = vmatprep.mubr.f32.mxu0 %v2061_v23 }
 0x4a9   : > { %2383 = vmatprep.mubr.f32.mxu1 %v2150_v32  ;;  %2299 = vmatmul.mubr.f32.gmra.mrb[76].mxu0 %v2059_v61 }
 0x4aa   : > { %2384 = vmatmul.mubr.f32.gmra.mrb[76].mxu1 %v2148_v14  ;;  %v2065_v33 = vpop.f32.mrb[70].mxu0 }
 0x4ab   : > { %v2154_v38 = vpop.f32.mrb[70].mxu1  ;;  %v2067_v41 = vpop.f32.mrb[71].mxu0 }
 0x4ac   : > { %v2156_v43 = vpop.f32.mrb[71].mxu1  ;;  %2303 = vmatprep.mubr.f32.mxu0 %v2067_v41 }
 0x4ad   : > { %2388 = vmatprep.mubr.f32.mxu1 %v2156_v43  ;;  %2304 = vmatmul.mubr.f32.gmra.mrb[78].mxu0 %v2065_v33 }
 0x4ae   : > { %2389 = vmatmul.mubr.f32.gmra.mrb[78].mxu1 %v2154_v38 }
 0x574   : > { %v2938_v48 = vpop.f32.mrb[72].mxu0 }
 0x575   : > { %v2982_v37 = vpop.f32.mrb[72].mxu1  ;;  %v2939_v47 = vpop.f32.mrb[73].mxu0 }
 0x576   : > { %v2940_v20 = vadd.f32 %v2939_v47, %v2938_v48  ;;  %v2983_v60 = vpop.f32.mrb[73].mxu1 }
 0x577   : > { %v2984_v45 = vadd.f32 %v2983_v60, %v2982_v37 }
 0x578   : > { %v2941_v4 = vpop.f32.mrb[74].mxu0 }
 0x579   : > { %v2376_v25 = vadd.f32 %v2984_v45, %v2940_v20  ;;  %v2985_v8 = vpop.f32.mrb[74].mxu1  ;;  %v2942_v55 = vpop.f32.mrb[75].mxu0 }
 0x57a   : > { %v2943_v54 = vadd.f32 %v2942_v55, %v2941_v4  ;;  %v2986_v5 = vpop.f32.mrb[75].mxu1 }
 0x57b   : > { %v2394_v59 = vadd.f32 %v2376_v25, %v4587_v58  ;;  %v2987_v56 = vadd.f32 %v2986_v5, %v2985_v8 }
 0x57c   : > { %v2944_v21 = vpop.f32.mrb[76].mxu0 }
 0x57d   : > { %v2398_v42 = vmax.f32 %v2394_v59, 0.0  ;;  %v2381_v7 = vadd.f32 %v2987_v56, %v2943_v54  ;;  %v2988_v16 = vpop.f32.mrb[76].mxu1  ;;  %v2945_v50 = vpop.f32.mrb[77].mxu0 }
 0x57e   : > { %v2946_v6 = vadd.f32 %v2945_v50, %v2944_v21  ;;  %v2989_v46 = vpop.f32.mrb[77].mxu1 }
 0x57f   : > { %v2402_v62 = vmin.f32 %v2398_v42, 1.0  ;;  %v2395_v3 = vadd.f32 %v2381_v7, %v4590_v27  ;;  %v2990_v36 = vadd.f32 %v2989_v46, %v2988_v16 }
 0x580   : > { %v2947_v0 = vpop.f32.mrb[78].mxu0 }
 0x581   : > { %2406 = vst [vmem:[%s233_s23] sm:$0xff] %v2402_v62  ;;  %v2399_v49 = vmax.f32 %v2395_v3, 0.0  ;;  %v2386_v34 = vadd.f32 %v2990_v36, %v2946_v6  ;;  %v2991_v10 = vpop.f32.mrb[78].mxu1  ;;  %v2948_v58 = vpop.f32.mrb[79].mxu0 }
 0x582   : > { %v2949_v9 = vadd.f32 %v2948_v58, %v2947_v0  ;;  %v2992_v11 = vpop.f32.mrb[79].mxu1 }
 0x583   : > { %v2403_v13 = vmin.f32 %v2399_v49, 1.0  ;;  %v2396_v17 = vadd.f32 %v2386_v34, %v4593_v12  ;;  %v2993_v18 = vadd.f32 %v2992_v11, %v2991_v10 }
 0x585   : > { %2407 = vst [vmem:[%s233_s23 + $0x8] sm:$0xff] %v2403_v13  ;;  %v2400_v22 = vmax.f32 %v2396_v17, 0.0  ;;  %v2391_v26 = vadd.f32 %v2993_v18, %v2949_v9 }
 0x587   : > { %v2404_v27 = vmin.f32 %v2400_v22, 1.0  ;;  %v2397_v31 = vadd.f32 %v2391_v26, %v4596_v63 }
 0x589   : > { %2408 = vst [vmem:[%s233_s23 + $0x10] sm:$0xff] %v2404_v27  ;;  %v2401_v35 = vmax.f32 %v2397_v31, 0.0 }
 0x58b   : > { %v2405_v39 = vmin.f32 %v2401_v35, 1.0 }
 0x58d   : > { %2409 = vst [vmem:[%s233_s23 + $0x18] sm:$0xff] %v2405_v39 }
 0x58e   : > { %3841 = shalt.err (!%p3838_p4)
}
 0x58f   : > { %s3842_s11 = scalar_lea.hbm %s4610_s5, 512  ;;  %s3846_s7 = scalar_lea.hbm %s4667_s3, 5120 }
 0x590   : > { %p3843_p10 = scmp.ne.s32.totalorder %s4610_s5, %s3842_s11  ;;  %p3847_p3 = scmp.lt.u32.totalorder %s4610_s5, %s4667_s3 }
 0x591   : > { %p3848_p7 = scmp.lt.u32.totalorder %s3846_s7, %s3842_s11  ;;  %p3850_p2 = scmp.lt.u32.totalorder %s3842_s11, %s4610_s5 }
 0x592   : > { %p3844_p11 = pnand %p3843_p10, %p4741_p6 }
 0x593   : > { %p3849_p12 = por %p3848_p7, %p3847_p3 }
 0x594   : > { %p3845_p13 = pneg %p3844_p11 }
 0x595   : > { %p3851_p8 = por %p3850_p2, %p3849_p12 }
 0x597   : > { %p3852_p1 = pnand %p3851_p8, %p3845_p13 }
 0x599   : > { %3855 = shalt.err (!%p3852_p1)
}
 0x59a   : > { %s3945_s24 = smov 128   ;;  %s3946_s23 = smov 8  }
 0x59b   : > { %3646 = dma.vmem_to_hbm [thread:$0]  (%p4741_p6), %s4605_s16, 512, %s4610_s5, %s2411_s10, %s3945_s24, %s3945_s24, %s3946_s23  }
 0x59c PF: > { %s4742_s0 = sld [smem:[#allocation13_spill]]  ;;  %s4743_s1 = sld [smem:[#allocation14_spill]] }
 0x59d   : > { %p3668_p9 = scmp.ge.s32.totalorder %s3934_s19, 2 }
 0x5a2   : > { %s2441_s30 = sand.u32 1, %s4742_s0   ;;  %p4744_p5 = scmp.ne.s32.totalorder %s4743_s1, 0 }
 0x5a3   : > { %s2442_s15 = scalar_lea.sflag [#allocation4], %s2441_s30 }
 0x5a4   : > { %p3660_p0 = pnand %p3668_p9, %p4744_p5 }
 0x5a6   : > { %3901 = dma.done.wait (!%p3660_p0), %s2442_s15, 512  }
 0x5a7   : > { %3903 = vsyncadd (!%p3660_p0), %s2442_s15, 4294966784  ;;  %s18_s19 = sadd.s32 1, %s3934_s19   ;;  %s4745_s25 = sld [smem:[#allocation15_spill]] }
 0x5a8   : > { %p15_p4 = scmp.ge.s32.totalorder %s18_s19, 12   ;;  %s4746_s12 = smov %s3910_s13 }
 0x5a9   : > { %s4747_s13 = smov %s3914_s14  ;;  %s4748_s14 = smov %s4139_s8 }
 0x5aa   : > { %s4749_s15 = smov %s3926_s17  ;;  %s4750_s16 = smov %s3930_s18 }
 0x5ab   : > { %s4752_s18 = smov %s4758_s9  ;;  %17 = sbr.rel (!%p15_p4) target bundleno = 10 (0xa), region = 92 }
 0x5ad   : > { %s4751_s17 = smov %s4745_s25 }
 0x5b2   :  { %2447 = vsyncpa [#allocation3], 1 }
 0x5b3   :  { %2449 = vsyncpa [#allocation3 + $0x1], 1 }
 0x5b4   :  { %2450 = vsyncpa [#allocation6], 1 }
 0x5b5   :  { %2451 = vsyncpa [#allocation4], 1 }
 0x5b6   :  { %2453 = vsyncpa [#allocation4 + $0x1], 1 }

</bundles_post_ra>
